<compile_context>
chip_gen: v7x
topology: tpu7x:2x2x1
jax: 0.10.0
libtpu: 0.0.40
codegen_flags: <defaults>
</compile_context>

<pallas_src>
import functools

import jax
import jax.numpy as jnp
from jax.experimental import pallas as pl
from jax.experimental.pallas import tpu as pltpu

MM_DTYPE = jnp.bfloat16   # matmul operand dtype (fp32 accumulation)
LN_EPS = 1e-5             # matches torch.nn.LayerNorm default


def _round_up(x, m):
    return (x + m - 1) // m * m


# -----------------------------------------------------------------------------
# In-kernel helpers (traced inside Pallas kernels)
# -----------------------------------------------------------------------------
def _mm(a, b):
    """MXU matmul: bf16 operands, fp32 accumulation."""
    return jnp.dot(a.astype(MM_DTYPE), b.astype(MM_DTYPE),
                   preferred_element_type=jnp.float32)


def _mha(q, k, v, num_heads):
    """Head-batched attention.  q: (Nq, D) fp32; k, v: (M, D) fp32 -> (Nq, D).

    Heads are batched through a single dot_general contracting the trailing
    head dim, so no per-head lane-offset slices, explicit K transposes or
    concat relayouts are emitted.
    """
    nq, d = q.shape
    m = k.shape[0]
    c = d // num_heads
    scale = 1.0 / float(c) ** 0.5
    # Fold 1/sqrt(c) into q: Nq*D multiplies instead of H*Nq*M on the scores.
    qh = (q * scale).astype(MM_DTYPE).reshape(nq, num_heads, c)
    kh = k.astype(MM_DTYPE).reshape(m, num_heads, c)
    vh = v.astype(MM_DTYPE).reshape(m, num_heads, c)
    s = jnp.einsum('qhc,khc->hqk', qh, kh,
                   preferred_element_type=jnp.float32)        # (H, Nq, M) fp32
    s = s - jnp.max(s, axis=-1, keepdims=True)
    e = jnp.exp(s)
    p = e / jnp.sum(e, axis=-1, keepdims=True)                # exact divide
    o = jnp.einsum('hqk,khc->qhc', p.astype(MM_DTYPE), vh,
                   preferred_element_type=jnp.float32)        # (Nq, H, c)
    return o.reshape(nq, d)


def _layernorm(h, g, b):
    mu = jnp.mean(h, axis=-1, keepdims=True)
    var = jnp.mean((h - mu) ** 2, axis=-1, keepdims=True)
    return (h - mu) * jax.lax.rsqrt(var + LN_EPS) * g + b


# -----------------------------------------------------------------------------
# Pallas kernels
# -----------------------------------------------------------------------------
def _pe_self_attn_kernel(xq_ref, eq_ref, xm_ref, em_ref,
                         wq_ref, bq_ref, wkv_ref, bkv_ref, wp_ref, bp_ref,
                         wo_ref, bo_ref, g_ref, b_ref, o_ref, *, num_heads):
    """PEAttentionLayer for a 'self' block (input == memory, embed_q == embed_k):
    q = proj_q(x_tile) + proj_p(e_tile);  k = proj_k(x_full) + proj_p(e_full);
    v = proj_v(x_full);  out = LayerNorm(linear(MHA(q, k, v)) + x_tile)."""
    x_q = xq_ref[0]                                 # (tq, D) fp32  query rows
    e_q = eq_ref[0]                                 # (tq, D)
    x_m = xm_ref[0]                                 # (M, D)  key/value rows
    e_m = em_ref[0]                                 # (M, D)
    D = x_q.shape[-1]

    q = _mm(x_q, wq_ref[...]) + bq_ref[...] + _mm(e_q, wp_ref[...]) + bp_ref[...]
    kv = _mm(x_m, wkv_ref[...]) + bkv_ref[...]      # (M, 2D) fused K/V proj
    pe_m = _mm(e_m, wp_ref[...]) + bp_ref[...]      # (M, D)  shared proj_p
    k = kv[:, :D] + pe_m
    v = kv[:, D:]

    hidden = _mha(q, k, v, num_heads)               # (tq, D)
    hidden = _mm(hidden, wo_ref[...]) + bo_ref[...]
    o_ref[0] = _layernorm(hidden + x_q, g_ref[...], b_ref[...])


def _cross_attn_kernel(xq_ref, m_ref, wq_ref, bq_ref, wkv_ref, bkv_ref,
                       wo_ref, bo_ref, g_ref, b_ref, o_ref, *, num_heads):
    """AttentionLayer (vanilla cross attention) + residual LayerNorm."""
    x_q = xq_ref[0]                                 # (tq, D) query rows
    mem = m_ref[0]                                  # (M, D) memory (resident)
    D = x_q.shape[-1]

    q = _mm(x_q, wq_ref[...]) + bq_ref[...]
    kv = _mm(mem, wkv_ref[...]) + bkv_ref[...]      # (M, 2D) fused K/V proj
    k = kv[:, :D]
    v = kv[:, D:]

    hidden = _mha(q, k, v, num_heads)
    hidden = _mm(hidden, wo_ref[...]) + bo_ref[...]
    o_ref[0] = _layernorm(hidden + x_q, g_ref[...], b_ref[...])


def _ffn_ln_kernel(x_ref, w1_ref, b1_ref, w2_ref, b2_ref, g_ref, b_ref, o_ref):
    """AttentionOutput: LayerNorm(x + squeeze(ReLU(expand(x)))). Row-tiled."""
    x = x_ref[...]                                  # (tm, D)
    h = _mm(x, w1_ref[...]) + b1_ref[...]
    h = jnp.maximum(h, 0.0)                         # ReLU
    h = _mm(h, w2_ref[...]) + b2_ref[...]
    o_ref[...] = _layernorm(x + h, g_ref[...], b_ref[...])


# -----------------------------------------------------------------------------
# Compiler params (explicit, footprint-sized vmem limits)
# -----------------------------------------------------------------------------
def _attn_compiler_params(tq, n_mem, d, num_heads, n_resident):
    f32, bf16 = 4, 2
    est = (
        n_resident * 2 * n_mem * d * f32            # resident K/V-side blocks (dbuf)
        + 3 * 2 * tq * d * f32                      # q-side tiles + output (dbuf)
        + n_mem * 3 * d * f32                       # kv + pe intermediates
        + num_heads * tq * n_mem * (2 * f32 + bf16) # scores/exp fp32 + bf16 probs
        + 10 * d * d * bf16                         # bf16 weights
    )
    # Clamp into [32 MiB, 64 MiB]; 64 MiB is v7x's physical VMEM — for very
    # large N implement the flash-style Nk loop instead of raising this.
    limit = int(min(max(3 * est // 2 + (8 << 20), 32 << 20), 64 << 20))
    return pltpu.CompilerParams(
        dimension_semantics=("parallel", "parallel"),
        vmem_limit_bytes=limit)


def _ffn_compiler_params(tm, d, dh):
    f32, bf16 = 4, 2
    est = 2 * 2 * tm * d * f32 + 2 * tm * dh * f32 + 2 * (d * dh + dh * d) * bf16
    limit = int(min(max(2 * est + (4 << 20), 32 << 20), 64 << 20))
    return pltpu.CompilerParams(
        dimension_semantics=("parallel",),
        vmem_limit_bytes=limit)


# -----------------------------------------------------------------------------
# pallas_call wrappers
# -----------------------------------------------------------------------------
def pe_self_attention_layer(p, x, emb, num_heads, tq=256):
    B, N, D = x.shape
    tq = min(tq, _round_up(N, 8))
    Np = _round_up(N, tq)
    if Np != N:
        # Pad only the query stream; the K/V stream stays unpadded so padded
        # rows never act as attention keys.
        xq = jnp.pad(x, ((0, 0), (0, Np - N), (0, 0)))
        eq = jnp.pad(emb, ((0, 0), (0, Np - N), (0, 0)))
    else:
        xq, eq = x, emb
    wmap = lambda b, i: (0, 0)
    out = pl.pallas_call(
        functools.partial(_pe_self_attn_kernel, num_heads=num_heads),
        out_shape=jax.ShapeDtypeStruct((B, Np, D), jnp.float32),
        grid=(B, Np // tq),
        in_specs=[
            pl.BlockSpec((1, tq, D), lambda b, i: (b, i, 0)),   # x   (query rows)
            pl.BlockSpec((1, tq, D), lambda b, i: (b, i, 0)),   # emb (query rows)
            pl.BlockSpec((1, N, D), lambda b, i: (b, 0, 0)),    # x   (keys/values, resident)
            pl.BlockSpec((1, N, D), lambda b, i: (b, 0, 0)),    # emb (keys, resident)
            pl.BlockSpec((D, D), wmap),                         # Wq
            pl.BlockSpec((1, D), wmap),                         # bq
            pl.BlockSpec((D, 2 * D), wmap),                     # Wkv
            pl.BlockSpec((1, 2 * D), wmap),                     # bkv
            pl.BlockSpec((D, D), wmap),                         # Wp
            pl.BlockSpec((1, D), wmap),                         # bp
            pl.BlockSpec((D, D), wmap),                         # Wo
            pl.BlockSpec((1, D), wmap),                         # bo
            pl.BlockSpec((1, D), wmap),                         # ln gamma
            pl.BlockSpec((1, D), wmap),                         # ln beta
        ],
        out_specs=pl.BlockSpec((1, tq, D), lambda b, i: (b, i, 0)),
        compiler_params=_attn_compiler_params(tq, N, D, num_heads, n_resident=2),
    )(xq, eq, x, emb, p["wq"], p["bq"], p["wkv"], p["bkv"], p["wp"], p["bp"],
      p["wo"], p["bo"], p["ln1_g"], p["ln1_b"])
    return out[:, :N] if Np != N else out


def cross_attention_layer(p, x, mem, num_heads, tq=256):
    B, N, D = x.shape
    M = mem.shape[1]
    tq = min(tq, _round_up(N, 8))
    Np = _round_up(N, tq)
    xq = jnp.pad(x, ((0, 0), (0, Np - N), (0, 0))) if Np != N else x
    wmap = lambda b, i: (0, 0)
    out = pl.pallas_call(
        functools.partial(_cross_attn_kernel, num_heads=num_heads),
        out_shape=jax.ShapeDtypeStruct((B, Np, D), jnp.float32),
        grid=(B, Np // tq),
        in_specs=[
            pl.BlockSpec((1, tq, D), lambda b, i: (b, i, 0)),   # x (query rows)
            pl.BlockSpec((1, M, D), lambda b, i: (b, 0, 0)),    # memory (resident)
            pl.BlockSpec((D, D), wmap),                         # Wq
            pl.BlockSpec((1, D), wmap),                         # bq
            pl.BlockSpec((D, 2 * D), wmap),                     # Wkv
            pl.BlockSpec((1, 2 * D), wmap),                     # bkv
            pl.BlockSpec((D, D), wmap),                         # Wo
            pl.BlockSpec((1, D), wmap),                         # bo
            pl.BlockSpec((1, D), wmap),                         # ln gamma
            pl.BlockSpec((1, D), wmap),                         # ln beta
        ],
        out_specs=pl.BlockSpec((1, tq, D), lambda b, i: (b, i, 0)),
        compiler_params=_attn_compiler_params(tq, M, D, num_heads, n_resident=1),
    )(xq, mem, p["wq"], p["bq"], p["wkv"], p["bkv"],
      p["wo"], p["bo"], p["ln1_g"], p["ln1_b"])
    return out[:, :N] if Np != N else out


def attention_output(p, x, tile_m=1024):
    """Row-tiled fused FFN + residual LayerNorm."""
    # TODO(synk): longer term, fuse this epilogue onto the attention q-row grid
    # to avoid the fp32 (B, N, D) HBM round-trip between the two pallas_calls.
    B, N, D = x.shape
    Dh = p["w1"].shape[1]
    x2 = x.reshape(B * N, D)
    M = x2.shape[0]
    tm = min(tile_m, _round_up(M, 8))
    Mp = _round_up(M, tm)
    if Mp != M:
        x2 = jnp.pad(x2, ((0, Mp - M), (0, 0)))
    wmap = lambda i: (0, 0)
    out = pl.pallas_call(
        _ffn_ln_kernel,
        out_shape=jax.ShapeDtypeStruct((Mp, D), jnp.float32),
        grid=(Mp // tm,),
        in_specs=[
            pl.BlockSpec((tm, D), lambda i: (i, 0)),            # x rows
            pl.BlockSpec((D, Dh), wmap),                        # W expand
            pl.BlockSpec((1, Dh), wmap),                        # b expand
            pl.BlockSpec((Dh, D), wmap),                        # W squeeze
            pl.BlockSpec((1, D), wmap),                         # b squeeze
            pl.BlockSpec((1, D), wmap),                         # ln gamma
            pl.BlockSpec((1, D), wmap),                         # ln beta
        ],
        out_specs=pl.BlockSpec((tm, D), lambda i: (i, 0)),
        compiler_params=_ffn_compiler_params(tm, D, Dh),
    )(x2, p["w1"], p["b1"], p["w2"], p["b2"], p["ln2_g"], p["ln2_b"])
    return out[:M].reshape(B, N, D)


# -----------------------------------------------------------------------------
# PEConditionalTransformer forward
# -----------------------------------------------------------------------------
def pe_conditional_transformer(params, feats0, feats1, embeddings0, embeddings1,
                               *, blocks, num_heads, tq=256, ffn_tile=1024):
    """Matches PEConditionalTransformer.forward with masks0=masks1=None,
    dropout=None, return_attention_scores=False."""
    # TODO(synk): memory_masks and dropout are not implemented (both None in
    # the reference configuration used here).
    for i, block in enumerate(blocks):
        lp = params["layers"][i]
        if block == "self":
            feats0 = attention_output(
                lp, pe_self_attention_layer(lp, feats0, embeddings0, num_heads, tq),
                ffn_tile)
            feats1 = attention_output(
                lp, pe_self_attention_layer(lp, feats1, embeddings1, num_heads, tq),
                ffn_tile)
        else:  # 'cross': feats0 is updated before feats1 consumes it
            feats0 = attention_output(
                lp, cross_attention_layer(lp, feats0, feats1, num_heads, tq),
                ffn_tile)
            feats1 = attention_output(
                lp, cross_attention_layer(lp, feats1, feats0, num_heads, tq),
                ffn_tile)
    return feats0, feats1


# -----------------------------------------------------------------------------
# Deterministic synthetic parameters (same shapes as the PyTorch module).
# Weight matrices are pre-cast to bf16 (halves weight DMA, removes per-step
# in-kernel converts); biases / LayerNorm params stay fp32.
# -----------------------------------------------------------------------------
def init_params(key, blocks, d_model):
    keys = iter(jax.random.split(key, 64 * max(1, len(blocks))))

    def w(din, dout):
        wt = jax.random.normal(next(keys), (din, dout), jnp.float32)
        return (wt / jnp.sqrt(jnp.float32(din))).astype(MM_DTYPE)

    def b(dout):
        return (jax.random.normal(next(keys), (dout,), jnp.float32) * 0.02
                ).reshape(1, dout)

    D = d_model
    layers = []
    for block in blocks:
        p = dict(
            wq=w(D, D), bq=b(D),
            wkv=w(D, 2 * D), bkv=b(2 * D),
            wo=w(D, D), bo=b(D),
            ln1_g=jnp.ones((1, D), jnp.float32), ln1_b=jnp.zeros((1, D), jnp.float32),
            w1=w(D, 2 * D), b1=b(2 * D),
            w2=w(2 * D, D), b2=b(D),
            ln2_g=jnp.ones((1, D), jnp.float32), ln2_b=jnp.zeros((1, D), jnp.float32),
        )
        if block == "self":        # PETransformerLayer additionally has proj_p
            p["wp"] = w(D, D)
            p["bp"] = b(D)
        layers.append(p)
    return dict(layers=layers)


# -----------------------------------------------------------------------------
# Example
# -----------------------------------------------------------------------------
if __name__ == "__main__":
    B = 2
    N0, N1 = 20, 16                 # different point counts per stream
    d_model, num_heads = 64, 4
    blocks = ("self", "cross")

    key = jax.random.PRNGKey(0)
    ks = jax.random.split(key, 5)
    feats0 = jax.random.normal(ks[0], (B, N0, d_model), jnp.float32)
    feats1 = jax.random.normal(ks[1], (B, N1, d_model), jnp.float32)
    emb0 = jax.random.normal(ks[2], (B, N0, d_model), jnp.float32)
    emb1 = jax.random.normal(ks[3], (B, N1, d_model), jnp.float32)
    params = init_params(ks[4], blocks, d_model)

    # Tiny tile sizes here so the demo exercises the q-row grid, padding and
    # FFN row tiling; production defaults are tq=256, ffn_tile=1024.
    fwd = jax.jit(functools.partial(
        pe_conditional_transformer, blocks=blocks, num_heads=num_heads,
        tq=8, ffn_tile=16))
    f0, f1 = fwd(params, feats0, feats1, emb0, emb1)
    jax.block_until_ready((f0, f1))

    assert f0.shape == (B, N0, d_model) and f1.shape == (B, N1, d_model)
    assert bool(jnp.all(jnp.isfinite(f0))) and bool(jnp.all(jnp.isfinite(f1)))
    print("KERNEL_OK")
</pallas_src>

<mosaic_0001>
module attributes {stable_mosaic.version = 11 : i64} {
  func.func @_pe_self_attn_kernel(%arg0: i32, %arg1: i32, %arg2: memref<1x8x64xf32, #tpu.memory_space<vmem>>, %arg3: memref<1x8x64xf32, #tpu.memory_space<vmem>>, %arg4: memref<1x20x64xf32, #tpu.memory_space<vmem>>, %arg5: memref<1x20x64xf32, #tpu.memory_space<vmem>>, %arg6: memref<64x64xbf16, #tpu.memory_space<vmem>>, %arg7: memref<1x64xf32, #tpu.memory_space<vmem>>, %arg8: memref<64x128xbf16, #tpu.memory_space<vmem>>, %arg9: memref<1x128xf32, #tpu.memory_space<vmem>>, %arg10: memref<64x64xbf16, #tpu.memory_space<vmem>>, %arg11: memref<1x64xf32, #tpu.memory_space<vmem>>, %arg12: memref<64x64xbf16, #tpu.memory_space<vmem>>, %arg13: memref<1x64xf32, #tpu.memory_space<vmem>>, %arg14: memref<1x64xf32, #tpu.memory_space<vmem>>, %arg15: memref<1x64xf32, #tpu.memory_space<vmem>>, %arg16: memref<1x8x64xf32, #tpu.memory_space<vmem>>) attributes {dimension_semantics = [#tpu.dimension_semantics<parallel>, #tpu.dimension_semantics<parallel>], iteration_bounds = array<i64: 2, 3>, scalar_prefetch = 0 : i64, scratch_operands = 0 : i64, tpu.core_type = #tpu.core_type<tc>, window_params = [{transform_indices = @transform_0, window_bounds = array<i64: 1, 8, 64>}, {transform_indices = @transform_1, window_bounds = array<i64: 1, 8, 64>}, {transform_indices = @transform_2, window_bounds = array<i64: 1, 20, 64>}, {transform_indices = @transform_3, window_bounds = array<i64: 1, 20, 64>}, {pipeline_mode = #tpu.pipeline_mode<synchronous>, transform_indices = @transform_4, window_bounds = array<i64: 64, 64>}, {pipeline_mode = #tpu.pipeline_mode<synchronous>, transform_indices = @transform_5, window_bounds = array<i64: 1, 64>}, {pipeline_mode = #tpu.pipeline_mode<synchronous>, transform_indices = @transform_6, window_bounds = array<i64: 64, 128>}, {pipeline_mode = #tpu.pipeline_mode<synchronous>, transform_indices = @transform_7, window_bounds = array<i64: 1, 128>}, {pipeline_mode = #tpu.pipeline_mode<synchronous>, transform_indices = @transform_8, window_bounds = array<i64: 64, 64>}, {pipeline_mode = #tpu.pipeline_mode<synchronous>, transform_indices = @transform_9, window_bounds = array<i64: 1, 64>}, {pipeline_mode = #tpu.pipeline_mode<synchronous>, transform_indices = @transform_10, window_bounds = array<i64: 64, 64>}, {pipeline_mode = #tpu.pipeline_mode<synchronous>, transform_indices = @transform_11, window_bounds = array<i64: 1, 64>}, {pipeline_mode = #tpu.pipeline_mode<synchronous>, transform_indices = @transform_12, window_bounds = array<i64: 1, 64>}, {pipeline_mode = #tpu.pipeline_mode<synchronous>, transform_indices = @transform_13, window_bounds = array<i64: 1, 64>}, {transform_indices = @transform_14, window_bounds = array<i64: 1, 8, 64>}]} {
    %c0 = arith.constant 0 : index
    %c0_0 = arith.constant 0 : index
    %c0_1 = arith.constant 0 : index
    %0 = vector.load %arg2[%c0, %c0_0, %c0_1] : memref<1x8x64xf32, #tpu.memory_space<vmem>>, vector<1x8x64xf32>
    %1 = vector.shape_cast %0 : vector<1x8x64xf32> to vector<8x64xf32>
    %c0_2 = arith.constant 0 : index
    %c0_3 = arith.constant 0 : index
    %c0_4 = arith.constant 0 : index
    %2 = vector.load %arg3[%c0_2, %c0_3, %c0_4] : memref<1x8x64xf32, #tpu.memory_space<vmem>>, vector<1x8x64xf32>
    %3 = vector.shape_cast %2 : vector<1x8x64xf32> to vector<8x64xf32>
    %c0_5 = arith.constant 0 : index
    %c0_6 = arith.constant 0 : index
    %c0_7 = arith.constant 0 : index
    %4 = vector.load %arg4[%c0_5, %c0_6, %c0_7] : memref<1x20x64xf32, #tpu.memory_space<vmem>>, vector<1x20x64xf32>
    %5 = vector.shape_cast %4 : vector<1x20x64xf32> to vector<20x64xf32>
    %c0_8 = arith.constant 0 : index
    %c0_9 = arith.constant 0 : index
    %c0_10 = arith.constant 0 : index
    %6 = vector.load %arg5[%c0_8, %c0_9, %c0_10] : memref<1x20x64xf32, #tpu.memory_space<vmem>>, vector<1x20x64xf32>
    %7 = vector.shape_cast %6 : vector<1x20x64xf32> to vector<20x64xf32>
    %c0_11 = arith.constant 0 : index
    %c0_12 = arith.constant 0 : index
    %8 = vector.load %arg6[%c0_11, %c0_12] : memref<64x64xbf16, #tpu.memory_space<vmem>>, vector<64x64xbf16>
    %9 = arith.truncf %1 : vector<8x64xf32> to vector<8x64xbf16>
    %cst = arith.constant dense<0.000000e+00> : vector<8x64xf32>
    %10 = tpu.matmul %9, %8, %cst {dimension_numbers = #tpu.dot_dimension_numbers<[1], [0], [0], [1], [0, 0, 1, 1], [], []>} : vector<8x64xbf16>, vector<64x64xbf16>, vector<8x64xf32> -> vector<8x64xf32>
    %c0_13 = arith.constant 0 : index
    %c0_14 = arith.constant 0 : index
    %11 = vector.load %arg7[%c0_13, %c0_14] : memref<1x64xf32, #tpu.memory_space<vmem>>, vector<1x64xf32>
    %12 = vector.broadcast %11 : vector<1x64xf32> to vector<8x64xf32>
    %13 = arith.addf %10, %12 : vector<8x64xf32>
    %c0_15 = arith.constant 0 : index
    %c0_16 = arith.constant 0 : index
    %14 = vector.load %arg10[%c0_15, %c0_16] : memref<64x64xbf16, #tpu.memory_space<vmem>>, vector<64x64xbf16>
    %15 = arith.truncf %3 : vector<8x64xf32> to vector<8x64xbf16>
    %cst_17 = arith.constant dense<0.000000e+00> : vector<8x64xf32>
    %16 = tpu.matmul %15, %14, %cst_17 {dimension_numbers = #tpu.dot_dimension_numbers<[1], [0], [0], [1], [0, 0, 1, 1], [], []>} : vector<8x64xbf16>, vector<64x64xbf16>, vector<8x64xf32> -> vector<8x64xf32>
    %17 = arith.addf %13, %16 : vector<8x64xf32>
    %c0_18 = arith.constant 0 : index
    %c0_19 = arith.constant 0 : index
    %18 = vector.load %arg11[%c0_18, %c0_19] : memref<1x64xf32, #tpu.memory_space<vmem>>, vector<1x64xf32>
    %19 = vector.broadcast %18 : vector<1x64xf32> to vector<8x64xf32>
    %20 = arith.addf %17, %19 : vector<8x64xf32>
    %c0_20 = arith.constant 0 : index
    %c0_21 = arith.constant 0 : index
    %21 = vector.load %arg8[%c0_20, %c0_21] : memref<64x128xbf16, #tpu.memory_space<vmem>>, vector<64x128xbf16>
    %22 = arith.truncf %5 : vector<20x64xf32> to vector<20x64xbf16>
    %cst_22 = arith.constant dense<0.000000e+00> : vector<20x128xf32>
    %23 = tpu.matmul %22, %21, %cst_22 {dimension_numbers = #tpu.dot_dimension_numbers<[1], [0], [0], [1], [0, 0, 1, 1], [], []>} : vector<20x64xbf16>, vector<64x128xbf16>, vector<20x128xf32> -> vector<20x128xf32>
    %c0_23 = arith.constant 0 : index
    %c0_24 = arith.constant 0 : index
    %24 = vector.load %arg9[%c0_23, %c0_24] : memref<1x128xf32, #tpu.memory_space<vmem>>, vector<1x128xf32>
    %25 = vector.broadcast %24 : vector<1x128xf32> to vector<20x128xf32>
    %26 = arith.addf %23, %25 : vector<20x128xf32>
    %c0_25 = arith.constant 0 : index
    %c0_26 = arith.constant 0 : index
    %27 = vector.load %arg10[%c0_25, %c0_26] : memref<64x64xbf16, #tpu.memory_space<vmem>>, vector<64x64xbf16>
    %28 = arith.truncf %7 : vector<20x64xf32> to vector<20x64xbf16>
    %cst_27 = arith.constant dense<0.000000e+00> : vector<20x64xf32>
    %29 = tpu.matmul %28, %27, %cst_27 {dimension_numbers = #tpu.dot_dimension_numbers<[1], [0], [0], [1], [0, 0, 1, 1], [], []>} : vector<20x64xbf16>, vector<64x64xbf16>, vector<20x64xf32> -> vector<20x64xf32>
    %c0_28 = arith.constant 0 : index
    %c0_29 = arith.constant 0 : index
    %30 = vector.load %arg11[%c0_28, %c0_29] : memref<1x64xf32, #tpu.memory_space<vmem>>, vector<1x64xf32>
    %31 = vector.broadcast %30 : vector<1x64xf32> to vector<20x64xf32>
    %32 = arith.addf %29, %31 : vector<20x64xf32>
    %33 = vector.extract_strided_slice %26 {offsets = [0, 0], sizes = [20, 64], strides = [1, 1]} : vector<20x128xf32> to vector<20x64xf32>
    %34 = arith.addf %33, %32 : vector<20x64xf32>
    %35 = vector.extract_strided_slice %26 {offsets = [0, 64], sizes = [20, 64], strides = [1, 1]} : vector<20x128xf32> to vector<20x64xf32>
    %cst_30 = arith.constant 2.500000e-01 : f32
    %36 = vector.broadcast %cst_30 : f32 to vector<8x64xf32>
    %37 = arith.mulf %20, %36 : vector<8x64xf32>
    %38 = arith.truncf %37 : vector<8x64xf32> to vector<8x64xbf16>
    %39 = vector.shape_cast %38 : vector<8x64xbf16> to vector<8x4x16xbf16>
    %40 = arith.truncf %34 : vector<20x64xf32> to vector<20x64xbf16>
    %41 = vector.shape_cast %40 : vector<20x64xbf16> to vector<20x4x16xbf16>
    %42 = arith.truncf %35 : vector<20x64xf32> to vector<20x64xbf16>
    %43 = vector.shape_cast %42 : vector<20x64xbf16> to vector<20x4x16xbf16>
    "tpu.trace_start"() <{level = 10 : i32, message = "qhc,khc->hqk"}> : () -> ()
    %cst_31 = arith.constant dense<0.000000e+00> : vector<4x8x20xf32>
    %44 = tpu.matmul %39, %41, %cst_31 {dimension_numbers = #tpu.dot_dimension_numbers<[2], [2], [0], [0], [0, 1, 0, 0, 1, 0], [1], [1]>} : vector<8x4x16xbf16>, vector<20x4x16xbf16>, vector<4x8x20xf32> -> vector<4x8x20xf32>
    "tpu.trace_stop"() : () -> ()
    %cst_32 = arith.constant dense<0xFF800000> : vector<4x8xf32>
    %45 = vector.multi_reduction <maximumf>, %44, %cst_32 [2] : vector<4x8x20xf32> to vector<4x8xf32>
    %46 = vector.shape_cast %45 : vector<4x8xf32> to vector<4x8x1xf32>
    %47 = vector.broadcast %46 : vector<4x8x1xf32> to vector<4x8x20xf32>
    %48 = arith.subf %44, %47 : vector<4x8x20xf32>
    %49 = math.exp %48 : vector<4x8x20xf32>
    %cst_33 = arith.constant dense<0.000000e+00> : vector<4x8xf32>
    %50 = vector.multi_reduction <add>, %49, %cst_33 [2] : vector<4x8x20xf32> to vector<4x8xf32>
    %51 = vector.shape_cast %50 : vector<4x8xf32> to vector<4x8x1xf32>
    %52 = vector.broadcast %51 : vector<4x8x1xf32> to vector<4x8x20xf32>
    %53 = arith.divf %49, %52 : vector<4x8x20xf32>
    %54 = arith.truncf %53 : vector<4x8x20xf32> to vector<4x8x20xbf16>
    "tpu.trace_start"() <{level = 10 : i32, message = "hqk,khc->qhc"}> : () -> ()
    %cst_34 = arith.constant dense<0.000000e+00> : vector<4x16x8xf32>
    %55 = tpu.matmul %43, %54, %cst_34 {dimension_numbers = #tpu.dot_dimension_numbers<[0], [2], [2], [1], [0, 1, 0, 2, 1, 1], [1], [0]>} : vector<20x4x16xbf16>, vector<4x8x20xbf16>, vector<4x16x8xf32> -> vector<4x16x8xf32>
    %56 = tpu.transpose %55, [2, 0, 1] : vector<4x16x8xf32> -> vector<8x4x16xf32>
    "tpu.trace_stop"() : () -> ()
    %57 = vector.shape_cast %56 : vector<8x4x16xf32> to vector<8x64xf32>
    %c0_35 = arith.constant 0 : index
    %c0_36 = arith.constant 0 : index
    %58 = vector.load %arg12[%c0_35, %c0_36] : memref<64x64xbf16, #tpu.memory_space<vmem>>, vector<64x64xbf16>
    %59 = arith.truncf %57 : vector<8x64xf32> to vector<8x64xbf16>
    %cst_37 = arith.constant dense<0.000000e+00> : vector<8x64xf32>
    %60 = tpu.matmul %59, %58, %cst_37 {dimension_numbers = #tpu.dot_dimension_numbers<[1], [0], [0], [1], [0, 0, 1, 1], [], []>} : vector<8x64xbf16>, vector<64x64xbf16>, vector<8x64xf32> -> vector<8x64xf32>
    %c0_38 = arith.constant 0 : index
    %c0_39 = arith.constant 0 : index
    %61 = vector.load %arg13[%c0_38, %c0_39] : memref<1x64xf32, #tpu.memory_space<vmem>>, vector<1x64xf32>
    %62 = vector.broadcast %61 : vector<1x64xf32> to vector<8x64xf32>
    %63 = arith.addf %60, %62 : vector<8x64xf32>
    %64 = arith.addf %63, %1 : vector<8x64xf32>
    %c0_40 = arith.constant 0 : index
    %c0_41 = arith.constant 0 : index
    %65 = vector.load %arg14[%c0_40, %c0_41] : memref<1x64xf32, #tpu.memory_space<vmem>>, vector<1x64xf32>
    %c0_42 = arith.constant 0 : index
    %c0_43 = arith.constant 0 : index
    %66 = vector.load %arg15[%c0_42, %c0_43] : memref<1x64xf32, #tpu.memory_space<vmem>>, vector<1x64xf32>
    %cst_44 = arith.constant dense<0.000000e+00> : vector<8xf32>
    %67 = vector.multi_reduction <add>, %64, %cst_44 [1] : vector<8x64xf32> to vector<8xf32>
    %68 = vector.shape_cast %67 : vector<8xf32> to vector<8x1xf32>
    %cst_45 = arith.constant 6.400000e+01 : f32
    %69 = vector.broadcast %cst_45 : f32 to vector<8x1xf32>
    %70 = arith.divf %68, %69 : vector<8x1xf32>
    %71 = vector.broadcast %70 : vector<8x1xf32> to vector<8x64xf32>
    %72 = arith.subf %64, %71 : vector<8x64xf32>
    %73 = arith.mulf %72, %72 : vector<8x64xf32>
    %cst_46 = arith.constant dense<0.000000e+00> : vector<8xf32>
    %74 = vector.multi_reduction <add>, %73, %cst_46 [1] : vector<8x64xf32> to vector<8xf32>
    %75 = vector.shape_cast %74 : vector<8xf32> to vector<8x1xf32>
    %cst_47 = arith.constant 6.400000e+01 : f32
    %76 = vector.broadcast %cst_47 : f32 to vector<8x1xf32>
    %77 = arith.divf %75, %76 : vector<8x1xf32>
    %78 = vector.broadcast %70 : vector<8x1xf32> to vector<8x64xf32>
    %79 = arith.subf %64, %78 : vector<8x64xf32>
    %cst_48 = arith.constant 9.99999974E-6 : f32
    %80 = vector.broadcast %cst_48 : f32 to vector<8x1xf32>
    %81 = arith.addf %77, %80 : vector<8x1xf32>
    %82 = math.rsqrt %81 : vector<8x1xf32>
    %83 = vector.broadcast %82 : vector<8x1xf32> to vector<8x64xf32>
    %84 = arith.mulf %79, %83 : vector<8x64xf32>
    %85 = vector.broadcast %65 : vector<1x64xf32> to vector<8x64xf32>
    %86 = arith.mulf %84, %85 : vector<8x64xf32>
    %87 = vector.broadcast %66 : vector<1x64xf32> to vector<8x64xf32>
    %88 = arith.addf %86, %87 : vector<8x64xf32>
    %c0_49 = arith.constant 0 : index
    %c0_50 = arith.constant 0 : index
    %c0_51 = arith.constant 0 : index
    %89 = vector.load %arg16[%c0_49, %c0_50, %c0_51] : memref<1x8x64xf32, #tpu.memory_space<vmem>>, vector<1x8x64xf32>
    %90 = vector.shape_cast %89 : vector<1x8x64xf32> to vector<8x64xf32>
    %91 = vector.shape_cast %88 : vector<8x64xf32> to vector<1x8x64xf32>
    tpu.vector_store %arg16[%c0_49, %c0_50, %c0_51], %91 {strides = array<i32>} : memref<1x8x64xf32, #tpu.memory_space<vmem>>, vector<1x8x64xf32>,
    return
  }
  func.func @transform_0(%arg0: i32, %arg1: i32) -> (i32, i32, i32) {
    %c0_i32 = arith.constant 0 : i32
    %c0_i32_0 = arith.constant 0 : i32
    return %arg0, %arg1, %c0_i32 : i32, i32, i32
  }
  func.func @transform_1(%arg0: i32, %arg1: i32) -> (i32, i32, i32) {
    %c0_i32 = arith.constant 0 : i32
    %c0_i32_0 = arith.constant 0 : i32
    return %arg0, %arg1, %c0_i32 : i32, i32, i32
  }
  func.func @transform_2(%arg0: i32, %arg1: i32) -> (i32, i32, i32) {
    %c0_i32 = arith.constant 0 : i32
    %c0_i32_0 = arith.constant 0 : i32
    %c0_i32_1 = arith.constant 0 : i32
    return %arg0, %c0_i32, %c0_i32_0 : i32, i32, i32
  }
  func.func @transform_3(%arg0: i32, %arg1: i32) -> (i32, i32, i32) {
    %c0_i32 = arith.constant 0 : i32
    %c0_i32_0 = arith.constant 0 : i32
    %c0_i32_1 = arith.constant 0 : i32
    return %arg0, %c0_i32, %c0_i32_0 : i32, i32, i32
  }
  func.func @transform_4(%arg0: i32, %arg1: i32) -> (i32, i32) {
    %c0_i32 = arith.constant 0 : i32
    %c0_i32_0 = arith.constant 0 : i32
    %c0_i32_1 = arith.constant 0 : i32
    return %c0_i32, %c0_i32_0 : i32, i32
  }
  func.func @transform_5(%arg0: i32, %arg1: i32) -> (i32, i32) {
    %c0_i32 = arith.constant 0 : i32
    %c0_i32_0 = arith.constant 0 : i32
    %c0_i32_1 = arith.constant 0 : i32
    return %c0_i32, %c0_i32_0 : i32, i32
  }
  func.func @transform_6(%arg0: i32, %arg1: i32) -> (i32, i32) {
    %c0_i32 = arith.constant 0 : i32
    %c0_i32_0 = arith.constant 0 : i32
    %c0_i32_1 = arith.constant 0 : i32
    return %c0_i32, %c0_i32_0 : i32, i32
  }
  func.func @transform_7(%arg0: i32, %arg1: i32) -> (i32, i32) {
    %c0_i32 = arith.constant 0 : i32
    %c0_i32_0 = arith.constant 0 : i32
    %c0_i32_1 = arith.constant 0 : i32
    return %c0_i32, %c0_i32_0 : i32, i32
  }
  func.func @transform_8(%arg0: i32, %arg1: i32) -> (i32, i32) {
    %c0_i32 = arith.constant 0 : i32
    %c0_i32_0 = arith.constant 0 : i32
    %c0_i32_1 = arith.constant 0 : i32
    return %c0_i32, %c0_i32_0 : i32, i32
  }
  func.func @transform_9(%arg0: i32, %arg1: i32) -> (i32, i32) {
    %c0_i32 = arith.constant 0 : i32
    %c0_i32_0 = arith.constant 0 : i32
    %c0_i32_1 = arith.constant 0 : i32
    return %c0_i32, %c0_i32_0 : i32, i32
  }
  func.func @transform_10(%arg0: i32, %arg1: i32) -> (i32, i32) {
    %c0_i32 = arith.constant 0 : i32
    %c0_i32_0 = arith.constant 0 : i32
    %c0_i32_1 = arith.constant 0 : i32
    return %c0_i32, %c0_i32_0 : i32, i32
  }
  func.func @transform_11(%arg0: i32, %arg1: i32) -> (i32, i32) {
    %c0_i32 = arith.constant 0 : i32
    %c0_i32_0 = arith.constant 0 : i32
    %c0_i32_1 = arith.constant 0 : i32
    return %c0_i32, %c0_i32_0 : i32, i32
  }
  func.func @transform_12(%arg0: i32, %arg1: i32) -> (i32, i32) {
    %c0_i32 = arith.constant 0 : i32
    %c0_i32_0 = arith.constant 0 : i32
    %c0_i32_1 = arith.constant 0 : i32
    return %c0_i32, %c0_i32_0 : i32, i32
  }
  func.func @transform_13(%arg0: i32, %arg1: i32) -> (i32, i32) {
    %c0_i32 = arith.constant 0 : i32
    %c0_i32_0 = arith.constant 0 : i32
    %c0_i32_1 = arith.constant 0 : i32
    return %c0_i32, %c0_i32_0 : i32, i32
  }
  func.func @transform_14(%arg0: i32, %arg1: i32) -> (i32, i32, i32) {
    %c0_i32 = arith.constant 0 : i32
    %c0_i32_0 = arith.constant 0 : i32
    return %arg0, %arg1, %c0_i32 : i32, i32, i32
  }
}

module attributes {stable_mosaic.version = 11 : i64} {
  func.func @_ffn_ln_kernel(%arg0: i32, %arg1: memref<16x64xf32, #tpu.memory_space<vmem>>, %arg2: memref<64x128xbf16, #tpu.memory_space<vmem>>, %arg3: memref<1x128xf32, #tpu.memory_space<vmem>>, %arg4: memref<128x64xbf16, #tpu.memory_space<vmem>>, %arg5: memref<1x64xf32, #tpu.memory_space<vmem>>, %arg6: memref<1x64xf32, #tpu.memory_space<vmem>>, %arg7: memref<1x64xf32, #tpu.memory_space<vmem>>, %arg8: memref<16x64xf32, #tpu.memory_space<vmem>>) attributes {dimension_semantics = [#tpu.dimension_semantics<parallel>], iteration_bounds = array<i64: 3>, scalar_prefetch = 0 : i64, scratch_operands = 0 : i64, tpu.core_type = #tpu.core_type<tc>, window_params = [{transform_indices = @transform_0, window_bounds = array<i64: 16, 64>}, {pipeline_mode = #tpu.pipeline_mode<synchronous>, transform_indices = @transform_1, window_bounds = array<i64: 64, 128>}, {pipeline_mode = #tpu.pipeline_mode<synchronous>, transform_indices = @transform_2, window_bounds = array<i64: 1, 128>}, {pipeline_mode = #tpu.pipeline_mode<synchronous>, transform_indices = @transform_3, window_bounds = array<i64: 128, 64>}, {pipeline_mode = #tpu.pipeline_mode<synchronous>, transform_indices = @transform_4, window_bounds = array<i64: 1, 64>}, {pipeline_mode = #tpu.pipeline_mode<synchronous>, transform_indices = @transform_5, window_bounds = array<i64: 1, 64>}, {pipeline_mode = #tpu.pipeline_mode<synchronous>, transform_indices = @transform_6, window_bounds = array<i64: 1, 64>}, {transform_indices = @transform_7, window_bounds = array<i64: 16, 64>}]} {
    %c0 = arith.constant 0 : index
    %c0_0 = arith.constant 0 : index
    %0 = vector.load %arg1[%c0, %c0_0] : memref<16x64xf32, #tpu.memory_space<vmem>>, vector<16x64xf32>
    %c0_1 = arith.constant 0 : index
    %c0_2 = arith.constant 0 : index
    %1 = vector.load %arg2[%c0_1, %c0_2] : memref<64x128xbf16, #tpu.memory_space<vmem>>, vector<64x128xbf16>
    %2 = arith.truncf %0 : vector<16x64xf32> to vector<16x64xbf16>
    %cst = arith.constant dense<0.000000e+00> : vector<16x128xf32>
    %3 = tpu.matmul %2, %1, %cst {dimension_numbers = #tpu.dot_dimension_numbers<[1], [0], [0], [1], [0, 0, 1, 1], [], []>} : vector<16x64xbf16>, vector<64x128xbf16>, vector<16x128xf32> -> vector<16x128xf32>
    %c0_3 = arith.constant 0 : index
    %c0_4 = arith.constant 0 : index
    %4 = vector.load %arg3[%c0_3, %c0_4] : memref<1x128xf32, #tpu.memory_space<vmem>>, vector<1x128xf32>
    %5 = vector.broadcast %4 : vector<1x128xf32> to vector<16x128xf32>
    %6 = arith.addf %3, %5 : vector<16x128xf32>
    %cst_5 = arith.constant 0.000000e+00 : f32
    %7 = vector.broadcast %cst_5 : f32 to vector<16x128xf32>
    %8 = arith.maximumf %6, %7 : vector<16x128xf32>
    %c0_6 = arith.constant 0 : index
    %c0_7 = arith.constant 0 : index
    %9 = vector.load %arg4[%c0_6, %c0_7] : memref<128x64xbf16, #tpu.memory_space<vmem>>, vector<128x64xbf16>
    %10 = arith.truncf %8 : vector<16x128xf32> to vector<16x128xbf16>
    %cst_8 = arith.constant dense<0.000000e+00> : vector<16x64xf32>
    %11 = tpu.matmul %10, %9, %cst_8 {dimension_numbers = #tpu.dot_dimension_numbers<[1], [0], [0], [1], [0, 0, 1, 1], [], []>} : vector<16x128xbf16>, vector<128x64xbf16>, vector<16x64xf32> -> vector<16x64xf32>
    %c0_9 = arith.constant 0 : index
    %c0_10 = arith.constant 0 : index
    %12 = vector.load %arg5[%c0_9, %c0_10] : memref<1x64xf32, #tpu.memory_space<vmem>>, vector<1x64xf32>
    %13 = vector.broadcast %12 : vector<1x64xf32> to vector<16x64xf32>
    %14 = arith.addf %11, %13 : vector<16x64xf32>
    %15 = arith.addf %0, %14 : vector<16x64xf32>
    %c0_11 = arith.constant 0 : index
    %c0_12 = arith.constant 0 : index
    %16 = vector.load %arg6[%c0_11, %c0_12] : memref<1x64xf32, #tpu.memory_space<vmem>>, vector<1x64xf32>
    %c0_13 = arith.constant 0 : index
    %c0_14 = arith.constant 0 : index
    %17 = vector.load %arg7[%c0_13, %c0_14] : memref<1x64xf32, #tpu.memory_space<vmem>>, vector<1x64xf32>
    %cst_15 = arith.constant dense<0.000000e+00> : vector<16xf32>
    %18 = vector.multi_reduction <add>, %15, %cst_15 [1] : vector<16x64xf32> to vector<16xf32>
    %19 = vector.shape_cast %18 : vector<16xf32> to vector<16x1xf32>
    %cst_16 = arith.constant 6.400000e+01 : f32
    %20 = vector.broadcast %cst_16 : f32 to vector<16x1xf32>
    %21 = arith.divf %19, %20 : vector<16x1xf32>
    %22 = vector.broadcast %21 : vector<16x1xf32> to vector<16x64xf32>
    %23 = arith.subf %15, %22 : vector<16x64xf32>
    %24 = arith.mulf %23, %23 : vector<16x64xf32>
    %cst_17 = arith.constant dense<0.000000e+00> : vector<16xf32>
    %25 = vector.multi_reduction <add>, %24, %cst_17 [1] : vector<16x64xf32> to vector<16xf32>
    %26 = vector.shape_cast %25 : vector<16xf32> to vector<16x1xf32>
    %cst_18 = arith.constant 6.400000e+01 : f32
    %27 = vector.broadcast %cst_18 : f32 to vector<16x1xf32>
    %28 = arith.divf %26, %27 : vector<16x1xf32>
    %29 = vector.broadcast %21 : vector<16x1xf32> to vector<16x64xf32>
    %30 = arith.subf %15, %29 : vector<16x64xf32>
    %cst_19 = arith.constant 9.99999974E-6 : f32
    %31 = vector.broadcast %cst_19 : f32 to vector<16x1xf32>
    %32 = arith.addf %28, %31 : vector<16x1xf32>
    %33 = math.rsqrt %32 : vector<16x1xf32>
    %34 = vector.broadcast %33 : vector<16x1xf32> to vector<16x64xf32>
    %35 = arith.mulf %30, %34 : vector<16x64xf32>
    %36 = vector.broadcast %16 : vector<1x64xf32> to vector<16x64xf32>
    %37 = arith.mulf %35, %36 : vector<16x64xf32>
    %38 = vector.broadcast %17 : vector<1x64xf32> to vector<16x64xf32>
    %39 = arith.addf %37, %38 : vector<16x64xf32>
    %c0_20 = arith.constant 0 : index
    %c0_21 = arith.constant 0 : index
    %40 = vector.load %arg8[%c0_20, %c0_21] : memref<16x64xf32, #tpu.memory_space<vmem>>, vector<16x64xf32>
    tpu.vector_store %arg8[%c0_20, %c0_21], %39 {strides = array<i32>} : memref<16x64xf32, #tpu.memory_space<vmem>>, vector<16x64xf32>,
    return
  }
  func.func @transform_0(%arg0: i32) -> (i32, i32) {
    %c0_i32 = arith.constant 0 : i32
    %c0_i32_0 = arith.constant 0 : i32
    return %arg0, %c0_i32 : i32, i32
  }
  func.func @transform_1(%arg0: i32) -> (i32, i32) {
    %c0_i32 = arith.constant 0 : i32
    %c0_i32_0 = arith.constant 0 : i32
    %c0_i32_1 = arith.constant 0 : i32
    return %c0_i32, %c0_i32_0 : i32, i32
  }
  func.func @transform_2(%arg0: i32) -> (i32, i32) {
    %c0_i32 = arith.constant 0 : i32
    %c0_i32_0 = arith.constant 0 : i32
    %c0_i32_1 = arith.constant 0 : i32
    return %c0_i32, %c0_i32_0 : i32, i32
  }
  func.func @transform_3(%arg0: i32) -> (i32, i32) {
    %c0_i32 = arith.constant 0 : i32
    %c0_i32_0 = arith.constant 0 : i32
    %c0_i32_1 = arith.constant 0 : i32
    return %c0_i32, %c0_i32_0 : i32, i32
  }
  func.func @transform_4(%arg0: i32) -> (i32, i32) {
    %c0_i32 = arith.constant 0 : i32
    %c0_i32_0 = arith.constant 0 : i32
    %c0_i32_1 = arith.constant 0 : i32
    return %c0_i32, %c0_i32_0 : i32, i32
  }
  func.func @transform_5(%arg0: i32) -> (i32, i32) {
    %c0_i32 = arith.constant 0 : i32
    %c0_i32_0 = arith.constant 0 : i32
    %c0_i32_1 = arith.constant 0 : i32
    return %c0_i32, %c0_i32_0 : i32, i32
  }
  func.func @transform_6(%arg0: i32) -> (i32, i32) {
    %c0_i32 = arith.constant 0 : i32
    %c0_i32_0 = arith.constant 0 : i32
    %c0_i32_1 = arith.constant 0 : i32
    return %c0_i32, %c0_i32_0 : i32, i32
  }
  func.func @transform_7(%arg0: i32) -> (i32, i32) {
    %c0_i32 = arith.constant 0 : i32
    %c0_i32_0 = arith.constant 0 : i32
    return %arg0, %c0_i32 : i32, i32
  }
}

module attributes {stable_mosaic.version = 11 : i64} {
  func.func @_pe_self_attn_kernel(%arg0: i32, %arg1: i32, %arg2: memref<1x8x64xf32, #tpu.memory_space<vmem>>, %arg3: memref<1x8x64xf32, #tpu.memory_space<vmem>>, %arg4: memref<1x16x64xf32, #tpu.memory_space<vmem>>, %arg5: memref<1x16x64xf32, #tpu.memory_space<vmem>>, %arg6: memref<64x64xbf16, #tpu.memory_space<vmem>>, %arg7: memref<1x64xf32, #tpu.memory_space<vmem>>, %arg8: memref<64x128xbf16, #tpu.memory_space<vmem>>, %arg9: memref<1x128xf32, #tpu.memory_space<vmem>>, %arg10: memref<64x64xbf16, #tpu.memory_space<vmem>>, %arg11: memref<1x64xf32, #tpu.memory_space<vmem>>, %arg12: memref<64x64xbf16, #tpu.memory_space<vmem>>, %arg13: memref<1x64xf32, #tpu.memory_space<vmem>>, %arg14: memref<1x64xf32, #tpu.memory_space<vmem>>, %arg15: memref<1x64xf32, #tpu.memory_space<vmem>>, %arg16: memref<1x8x64xf32, #tpu.memory_space<vmem>>) attributes {dimension_semantics = [#tpu.dimension_semantics<parallel>, #tpu.dimension_semantics<parallel>], iteration_bounds = array<i64: 2, 2>, scalar_prefetch = 0 : i64, scratch_operands = 0 : i64, tpu.core_type = #tpu.core_type<tc>, window_params = [{transform_indices = @transform_0, window_bounds = array<i64: 1, 8, 64>}, {transform_indices = @transform_1, window_bounds = array<i64: 1, 8, 64>}, {transform_indices = @transform_2, window_bounds = array<i64: 1, 16, 64>}, {transform_indices = @transform_3, window_bounds = array<i64: 1, 16, 64>}, {pipeline_mode = #tpu.pipeline_mode<synchronous>, transform_indices = @transform_4, window_bounds = array<i64: 64, 64>}, {pipeline_mode = #tpu.pipeline_mode<synchronous>, transform_indices = @transform_5, window_bounds = array<i64: 1, 64>}, {pipeline_mode = #tpu.pipeline_mode<synchronous>, transform_indices = @transform_6, window_bounds = array<i64: 64, 128>}, {pipeline_mode = #tpu.pipeline_mode<synchronous>, transform_indices = @transform_7, window_bounds = array<i64: 1, 128>}, {pipeline_mode = #tpu.pipeline_mode<synchronous>, transform_indices = @transform_8, window_bounds = array<i64: 64, 64>}, {pipeline_mode = #tpu.pipeline_mode<synchronous>, transform_indices = @transform_9, window_bounds = array<i64: 1, 64>}, {pipeline_mode = #tpu.pipeline_mode<synchronous>, transform_indices = @transform_10, window_bounds = array<i64: 64, 64>}, {pipeline_mode = #tpu.pipeline_mode<synchronous>, transform_indices = @transform_11, window_bounds = array<i64: 1, 64>}, {pipeline_mode = #tpu.pipeline_mode<synchronous>, transform_indices = @transform_12, window_bounds = array<i64: 1, 64>}, {pipeline_mode = #tpu.pipeline_mode<synchronous>, transform_indices = @transform_13, window_bounds = array<i64: 1, 64>}, {transform_indices = @transform_14, window_bounds = array<i64: 1, 8, 64>}]} {
    %c0 = arith.constant 0 : index
    %c0_0 = arith.constant 0 : index
    %c0_1 = arith.constant 0 : index
    %0 = vector.load %arg2[%c0, %c0_0, %c0_1] : memref<1x8x64xf32, #tpu.memory_space<vmem>>, vector<1x8x64xf32>
    %1 = vector.shape_cast %0 : vector<1x8x64xf32> to vector<8x64xf32>
    %c0_2 = arith.constant 0 : index
    %c0_3 = arith.constant 0 : index
    %c0_4 = arith.constant 0 : index
    %2 = vector.load %arg3[%c0_2, %c0_3, %c0_4] : memref<1x8x64xf32, #tpu.memory_space<vmem>>, vector<1x8x64xf32>
    %3 = vector.shape_cast %2 : vector<1x8x64xf32> to vector<8x64xf32>
    %c0_5 = arith.constant 0 : index
    %c0_6 = arith.constant 0 : index
    %c0_7 = arith.constant 0 : index
    %4 = vector.load %arg4[%c0_5, %c0_6, %c0_7] : memref<1x16x64xf32, #tpu.memory_space<vmem>>, vector<1x16x64xf32>
    %5 = vector.shape_cast %4 : vector<1x16x64xf32> to vector<16x64xf32>
    %c0_8 = arith.constant 0 : index
    %c0_9 = arith.constant 0 : index
    %c0_10 = arith.constant 0 : index
    %6 = vector.load %arg5[%c0_8, %c0_9, %c0_10] : memref<1x16x64xf32, #tpu.memory_space<vmem>>, vector<1x16x64xf32>
    %7 = vector.shape_cast %6 : vector<1x16x64xf32> to vector<16x64xf32>
    %c0_11 = arith.constant 0 : index
    %c0_12 = arith.constant 0 : index
    %8 = vector.load %arg6[%c0_11, %c0_12] : memref<64x64xbf16, #tpu.memory_space<vmem>>, vector<64x64xbf16>
    %9 = arith.truncf %1 : vector<8x64xf32> to vector<8x64xbf16>
    %cst = arith.constant dense<0.000000e+00> : vector<8x64xf32>
    %10 = tpu.matmul %9, %8, %cst {dimension_numbers = #tpu.dot_dimension_numbers<[1], [0], [0], [1], [0, 0, 1, 1], [], []>} : vector<8x64xbf16>, vector<64x64xbf16>, vector<8x64xf32> -> vector<8x64xf32>
    %c0_13 = arith.constant 0 : index
    %c0_14 = arith.constant 0 : index
    %11 = vector.load %arg7[%c0_13, %c0_14] : memref<1x64xf32, #tpu.memory_space<vmem>>, vector<1x64xf32>
    %12 = vector.broadcast %11 : vector<1x64xf32> to vector<8x64xf32>
    %13 = arith.addf %10, %12 : vector<8x64xf32>
    %c0_15 = arith.constant 0 : index
    %c0_16 = arith.constant 0 : index
    %14 = vector.load %arg10[%c0_15, %c0_16] : memref<64x64xbf16, #tpu.memory_space<vmem>>, vector<64x64xbf16>
    %15 = arith.truncf %3 : vector<8x64xf32> to vector<8x64xbf16>
    %cst_17 = arith.constant dense<0.000000e+00> : vector<8x64xf32>
    %16 = tpu.matmul %15, %14, %cst_17 {dimension_numbers = #tpu.dot_dimension_numbers<[1], [0], [0], [1], [0, 0, 1, 1], [], []>} : vector<8x64xbf16>, vector<64x64xbf16>, vector<8x64xf32> -> vector<8x64xf32>
    %17 = arith.addf %13, %16 : vector<8x64xf32>
    %c0_18 = arith.constant 0 : index
    %c0_19 = arith.constant 0 : index
    %18 = vector.load %arg11[%c0_18, %c0_19] : memref<1x64xf32, #tpu.memory_space<vmem>>, vector<1x64xf32>
    %19 = vector.broadcast %18 : vector<1x64xf32> to vector<8x64xf32>
    %20 = arith.addf %17, %19 : vector<8x64xf32>
    %c0_20 = arith.constant 0 : index
    %c0_21 = arith.constant 0 : index
    %21 = vector.load %arg8[%c0_20, %c0_21] : memref<64x128xbf16, #tpu.memory_space<vmem>>, vector<64x128xbf16>
    %22 = arith.truncf %5 : vector<16x64xf32> to vector<16x64xbf16>
    %cst_22 = arith.constant dense<0.000000e+00> : vector<16x128xf32>
    %23 = tpu.matmul %22, %21, %cst_22 {dimension_numbers = #tpu.dot_dimension_numbers<[1], [0], [0], [1], [0, 0, 1, 1], [], []>} : vector<16x64xbf16>, vector<64x128xbf16>, vector<16x128xf32> -> vector<16x128xf32>
    %c0_23 = arith.constant 0 : index
    %c0_24 = arith.constant 0 : index
    %24 = vector.load %arg9[%c0_23, %c0_24] : memref<1x128xf32, #tpu.memory_space<vmem>>, vector<1x128xf32>
    %25 = vector.broadcast %24 : vector<1x128xf32> to vector<16x128xf32>
    %26 = arith.addf %23, %25 : vector<16x128xf32>
    %c0_25 = arith.constant 0 : index
    %c0_26 = arith.constant 0 : index
    %27 = vector.load %arg10[%c0_25, %c0_26] : memref<64x64xbf16, #tpu.memory_space<vmem>>, vector<64x64xbf16>
    %28 = arith.truncf %7 : vector<16x64xf32> to vector<16x64xbf16>
    %cst_27 = arith.constant dense<0.000000e+00> : vector<16x64xf32>
    %29 = tpu.matmul %28, %27, %cst_27 {dimension_numbers = #tpu.dot_dimension_numbers<[1], [0], [0], [1], [0, 0, 1, 1], [], []>} : vector<16x64xbf16>, vector<64x64xbf16>, vector<16x64xf32> -> vector<16x64xf32>
    %c0_28 = arith.constant 0 : index
    %c0_29 = arith.constant 0 : index
    %30 = vector.load %arg11[%c0_28, %c0_29] : memref<1x64xf32, #tpu.memory_space<vmem>>, vector<1x64xf32>
    %31 = vector.broadcast %30 : vector<1x64xf32> to vector<16x64xf32>
    %32 = arith.addf %29, %31 : vector<16x64xf32>
    %33 = vector.extract_strided_slice %26 {offsets = [0, 0], sizes = [16, 64], strides = [1, 1]} : vector<16x128xf32> to vector<16x64xf32>
    %34 = arith.addf %33, %32 : vector<16x64xf32>
    %35 = vector.extract_strided_slice %26 {offsets = [0, 64], sizes = [16, 64], strides = [1, 1]} : vector<16x128xf32> to vector<16x64xf32>
    %cst_30 = arith.constant 2.500000e-01 : f32
    %36 = vector.broadcast %cst_30 : f32 to vector<8x64xf32>
    %37 = arith.mulf %20, %36 : vector<8x64xf32>
    %38 = arith.truncf %37 : vector<8x64xf32> to vector<8x64xbf16>
    %39 = vector.shape_cast %38 : vector<8x64xbf16> to vector<8x4x16xbf16>
    %40 = arith.truncf %34 : vector<16x64xf32> to vector<16x64xbf16>
    %41 = vector.shape_cast %40 : vector<16x64xbf16> to vector<16x4x16xbf16>
    %42 = arith.truncf %35 : vector<16x64xf32> to vector<16x64xbf16>
    %43 = vector.shape_cast %42 : vector<16x64xbf16> to vector<16x4x16xbf16>
    "tpu.trace_start"() <{level = 10 : i32, message = "qhc,khc->hqk"}> : () -> ()
    %cst_31 = arith.constant dense<0.000000e+00> : vector<4x8x16xf32>
    %44 = tpu.matmul %39, %41, %cst_31 {dimension_numbers = #tpu.dot_dimension_numbers<[2], [2], [0], [0], [0, 1, 0, 0, 1, 0], [1], [1]>} : vector<8x4x16xbf16>, vector<16x4x16xbf16>, vector<4x8x16xf32> -> vector<4x8x16xf32>
    "tpu.trace_stop"() : () -> ()
    %cst_32 = arith.constant dense<0xFF800000> : vector<4x8xf32>
    %45 = vector.multi_reduction <maximumf>, %44, %cst_32 [2] : vector<4x8x16xf32> to vector<4x8xf32>
    %46 = vector.shape_cast %45 : vector<4x8xf32> to vector<4x8x1xf32>
    %47 = vector.broadcast %46 : vector<4x8x1xf32> to vector<4x8x16xf32>
    %48 = arith.subf %44, %47 : vector<4x8x16xf32>
    %49 = math.exp %48 : vector<4x8x16xf32>
    %cst_33 = arith.constant dense<0.000000e+00> : vector<4x8xf32>
    %50 = vector.multi_reduction <add>, %49, %cst_33 [2] : vector<4x8x16xf32> to vector<4x8xf32>
    %51 = vector.shape_cast %50 : vector<4x8xf32> to vector<4x8x1xf32>
    %52 = vector.broadcast %51 : vector<4x8x1xf32> to vector<4x8x16xf32>
    %53 = arith.divf %49, %52 : vector<4x8x16xf32>
    %54 = arith.truncf %53 : vector<4x8x16xf32> to vector<4x8x16xbf16>
    "tpu.trace_start"() <{level = 10 : i32, message = "hqk,khc->qhc"}> : () -> ()
    %cst_34 = arith.constant dense<0.000000e+00> : vector<4x16x8xf32>
    %55 = tpu.matmul %43, %54, %cst_34 {dimension_numbers = #tpu.dot_dimension_numbers<[0], [2], [2], [1], [0, 1, 0, 2, 1, 1], [1], [0]>} : vector<16x4x16xbf16>, vector<4x8x16xbf16>, vector<4x16x8xf32> -> vector<4x16x8xf32>
    %56 = tpu.transpose %55, [2, 0, 1] : vector<4x16x8xf32> -> vector<8x4x16xf32>
    "tpu.trace_stop"() : () -> ()
    %57 = vector.shape_cast %56 : vector<8x4x16xf32> to vector<8x64xf32>
    %c0_35 = arith.constant 0 : index
    %c0_36 = arith.constant 0 : index
    %58 = vector.load %arg12[%c0_35, %c0_36] : memref<64x64xbf16, #tpu.memory_space<vmem>>, vector<64x64xbf16>
    %59 = arith.truncf %57 : vector<8x64xf32> to vector<8x64xbf16>
    %cst_37 = arith.constant dense<0.000000e+00> : vector<8x64xf32>
    %60 = tpu.matmul %59, %58, %cst_37 {dimension_numbers = #tpu.dot_dimension_numbers<[1], [0], [0], [1], [0, 0, 1, 1], [], []>} : vector<8x64xbf16>, vector<64x64xbf16>, vector<8x64xf32> -> vector<8x64xf32>
    %c0_38 = arith.constant 0 : index
    %c0_39 = arith.constant 0 : index
    %61 = vector.load %arg13[%c0_38, %c0_39] : memref<1x64xf32, #tpu.memory_space<vmem>>, vector<1x64xf32>
    %62 = vector.broadcast %61 : vector<1x64xf32> to vector<8x64xf32>
    %63 = arith.addf %60, %62 : vector<8x64xf32>
    %64 = arith.addf %63, %1 : vector<8x64xf32>
    %c0_40 = arith.constant 0 : index
    %c0_41 = arith.constant 0 : index
    %65 = vector.load %arg14[%c0_40, %c0_41] : memref<1x64xf32, #tpu.memory_space<vmem>>, vector<1x64xf32>
    %c0_42 = arith.constant 0 : index
    %c0_43 = arith.constant 0 : index
    %66 = vector.load %arg15[%c0_42, %c0_43] : memref<1x64xf32, #tpu.memory_space<vmem>>, vector<1x64xf32>
    %cst_44 = arith.constant dense<0.000000e+00> : vector<8xf32>
    %67 = vector.multi_reduction <add>, %64, %cst_44 [1] : vector<8x64xf32> to vector<8xf32>
    %68 = vector.shape_cast %67 : vector<8xf32> to vector<8x1xf32>
    %cst_45 = arith.constant 6.400000e+01 : f32
    %69 = vector.broadcast %cst_45 : f32 to vector<8x1xf32>
    %70 = arith.divf %68, %69 : vector<8x1xf32>
    %71 = vector.broadcast %70 : vector<8x1xf32> to vector<8x64xf32>
    %72 = arith.subf %64, %71 : vector<8x64xf32>
    %73 = arith.mulf %72, %72 : vector<8x64xf32>
    %cst_46 = arith.constant dense<0.000000e+00> : vector<8xf32>
    %74 = vector.multi_reduction <add>, %73, %cst_46 [1] : vector<8x64xf32> to vector<8xf32>
    %75 = vector.shape_cast %74 : vector<8xf32> to vector<8x1xf32>
    %cst_47 = arith.constant 6.400000e+01 : f32
    %76 = vector.broadcast %cst_47 : f32 to vector<8x1xf32>
    %77 = arith.divf %75, %76 : vector<8x1xf32>
    %78 = vector.broadcast %70 : vector<8x1xf32> to vector<8x64xf32>
    %79 = arith.subf %64, %78 : vector<8x64xf32>
    %cst_48 = arith.constant 9.99999974E-6 : f32
    %80 = vector.broadcast %cst_48 : f32 to vector<8x1xf32>
    %81 = arith.addf %77, %80 : vector<8x1xf32>
    %82 = math.rsqrt %81 : vector<8x1xf32>
    %83 = vector.broadcast %82 : vector<8x1xf32> to vector<8x64xf32>
    %84 = arith.mulf %79, %83 : vector<8x64xf32>
    %85 = vector.broadcast %65 : vector<1x64xf32> to vector<8x64xf32>
    %86 = arith.mulf %84, %85 : vector<8x64xf32>
    %87 = vector.broadcast %66 : vector<1x64xf32> to vector<8x64xf32>
    %88 = arith.addf %86, %87 : vector<8x64xf32>
    %c0_49 = arith.constant 0 : index
    %c0_50 = arith.constant 0 : index
    %c0_51 = arith.constant 0 : index
    %89 = vector.load %arg16[%c0_49, %c0_50, %c0_51] : memref<1x8x64xf32, #tpu.memory_space<vmem>>, vector<1x8x64xf32>
    %90 = vector.shape_cast %89 : vector<1x8x64xf32> to vector<8x64xf32>
    %91 = vector.shape_cast %88 : vector<8x64xf32> to vector<1x8x64xf32>
    tpu.vector_store %arg16[%c0_49, %c0_50, %c0_51], %91 {strides = array<i32>} : memref<1x8x64xf32, #tpu.memory_space<vmem>>, vector<1x8x64xf32>,
    return
  }
  func.func @transform_0(%arg0: i32, %arg1: i32) -> (i32, i32, i32) {
    %c0_i32 = arith.constant 0 : i32
    %c0_i32_0 = arith.constant 0 : i32
    return %arg0, %arg1, %c0_i32 : i32, i32, i32
  }
  func.func @transform_1(%arg0: i32, %arg1: i32) -> (i32, i32, i32) {
    %c0_i32 = arith.constant 0 : i32
    %c0_i32_0 = arith.constant 0 : i32
    return %arg0, %arg1, %c0_i32 : i32, i32, i32
  }
  func.func @transform_2(%arg0: i32, %arg1: i32) -> (i32, i32, i32) {
    %c0_i32 = arith.constant 0 : i32
    %c0_i32_0 = arith.constant 0 : i32
    %c0_i32_1 = arith.constant 0 : i32
    return %arg0, %c0_i32, %c0_i32_0 : i32, i32, i32
  }
  func.func @transform_3(%arg0: i32, %arg1: i32) -> (i32, i32, i32) {
    %c0_i32 = arith.constant 0 : i32
    %c0_i32_0 = arith.constant 0 : i32
    %c0_i32_1 = arith.constant 0 : i32
    return %arg0, %c0_i32, %c0_i32_0 : i32, i32, i32
  }
  func.func @transform_4(%arg0: i32, %arg1: i32) -> (i32, i32) {
    %c0_i32 = arith.constant 0 : i32
    %c0_i32_0 = arith.constant 0 : i32
    %c0_i32_1 = arith.constant 0 : i32
    return %c0_i32, %c0_i32_0 : i32, i32
  }
  func.func @transform_5(%arg0: i32, %arg1: i32) -> (i32, i32) {
    %c0_i32 = arith.constant 0 : i32
    %c0_i32_0 = arith.constant 0 : i32
    %c0_i32_1 = arith.constant 0 : i32
    return %c0_i32, %c0_i32_0 : i32, i32
  }
  func.func @transform_6(%arg0: i32, %arg1: i32) -> (i32, i32) {
    %c0_i32 = arith.constant 0 : i32
    %c0_i32_0 = arith.constant 0 : i32
    %c0_i32_1 = arith.constant 0 : i32
    return %c0_i32, %c0_i32_0 : i32, i32
  }
  func.func @transform_7(%arg0: i32, %arg1: i32) -> (i32, i32) {
    %c0_i32 = arith.constant 0 : i32
    %c0_i32_0 = arith.constant 0 : i32
    %c0_i32_1 = arith.constant 0 : i32
    return %c0_i32, %c0_i32_0 : i32, i32
  }
  func.func @transform_8(%arg0: i32, %arg1: i32) -> (i32, i32) {
    %c0_i32 = arith.constant 0 : i32
    %c0_i32_0 = arith.constant 0 : i32
    %c0_i32_1 = arith.constant 0 : i32
    return %c0_i32, %c0_i32_0 : i32, i32
  }
  func.func @transform_9(%arg0: i32, %arg1: i32) -> (i32, i32) {
    %c0_i32 = arith.constant 0 : i32
    %c0_i32_0 = arith.constant 0 : i32
    %c0_i32_1 = arith.constant 0 : i32
    return %c0_i32, %c0_i32_0 : i32, i32
  }
  func.func @transform_10(%arg0: i32, %arg1: i32) -> (i32, i32) {
    %c0_i32 = arith.constant 0 : i32
    %c0_i32_0 = arith.constant 0 : i32
    %c0_i32_1 = arith.constant 0 : i32
    return %c0_i32, %c0_i32_0 : i32, i32
  }
  func.func @transform_11(%arg0: i32, %arg1: i32) -> (i32, i32) {
    %c0_i32 = arith.constant 0 : i32
    %c0_i32_0 = arith.constant 0 : i32
    %c0_i32_1 = arith.constant 0 : i32
    return %c0_i32, %c0_i32_0 : i32, i32
  }
  func.func @transform_12(%arg0: i32, %arg1: i32) -> (i32, i32) {
    %c0_i32 = arith.constant 0 : i32
    %c0_i32_0 = arith.constant 0 : i32
    %c0_i32_1 = arith.constant 0 : i32
    return %c0_i32, %c0_i32_0 : i32, i32
  }
  func.func @transform_13(%arg0: i32, %arg1: i32) -> (i32, i32) {
    %c0_i32 = arith.constant 0 : i32
    %c0_i32_0 = arith.constant 0 : i32
    %c0_i32_1 = arith.constant 0 : i32
    return %c0_i32, %c0_i32_0 : i32, i32
  }
  func.func @transform_14(%arg0: i32, %arg1: i32) -> (i32, i32, i32) {
    %c0_i32 = arith.constant 0 : i32
    %c0_i32_0 = arith.constant 0 : i32
    return %arg0, %arg1, %c0_i32 : i32, i32, i32
  }
}

module attributes {stable_mosaic.version = 11 : i64} {
  func.func @_ffn_ln_kernel(%arg0: i32, %arg1: memref<16x64xf32, #tpu.memory_space<vmem>>, %arg2: memref<64x128xbf16, #tpu.memory_space<vmem>>, %arg3: memref<1x128xf32, #tpu.memory_space<vmem>>, %arg4: memref<128x64xbf16, #tpu.memory_space<vmem>>, %arg5: memref<1x64xf32, #tpu.memory_space<vmem>>, %arg6: memref<1x64xf32, #tpu.memory_space<vmem>>, %arg7: memref<1x64xf32, #tpu.memory_space<vmem>>, %arg8: memref<16x64xf32, #tpu.memory_space<vmem>>) attributes {dimension_semantics = [#tpu.dimension_semantics<parallel>], iteration_bounds = array<i64: 2>, scalar_prefetch = 0 : i64, scratch_operands = 0 : i64, tpu.core_type = #tpu.core_type<tc>, window_params = [{transform_indices = @transform_0, window_bounds = array<i64: 16, 64>}, {pipeline_mode = #tpu.pipeline_mode<synchronous>, transform_indices = @transform_1, window_bounds = array<i64: 64, 128>}, {pipeline_mode = #tpu.pipeline_mode<synchronous>, transform_indices = @transform_2, window_bounds = array<i64: 1, 128>}, {pipeline_mode = #tpu.pipeline_mode<synchronous>, transform_indices = @transform_3, window_bounds = array<i64: 128, 64>}, {pipeline_mode = #tpu.pipeline_mode<synchronous>, transform_indices = @transform_4, window_bounds = array<i64: 1, 64>}, {pipeline_mode = #tpu.pipeline_mode<synchronous>, transform_indices = @transform_5, window_bounds = array<i64: 1, 64>}, {pipeline_mode = #tpu.pipeline_mode<synchronous>, transform_indices = @transform_6, window_bounds = array<i64: 1, 64>}, {transform_indices = @transform_7, window_bounds = array<i64: 16, 64>}]} {
    %c0 = arith.constant 0 : index
    %c0_0 = arith.constant 0 : index
    %0 = vector.load %arg1[%c0, %c0_0] : memref<16x64xf32, #tpu.memory_space<vmem>>, vector<16x64xf32>
    %c0_1 = arith.constant 0 : index
    %c0_2 = arith.constant 0 : index
    %1 = vector.load %arg2[%c0_1, %c0_2] : memref<64x128xbf16, #tpu.memory_space<vmem>>, vector<64x128xbf16>
    %2 = arith.truncf %0 : vector<16x64xf32> to vector<16x64xbf16>
    %cst = arith.constant dense<0.000000e+00> : vector<16x128xf32>
    %3 = tpu.matmul %2, %1, %cst {dimension_numbers = #tpu.dot_dimension_numbers<[1], [0], [0], [1], [0, 0, 1, 1], [], []>} : vector<16x64xbf16>, vector<64x128xbf16>, vector<16x128xf32> -> vector<16x128xf32>
    %c0_3 = arith.constant 0 : index
    %c0_4 = arith.constant 0 : index
    %4 = vector.load %arg3[%c0_3, %c0_4] : memref<1x128xf32, #tpu.memory_space<vmem>>, vector<1x128xf32>
    %5 = vector.broadcast %4 : vector<1x128xf32> to vector<16x128xf32>
    %6 = arith.addf %3, %5 : vector<16x128xf32>
    %cst_5 = arith.constant 0.000000e+00 : f32
    %7 = vector.broadcast %cst_5 : f32 to vector<16x128xf32>
    %8 = arith.maximumf %6, %7 : vector<16x128xf32>
    %c0_6 = arith.constant 0 : index
    %c0_7 = arith.constant 0 : index
    %9 = vector.load %arg4[%c0_6, %c0_7] : memref<128x64xbf16, #tpu.memory_space<vmem>>, vector<128x64xbf16>
    %10 = arith.truncf %8 : vector<16x128xf32> to vector<16x128xbf16>
    %cst_8 = arith.constant dense<0.000000e+00> : vector<16x64xf32>
    %11 = tpu.matmul %10, %9, %cst_8 {dimension_numbers = #tpu.dot_dimension_numbers<[1], [0], [0], [1], [0, 0, 1, 1], [], []>} : vector<16x128xbf16>, vector<128x64xbf16>, vector<16x64xf32> -> vector<16x64xf32>
    %c0_9 = arith.constant 0 : index
    %c0_10 = arith.constant 0 : index
    %12 = vector.load %arg5[%c0_9, %c0_10] : memref<1x64xf32, #tpu.memory_space<vmem>>, vector<1x64xf32>
    %13 = vector.broadcast %12 : vector<1x64xf32> to vector<16x64xf32>
    %14 = arith.addf %11, %13 : vector<16x64xf32>
    %15 = arith.addf %0, %14 : vector<16x64xf32>
    %c0_11 = arith.constant 0 : index
    %c0_12 = arith.constant 0 : index
    %16 = vector.load %arg6[%c0_11, %c0_12] : memref<1x64xf32, #tpu.memory_space<vmem>>, vector<1x64xf32>
    %c0_13 = arith.constant 0 : index
    %c0_14 = arith.constant 0 : index
    %17 = vector.load %arg7[%c0_13, %c0_14] : memref<1x64xf32, #tpu.memory_space<vmem>>, vector<1x64xf32>
    %cst_15 = arith.constant dense<0.000000e+00> : vector<16xf32>
    %18 = vector.multi_reduction <add>, %15, %cst_15 [1] : vector<16x64xf32> to vector<16xf32>
    %19 = vector.shape_cast %18 : vector<16xf32> to vector<16x1xf32>
    %cst_16 = arith.constant 6.400000e+01 : f32
    %20 = vector.broadcast %cst_16 : f32 to vector<16x1xf32>
    %21 = arith.divf %19, %20 : vector<16x1xf32>
    %22 = vector.broadcast %21 : vector<16x1xf32> to vector<16x64xf32>
    %23 = arith.subf %15, %22 : vector<16x64xf32>
    %24 = arith.mulf %23, %23 : vector<16x64xf32>
    %cst_17 = arith.constant dense<0.000000e+00> : vector<16xf32>
    %25 = vector.multi_reduction <add>, %24, %cst_17 [1] : vector<16x64xf32> to vector<16xf32>
    %26 = vector.shape_cast %25 : vector<16xf32> to vector<16x1xf32>
    %cst_18 = arith.constant 6.400000e+01 : f32
    %27 = vector.broadcast %cst_18 : f32 to vector<16x1xf32>
    %28 = arith.divf %26, %27 : vector<16x1xf32>
    %29 = vector.broadcast %21 : vector<16x1xf32> to vector<16x64xf32>
    %30 = arith.subf %15, %29 : vector<16x64xf32>
    %cst_19 = arith.constant 9.99999974E-6 : f32
    %31 = vector.broadcast %cst_19 : f32 to vector<16x1xf32>
    %32 = arith.addf %28, %31 : vector<16x1xf32>
    %33 = math.rsqrt %32 : vector<16x1xf32>
    %34 = vector.broadcast %33 : vector<16x1xf32> to vector<16x64xf32>
    %35 = arith.mulf %30, %34 : vector<16x64xf32>
    %36 = vector.broadcast %16 : vector<1x64xf32> to vector<16x64xf32>
    %37 = arith.mulf %35, %36 : vector<16x64xf32>
    %38 = vector.broadcast %17 : vector<1x64xf32> to vector<16x64xf32>
    %39 = arith.addf %37, %38 : vector<16x64xf32>
    %c0_20 = arith.constant 0 : index
    %c0_21 = arith.constant 0 : index
    %40 = vector.load %arg8[%c0_20, %c0_21] : memref<16x64xf32, #tpu.memory_space<vmem>>, vector<16x64xf32>
    tpu.vector_store %arg8[%c0_20, %c0_21], %39 {strides = array<i32>} : memref<16x64xf32, #tpu.memory_space<vmem>>, vector<16x64xf32>,
    return
  }
  func.func @transform_0(%arg0: i32) -> (i32, i32) {
    %c0_i32 = arith.constant 0 : i32
    %c0_i32_0 = arith.constant 0 : i32
    return %arg0, %c0_i32 : i32, i32
  }
  func.func @transform_1(%arg0: i32) -> (i32, i32) {
    %c0_i32 = arith.constant 0 : i32
    %c0_i32_0 = arith.constant 0 : i32
    %c0_i32_1 = arith.constant 0 : i32
    return %c0_i32, %c0_i32_0 : i32, i32
  }
  func.func @transform_2(%arg0: i32) -> (i32, i32) {
    %c0_i32 = arith.constant 0 : i32
    %c0_i32_0 = arith.constant 0 : i32
    %c0_i32_1 = arith.constant 0 : i32
    return %c0_i32, %c0_i32_0 : i32, i32
  }
  func.func @transform_3(%arg0: i32) -> (i32, i32) {
    %c0_i32 = arith.constant 0 : i32
    %c0_i32_0 = arith.constant 0 : i32
    %c0_i32_1 = arith.constant 0 : i32
    return %c0_i32, %c0_i32_0 : i32, i32
  }
  func.func @transform_4(%arg0: i32) -> (i32, i32) {
    %c0_i32 = arith.constant 0 : i32
    %c0_i32_0 = arith.constant 0 : i32
    %c0_i32_1 = arith.constant 0 : i32
    return %c0_i32, %c0_i32_0 : i32, i32
  }
  func.func @transform_5(%arg0: i32) -> (i32, i32) {
    %c0_i32 = arith.constant 0 : i32
    %c0_i32_0 = arith.constant 0 : i32
    %c0_i32_1 = arith.constant 0 : i32
    return %c0_i32, %c0_i32_0 : i32, i32
  }
  func.func @transform_6(%arg0: i32) -> (i32, i32) {
    %c0_i32 = arith.constant 0 : i32
    %c0_i32_0 = arith.constant 0 : i32
    %c0_i32_1 = arith.constant 0 : i32
    return %c0_i32, %c0_i32_0 : i32, i32
  }
  func.func @transform_7(%arg0: i32) -> (i32, i32) {
    %c0_i32 = arith.constant 0 : i32
    %c0_i32_0 = arith.constant 0 : i32
    return %arg0, %c0_i32 : i32, i32
  }
}

module attributes {stable_mosaic.version = 11 : i64} {
  func.func @_cross_attn_kernel(%arg0: i32, %arg1: i32, %arg2: memref<1x8x64xf32, #tpu.memory_space<vmem>>, %arg3: memref<1x16x64xf32, #tpu.memory_space<vmem>>, %arg4: memref<64x64xbf16, #tpu.memory_space<vmem>>, %arg5: memref<1x64xf32, #tpu.memory_space<vmem>>, %arg6: memref<64x128xbf16, #tpu.memory_space<vmem>>, %arg7: memref<1x128xf32, #tpu.memory_space<vmem>>, %arg8: memref<64x64xbf16, #tpu.memory_space<vmem>>, %arg9: memref<1x64xf32, #tpu.memory_space<vmem>>, %arg10: memref<1x64xf32, #tpu.memory_space<vmem>>, %arg11: memref<1x64xf32, #tpu.memory_space<vmem>>, %arg12: memref<1x8x64xf32, #tpu.memory_space<vmem>>) attributes {dimension_semantics = [#tpu.dimension_semantics<parallel>, #tpu.dimension_semantics<parallel>], iteration_bounds = array<i64: 2, 3>, scalar_prefetch = 0 : i64, scratch_operands = 0 : i64, tpu.core_type = #tpu.core_type<tc>, window_params = [{transform_indices = @transform_0, window_bounds = array<i64: 1, 8, 64>}, {transform_indices = @transform_1, window_bounds = array<i64: 1, 16, 64>}, {pipeline_mode = #tpu.pipeline_mode<synchronous>, transform_indices = @transform_2, window_bounds = array<i64: 64, 64>}, {pipeline_mode = #tpu.pipeline_mode<synchronous>, transform_indices = @transform_3, window_bounds = array<i64: 1, 64>}, {pipeline_mode = #tpu.pipeline_mode<synchronous>, transform_indices = @transform_4, window_bounds = array<i64: 64, 128>}, {pipeline_mode = #tpu.pipeline_mode<synchronous>, transform_indices = @transform_5, window_bounds = array<i64: 1, 128>}, {pipeline_mode = #tpu.pipeline_mode<synchronous>, transform_indices = @transform_6, window_bounds = array<i64: 64, 64>}, {pipeline_mode = #tpu.pipeline_mode<synchronous>, transform_indices = @transform_7, window_bounds = array<i64: 1, 64>}, {pipeline_mode = #tpu.pipeline_mode<synchronous>, transform_indices = @transform_8, window_bounds = array<i64: 1, 64>}, {pipeline_mode = #tpu.pipeline_mode<synchronous>, transform_indices = @transform_9, window_bounds = array<i64: 1, 64>}, {transform_indices = @transform_10, window_bounds = array<i64: 1, 8, 64>}]} {
    %c0 = arith.constant 0 : index
    %c0_0 = arith.constant 0 : index
    %c0_1 = arith.constant 0 : index
    %0 = vector.load %arg2[%c0, %c0_0, %c0_1] : memref<1x8x64xf32, #tpu.memory_space<vmem>>, vector<1x8x64xf32>
    %1 = vector.shape_cast %0 : vector<1x8x64xf32> to vector<8x64xf32>
    %c0_2 = arith.constant 0 : index
    %c0_3 = arith.constant 0 : index
    %c0_4 = arith.constant 0 : index
    %2 = vector.load %arg3[%c0_2, %c0_3, %c0_4] : memref<1x16x64xf32, #tpu.memory_space<vmem>>, vector<1x16x64xf32>
    %3 = vector.shape_cast %2 : vector<1x16x64xf32> to vector<16x64xf32>
    %c0_5 = arith.constant 0 : index
    %c0_6 = arith.constant 0 : index
    %4 = vector.load %arg4[%c0_5, %c0_6] : memref<64x64xbf16, #tpu.memory_space<vmem>>, vector<64x64xbf16>
    %5 = arith.truncf %1 : vector<8x64xf32> to vector<8x64xbf16>
    %cst = arith.constant dense<0.000000e+00> : vector<8x64xf32>
    %6 = tpu.matmul %5, %4, %cst {dimension_numbers = #tpu.dot_dimension_numbers<[1], [0], [0], [1], [0, 0, 1, 1], [], []>} : vector<8x64xbf16>, vector<64x64xbf16>, vector<8x64xf32> -> vector<8x64xf32>
    %c0_7 = arith.constant 0 : index
    %c0_8 = arith.constant 0 : index
    %7 = vector.load %arg5[%c0_7, %c0_8] : memref<1x64xf32, #tpu.memory_space<vmem>>, vector<1x64xf32>
    %8 = vector.broadcast %7 : vector<1x64xf32> to vector<8x64xf32>
    %9 = arith.addf %6, %8 : vector<8x64xf32>
    %c0_9 = arith.constant 0 : index
    %c0_10 = arith.constant 0 : index
    %10 = vector.load %arg6[%c0_9, %c0_10] : memref<64x128xbf16, #tpu.memory_space<vmem>>, vector<64x128xbf16>
    %11 = arith.truncf %3 : vector<16x64xf32> to vector<16x64xbf16>
    %cst_11 = arith.constant dense<0.000000e+00> : vector<16x128xf32>
    %12 = tpu.matmul %11, %10, %cst_11 {dimension_numbers = #tpu.dot_dimension_numbers<[1], [0], [0], [1], [0, 0, 1, 1], [], []>} : vector<16x64xbf16>, vector<64x128xbf16>, vector<16x128xf32> -> vector<16x128xf32>
    %c0_12 = arith.constant 0 : index
    %c0_13 = arith.constant 0 : index
    %13 = vector.load %arg7[%c0_12, %c0_13] : memref<1x128xf32, #tpu.memory_space<vmem>>, vector<1x128xf32>
    %14 = vector.broadcast %13 : vector<1x128xf32> to vector<16x128xf32>
    %15 = arith.addf %12, %14 : vector<16x128xf32>
    %16 = vector.extract_strided_slice %15 {offsets = [0, 0], sizes = [16, 64], strides = [1, 1]} : vector<16x128xf32> to vector<16x64xf32>
    %17 = vector.extract_strided_slice %15 {offsets = [0, 64], sizes = [16, 64], strides = [1, 1]} : vector<16x128xf32> to vector<16x64xf32>
    %cst_14 = arith.constant 2.500000e-01 : f32
    %18 = vector.broadcast %cst_14 : f32 to vector<8x64xf32>
    %19 = arith.mulf %9, %18 : vector<8x64xf32>
    %20 = arith.truncf %19 : vector<8x64xf32> to vector<8x64xbf16>
    %21 = vector.shape_cast %20 : vector<8x64xbf16> to vector<8x4x16xbf16>
    %22 = arith.truncf %16 : vector<16x64xf32> to vector<16x64xbf16>
    %23 = vector.shape_cast %22 : vector<16x64xbf16> to vector<16x4x16xbf16>
    %24 = arith.truncf %17 : vector<16x64xf32> to vector<16x64xbf16>
    %25 = vector.shape_cast %24 : vector<16x64xbf16> to vector<16x4x16xbf16>
    "tpu.trace_start"() <{level = 10 : i32, message = "qhc,khc->hqk"}> : () -> ()
    %cst_15 = arith.constant dense<0.000000e+00> : vector<4x8x16xf32>
    %26 = tpu.matmul %21, %23, %cst_15 {dimension_numbers = #tpu.dot_dimension_numbers<[2], [2], [0], [0], [0, 1, 0, 0, 1, 0], [1], [1]>} : vector<8x4x16xbf16>, vector<16x4x16xbf16>, vector<4x8x16xf32> -> vector<4x8x16xf32>
    "tpu.trace_stop"() : () -> ()
    %cst_16 = arith.constant dense<0xFF800000> : vector<4x8xf32>
    %27 = vector.multi_reduction <maximumf>, %26, %cst_16 [2] : vector<4x8x16xf32> to vector<4x8xf32>
    %28 = vector.shape_cast %27 : vector<4x8xf32> to vector<4x8x1xf32>
    %29 = vector.broadcast %28 : vector<4x8x1xf32> to vector<4x8x16xf32>
    %30 = arith.subf %26, %29 : vector<4x8x16xf32>
    %31 = math.exp %30 : vector<4x8x16xf32>
    %cst_17 = arith.constant dense<0.000000e+00> : vector<4x8xf32>
    %32 = vector.multi_reduction <add>, %31, %cst_17 [2] : vector<4x8x16xf32> to vector<4x8xf32>
    %33 = vector.shape_cast %32 : vector<4x8xf32> to vector<4x8x1xf32>
    %34 = vector.broadcast %33 : vector<4x8x1xf32> to vector<4x8x16xf32>
    %35 = arith.divf %31, %34 : vector<4x8x16xf32>
    %36 = arith.truncf %35 : vector<4x8x16xf32> to vector<4x8x16xbf16>
    "tpu.trace_start"() <{level = 10 : i32, message = "hqk,khc->qhc"}> : () -> ()
    %cst_18 = arith.constant dense<0.000000e+00> : vector<4x16x8xf32>
    %37 = tpu.matmul %25, %36, %cst_18 {dimension_numbers = #tpu.dot_dimension_numbers<[0], [2], [2], [1], [0, 1, 0, 2, 1, 1], [1], [0]>} : vector<16x4x16xbf16>, vector<4x8x16xbf16>, vector<4x16x8xf32> -> vector<4x16x8xf32>
    %38 = tpu.transpose %37, [2, 0, 1] : vector<4x16x8xf32> -> vector<8x4x16xf32>
    "tpu.trace_stop"() : () -> ()
    %39 = vector.shape_cast %38 : vector<8x4x16xf32> to vector<8x64xf32>
    %c0_19 = arith.constant 0 : index
    %c0_20 = arith.constant 0 : index
    %40 = vector.load %arg8[%c0_19, %c0_20] : memref<64x64xbf16, #tpu.memory_space<vmem>>, vector<64x64xbf16>
    %41 = arith.truncf %39 : vector<8x64xf32> to vector<8x64xbf16>
    %cst_21 = arith.constant dense<0.000000e+00> : vector<8x64xf32>
    %42 = tpu.matmul %41, %40, %cst_21 {dimension_numbers = #tpu.dot_dimension_numbers<[1], [0], [0], [1], [0, 0, 1, 1], [], []>} : vector<8x64xbf16>, vector<64x64xbf16>, vector<8x64xf32> -> vector<8x64xf32>
    %c0_22 = arith.constant 0 : index
    %c0_23 = arith.constant 0 : index
    %43 = vector.load %arg9[%c0_22, %c0_23] : memref<1x64xf32, #tpu.memory_space<vmem>>, vector<1x64xf32>
    %44 = vector.broadcast %43 : vector<1x64xf32> to vector<8x64xf32>
    %45 = arith.addf %42, %44 : vector<8x64xf32>
    %46 = arith.addf %45, %1 : vector<8x64xf32>
    %c0_24 = arith.constant 0 : index
    %c0_25 = arith.constant 0 : index
    %47 = vector.load %arg10[%c0_24, %c0_25] : memref<1x64xf32, #tpu.memory_space<vmem>>, vector<1x64xf32>
    %c0_26 = arith.constant 0 : index
    %c0_27 = arith.constant 0 : index
    %48 = vector.load %arg11[%c0_26, %c0_27] : memref<1x64xf32, #tpu.memory_space<vmem>>, vector<1x64xf32>
    %cst_28 = arith.constant dense<0.000000e+00> : vector<8xf32>
    %49 = vector.multi_reduction <add>, %46, %cst_28 [1] : vector<8x64xf32> to vector<8xf32>
    %50 = vector.shape_cast %49 : vector<8xf32> to vector<8x1xf32>
    %cst_29 = arith.constant 6.400000e+01 : f32
    %51 = vector.broadcast %cst_29 : f32 to vector<8x1xf32>
    %52 = arith.divf %50, %51 : vector<8x1xf32>
    %53 = vector.broadcast %52 : vector<8x1xf32> to vector<8x64xf32>
    %54 = arith.subf %46, %53 : vector<8x64xf32>
    %55 = arith.mulf %54, %54 : vector<8x64xf32>
    %cst_30 = arith.constant dense<0.000000e+00> : vector<8xf32>
    %56 = vector.multi_reduction <add>, %55, %cst_30 [1] : vector<8x64xf32> to vector<8xf32>
    %57 = vector.shape_cast %56 : vector<8xf32> to vector<8x1xf32>
    %cst_31 = arith.constant 6.400000e+01 : f32
    %58 = vector.broadcast %cst_31 : f32 to vector<8x1xf32>
    %59 = arith.divf %57, %58 : vector<8x1xf32>
    %60 = vector.broadcast %52 : vector<8x1xf32> to vector<8x64xf32>
    %61 = arith.subf %46, %60 : vector<8x64xf32>
    %cst_32 = arith.constant 9.99999974E-6 : f32
    %62 = vector.broadcast %cst_32 : f32 to vector<8x1xf32>
    %63 = arith.addf %59, %62 : vector<8x1xf32>
    %64 = math.rsqrt %63 : vector<8x1xf32>
    %65 = vector.broadcast %64 : vector<8x1xf32> to vector<8x64xf32>
    %66 = arith.mulf %61, %65 : vector<8x64xf32>
    %67 = vector.broadcast %47 : vector<1x64xf32> to vector<8x64xf32>
    %68 = arith.mulf %66, %67 : vector<8x64xf32>
    %69 = vector.broadcast %48 : vector<1x64xf32> to vector<8x64xf32>
    %70 = arith.addf %68, %69 : vector<8x64xf32>
    %c0_33 = arith.constant 0 : index
    %c0_34 = arith.constant 0 : index
    %c0_35 = arith.constant 0 : index
    %71 = vector.load %arg12[%c0_33, %c0_34, %c0_35] : memref<1x8x64xf32, #tpu.memory_space<vmem>>, vector<1x8x64xf32>
    %72 = vector.shape_cast %71 : vector<1x8x64xf32> to vector<8x64xf32>
    %73 = vector.shape_cast %70 : vector<8x64xf32> to vector<1x8x64xf32>
    tpu.vector_store %arg12[%c0_33, %c0_34, %c0_35], %73 {strides = array<i32>} : memref<1x8x64xf32, #tpu.memory_space<vmem>>, vector<1x8x64xf32>,
    return
  }
  func.func @transform_0(%arg0: i32, %arg1: i32) -> (i32, i32, i32) {
    %c0_i32 = arith.constant 0 : i32
    %c0_i32_0 = arith.constant 0 : i32
    return %arg0, %arg1, %c0_i32 : i32, i32, i32
  }
  func.func @transform_1(%arg0: i32, %arg1: i32) -> (i32, i32, i32) {
    %c0_i32 = arith.constant 0 : i32
    %c0_i32_0 = arith.constant 0 : i32
    %c0_i32_1 = arith.constant 0 : i32
    return %arg0, %c0_i32, %c0_i32_0 : i32, i32, i32
  }
  func.func @transform_2(%arg0: i32, %arg1: i32) -> (i32, i32) {
    %c0_i32 = arith.constant 0 : i32
    %c0_i32_0 = arith.constant 0 : i32
    %c0_i32_1 = arith.constant 0 : i32
    return %c0_i32, %c0_i32_0 : i32, i32
  }
  func.func @transform_3(%arg0: i32, %arg1: i32) -> (i32, i32) {
    %c0_i32 = arith.constant 0 : i32
    %c0_i32_0 = arith.constant 0 : i32
    %c0_i32_1 = arith.constant 0 : i32
    return %c0_i32, %c0_i32_0 : i32, i32
  }
  func.func @transform_4(%arg0: i32, %arg1: i32) -> (i32, i32) {
    %c0_i32 = arith.constant 0 : i32
    %c0_i32_0 = arith.constant 0 : i32
    %c0_i32_1 = arith.constant 0 : i32
    return %c0_i32, %c0_i32_0 : i32, i32
  }
  func.func @transform_5(%arg0: i32, %arg1: i32) -> (i32, i32) {
    %c0_i32 = arith.constant 0 : i32
    %c0_i32_0 = arith.constant 0 : i32
    %c0_i32_1 = arith.constant 0 : i32
    return %c0_i32, %c0_i32_0 : i32, i32
  }
  func.func @transform_6(%arg0: i32, %arg1: i32) -> (i32, i32) {
    %c0_i32 = arith.constant 0 : i32
    %c0_i32_0 = arith.constant 0 : i32
    %c0_i32_1 = arith.constant 0 : i32
    return %c0_i32, %c0_i32_0 : i32, i32
  }
  func.func @transform_7(%arg0: i32, %arg1: i32) -> (i32, i32) {
    %c0_i32 = arith.constant 0 : i32
    %c0_i32_0 = arith.constant 0 : i32
    %c0_i32_1 = arith.constant 0 : i32
    return %c0_i32, %c0_i32_0 : i32, i32
  }
  func.func @transform_8(%arg0: i32, %arg1: i32) -> (i32, i32) {
    %c0_i32 = arith.constant 0 : i32
    %c0_i32_0 = arith.constant 0 : i32
    %c0_i32_1 = arith.constant 0 : i32
    return %c0_i32, %c0_i32_0 : i32, i32
  }
  func.func @transform_9(%arg0: i32, %arg1: i32) -> (i32, i32) {
    %c0_i32 = arith.constant 0 : i32
    %c0_i32_0 = arith.constant 0 : i32
    %c0_i32_1 = arith.constant 0 : i32
    return %c0_i32, %c0_i32_0 : i32, i32
  }
  func.func @transform_10(%arg0: i32, %arg1: i32) -> (i32, i32, i32) {
    %c0_i32 = arith.constant 0 : i32
    %c0_i32_0 = arith.constant 0 : i32
    return %arg0, %arg1, %c0_i32 : i32, i32, i32
  }
}

module attributes {stable_mosaic.version = 11 : i64} {
  func.func @_cross_attn_kernel(%arg0: i32, %arg1: i32, %arg2: memref<1x8x64xf32, #tpu.memory_space<vmem>>, %arg3: memref<1x20x64xf32, #tpu.memory_space<vmem>>, %arg4: memref<64x64xbf16, #tpu.memory_space<vmem>>, %arg5: memref<1x64xf32, #tpu.memory_space<vmem>>, %arg6: memref<64x128xbf16, #tpu.memory_space<vmem>>, %arg7: memref<1x128xf32, #tpu.memory_space<vmem>>, %arg8: memref<64x64xbf16, #tpu.memory_space<vmem>>, %arg9: memref<1x64xf32, #tpu.memory_space<vmem>>, %arg10: memref<1x64xf32, #tpu.memory_space<vmem>>, %arg11: memref<1x64xf32, #tpu.memory_space<vmem>>, %arg12: memref<1x8x64xf32, #tpu.memory_space<vmem>>) attributes {dimension_semantics = [#tpu.dimension_semantics<parallel>, #tpu.dimension_semantics<parallel>], iteration_bounds = array<i64: 2, 2>, scalar_prefetch = 0 : i64, scratch_operands = 0 : i64, tpu.core_type = #tpu.core_type<tc>, window_params = [{transform_indices = @transform_0, window_bounds = array<i64: 1, 8, 64>}, {transform_indices = @transform_1, window_bounds = array<i64: 1, 20, 64>}, {pipeline_mode = #tpu.pipeline_mode<synchronous>, transform_indices = @transform_2, window_bounds = array<i64: 64, 64>}, {pipeline_mode = #tpu.pipeline_mode<synchronous>, transform_indices = @transform_3, window_bounds = array<i64: 1, 64>}, {pipeline_mode = #tpu.pipeline_mode<synchronous>, transform_indices = @transform_4, window_bounds = array<i64: 64, 128>}, {pipeline_mode = #tpu.pipeline_mode<synchronous>, transform_indices = @transform_5, window_bounds = array<i64: 1, 128>}, {pipeline_mode = #tpu.pipeline_mode<synchronous>, transform_indices = @transform_6, window_bounds = array<i64: 64, 64>}, {pipeline_mode = #tpu.pipeline_mode<synchronous>, transform_indices = @transform_7, window_bounds = array<i64: 1, 64>}, {pipeline_mode = #tpu.pipeline_mode<synchronous>, transform_indices = @transform_8, window_bounds = array<i64: 1, 64>}, {pipeline_mode = #tpu.pipeline_mode<synchronous>, transform_indices = @transform_9, window_bounds = array<i64: 1, 64>}, {transform_indices = @transform_10, window_bounds = array<i64: 1, 8, 64>}]} {
    %c0 = arith.constant 0 : index
    %c0_0 = arith.constant 0 : index
    %c0_1 = arith.constant 0 : index
    %0 = vector.load %arg2[%c0, %c0_0, %c0_1] : memref<1x8x64xf32, #tpu.memory_space<vmem>>, vector<1x8x64xf32>
    %1 = vector.shape_cast %0 : vector<1x8x64xf32> to vector<8x64xf32>
    %c0_2 = arith.constant 0 : index
    %c0_3 = arith.constant 0 : index
    %c0_4 = arith.constant 0 : index
    %2 = vector.load %arg3[%c0_2, %c0_3, %c0_4] : memref<1x20x64xf32, #tpu.memory_space<vmem>>, vector<1x20x64xf32>
    %3 = vector.shape_cast %2 : vector<1x20x64xf32> to vector<20x64xf32>
    %c0_5 = arith.constant 0 : index
    %c0_6 = arith.constant 0 : index
    %4 = vector.load %arg4[%c0_5, %c0_6] : memref<64x64xbf16, #tpu.memory_space<vmem>>, vector<64x64xbf16>
    %5 = arith.truncf %1 : vector<8x64xf32> to vector<8x64xbf16>
    %cst = arith.constant dense<0.000000e+00> : vector<8x64xf32>
    %6 = tpu.matmul %5, %4, %cst {dimension_numbers = #tpu.dot_dimension_numbers<[1], [0], [0], [1], [0, 0, 1, 1], [], []>} : vector<8x64xbf16>, vector<64x64xbf16>, vector<8x64xf32> -> vector<8x64xf32>
    %c0_7 = arith.constant 0 : index
    %c0_8 = arith.constant 0 : index
    %7 = vector.load %arg5[%c0_7, %c0_8] : memref<1x64xf32, #tpu.memory_space<vmem>>, vector<1x64xf32>
    %8 = vector.broadcast %7 : vector<1x64xf32> to vector<8x64xf32>
    %9 = arith.addf %6, %8 : vector<8x64xf32>
    %c0_9 = arith.constant 0 : index
    %c0_10 = arith.constant 0 : index
    %10 = vector.load %arg6[%c0_9, %c0_10] : memref<64x128xbf16, #tpu.memory_space<vmem>>, vector<64x128xbf16>
    %11 = arith.truncf %3 : vector<20x64xf32> to vector<20x64xbf16>
    %cst_11 = arith.constant dense<0.000000e+00> : vector<20x128xf32>
    %12 = tpu.matmul %11, %10, %cst_11 {dimension_numbers = #tpu.dot_dimension_numbers<[1], [0], [0], [1], [0, 0, 1, 1], [], []>} : vector<20x64xbf16>, vector<64x128xbf16>, vector<20x128xf32> -> vector<20x128xf32>
    %c0_12 = arith.constant 0 : index
    %c0_13 = arith.constant 0 : index
    %13 = vector.load %arg7[%c0_12, %c0_13] : memref<1x128xf32, #tpu.memory_space<vmem>>, vector<1x128xf32>
    %14 = vector.broadcast %13 : vector<1x128xf32> to vector<20x128xf32>
    %15 = arith.addf %12, %14 : vector<20x128xf32>
    %16 = vector.extract_strided_slice %15 {offsets = [0, 0], sizes = [20, 64], strides = [1, 1]} : vector<20x128xf32> to vector<20x64xf32>
    %17 = vector.extract_strided_slice %15 {offsets = [0, 64], sizes = [20, 64], strides = [1, 1]} : vector<20x128xf32> to vector<20x64xf32>
    %cst_14 = arith.constant 2.500000e-01 : f32
    %18 = vector.broadcast %cst_14 : f32 to vector<8x64xf32>
    %19 = arith.mulf %9, %18 : vector<8x64xf32>
    %20 = arith.truncf %19 : vector<8x64xf32> to vector<8x64xbf16>
    %21 = vector.shape_cast %20 : vector<8x64xbf16> to vector<8x4x16xbf16>
    %22 = arith.truncf %16 : vector<20x64xf32> to vector<20x64xbf16>
    %23 = vector.shape_cast %22 : vector<20x64xbf16> to vector<20x4x16xbf16>
    %24 = arith.truncf %17 : vector<20x64xf32> to vector<20x64xbf16>
    %25 = vector.shape_cast %24 : vector<20x64xbf16> to vector<20x4x16xbf16>
    "tpu.trace_start"() <{level = 10 : i32, message = "qhc,khc->hqk"}> : () -> ()
    %cst_15 = arith.constant dense<0.000000e+00> : vector<4x8x20xf32>
    %26 = tpu.matmul %21, %23, %cst_15 {dimension_numbers = #tpu.dot_dimension_numbers<[2], [2], [0], [0], [0, 1, 0, 0, 1, 0], [1], [1]>} : vector<8x4x16xbf16>, vector<20x4x16xbf16>, vector<4x8x20xf32> -> vector<4x8x20xf32>
    "tpu.trace_stop"() : () -> ()
    %cst_16 = arith.constant dense<0xFF800000> : vector<4x8xf32>
    %27 = vector.multi_reduction <maximumf>, %26, %cst_16 [2] : vector<4x8x20xf32> to vector<4x8xf32>
    %28 = vector.shape_cast %27 : vector<4x8xf32> to vector<4x8x1xf32>
    %29 = vector.broadcast %28 : vector<4x8x1xf32> to vector<4x8x20xf32>
    %30 = arith.subf %26, %29 : vector<4x8x20xf32>
    %31 = math.exp %30 : vector<4x8x20xf32>
    %cst_17 = arith.constant dense<0.000000e+00> : vector<4x8xf32>
    %32 = vector.multi_reduction <add>, %31, %cst_17 [2] : vector<4x8x20xf32> to vector<4x8xf32>
    %33 = vector.shape_cast %32 : vector<4x8xf32> to vector<4x8x1xf32>
    %34 = vector.broadcast %33 : vector<4x8x1xf32> to vector<4x8x20xf32>
    %35 = arith.divf %31, %34 : vector<4x8x20xf32>
    %36 = arith.truncf %35 : vector<4x8x20xf32> to vector<4x8x20xbf16>
    "tpu.trace_start"() <{level = 10 : i32, message = "hqk,khc->qhc"}> : () -> ()
    %cst_18 = arith.constant dense<0.000000e+00> : vector<4x16x8xf32>
    %37 = tpu.matmul %25, %36, %cst_18 {dimension_numbers = #tpu.dot_dimension_numbers<[0], [2], [2], [1], [0, 1, 0, 2, 1, 1], [1], [0]>} : vector<20x4x16xbf16>, vector<4x8x20xbf16>, vector<4x16x8xf32> -> vector<4x16x8xf32>
    %38 = tpu.transpose %37, [2, 0, 1] : vector<4x16x8xf32> -> vector<8x4x16xf32>
    "tpu.trace_stop"() : () -> ()
    %39 = vector.shape_cast %38 : vector<8x4x16xf32> to vector<8x64xf32>
    %c0_19 = arith.constant 0 : index
    %c0_20 = arith.constant 0 : index
    %40 = vector.load %arg8[%c0_19, %c0_20] : memref<64x64xbf16, #tpu.memory_space<vmem>>, vector<64x64xbf16>
    %41 = arith.truncf %39 : vector<8x64xf32> to vector<8x64xbf16>
    %cst_21 = arith.constant dense<0.000000e+00> : vector<8x64xf32>
    %42 = tpu.matmul %41, %40, %cst_21 {dimension_numbers = #tpu.dot_dimension_numbers<[1], [0], [0], [1], [0, 0, 1, 1], [], []>} : vector<8x64xbf16>, vector<64x64xbf16>, vector<8x64xf32> -> vector<8x64xf32>
    %c0_22 = arith.constant 0 : index
    %c0_23 = arith.constant 0 : index
    %43 = vector.load %arg9[%c0_22, %c0_23] : memref<1x64xf32, #tpu.memory_space<vmem>>, vector<1x64xf32>
    %44 = vector.broadcast %43 : vector<1x64xf32> to vector<8x64xf32>
    %45 = arith.addf %42, %44 : vector<8x64xf32>
    %46 = arith.addf %45, %1 : vector<8x64xf32>
    %c0_24 = arith.constant 0 : index
    %c0_25 = arith.constant 0 : index
    %47 = vector.load %arg10[%c0_24, %c0_25] : memref<1x64xf32, #tpu.memory_space<vmem>>, vector<1x64xf32>
    %c0_26 = arith.constant 0 : index
    %c0_27 = arith.constant 0 : index
    %48 = vector.load %arg11[%c0_26, %c0_27] : memref<1x64xf32, #tpu.memory_space<vmem>>, vector<1x64xf32>
    %cst_28 = arith.constant dense<0.000000e+00> : vector<8xf32>
    %49 = vector.multi_reduction <add>, %46, %cst_28 [1] : vector<8x64xf32> to vector<8xf32>
    %50 = vector.shape_cast %49 : vector<8xf32> to vector<8x1xf32>
    %cst_29 = arith.constant 6.400000e+01 : f32
    %51 = vector.broadcast %cst_29 : f32 to vector<8x1xf32>
    %52 = arith.divf %50, %51 : vector<8x1xf32>
    %53 = vector.broadcast %52 : vector<8x1xf32> to vector<8x64xf32>
    %54 = arith.subf %46, %53 : vector<8x64xf32>
    %55 = arith.mulf %54, %54 : vector<8x64xf32>
    %cst_30 = arith.constant dense<0.000000e+00> : vector<8xf32>
    %56 = vector.multi_reduction <add>, %55, %cst_30 [1] : vector<8x64xf32> to vector<8xf32>
    %57 = vector.shape_cast %56 : vector<8xf32> to vector<8x1xf32>
    %cst_31 = arith.constant 6.400000e+01 : f32
    %58 = vector.broadcast %cst_31 : f32 to vector<8x1xf32>
    %59 = arith.divf %57, %58 : vector<8x1xf32>
    %60 = vector.broadcast %52 : vector<8x1xf32> to vector<8x64xf32>
    %61 = arith.subf %46, %60 : vector<8x64xf32>
    %cst_32 = arith.constant 9.99999974E-6 : f32
    %62 = vector.broadcast %cst_32 : f32 to vector<8x1xf32>
    %63 = arith.addf %59, %62 : vector<8x1xf32>
    %64 = math.rsqrt %63 : vector<8x1xf32>
    %65 = vector.broadcast %64 : vector<8x1xf32> to vector<8x64xf32>
    %66 = arith.mulf %61, %65 : vector<8x64xf32>
    %67 = vector.broadcast %47 : vector<1x64xf32> to vector<8x64xf32>
    %68 = arith.mulf %66, %67 : vector<8x64xf32>
    %69 = vector.broadcast %48 : vector<1x64xf32> to vector<8x64xf32>
    %70 = arith.addf %68, %69 : vector<8x64xf32>
    %c0_33 = arith.constant 0 : index
    %c0_34 = arith.constant 0 : index
    %c0_35 = arith.constant 0 : index
    %71 = vector.load %arg12[%c0_33, %c0_34, %c0_35] : memref<1x8x64xf32, #tpu.memory_space<vmem>>, vector<1x8x64xf32>
    %72 = vector.shape_cast %71 : vector<1x8x64xf32> to vector<8x64xf32>
    %73 = vector.shape_cast %70 : vector<8x64xf32> to vector<1x8x64xf32>
    tpu.vector_store %arg12[%c0_33, %c0_34, %c0_35], %73 {strides = array<i32>} : memref<1x8x64xf32, #tpu.memory_space<vmem>>, vector<1x8x64xf32>,
    return
  }
  func.func @transform_0(%arg0: i32, %arg1: i32) -> (i32, i32, i32) {
    %c0_i32 = arith.constant 0 : i32
    %c0_i32_0 = arith.constant 0 : i32
    return %arg0, %arg1, %c0_i32 : i32, i32, i32
  }
  func.func @transform_1(%arg0: i32, %arg1: i32) -> (i32, i32, i32) {
    %c0_i32 = arith.constant 0 : i32
    %c0_i32_0 = arith.constant 0 : i32
    %c0_i32_1 = arith.constant 0 : i32
    return %arg0, %c0_i32, %c0_i32_0 : i32, i32, i32
  }
  func.func @transform_2(%arg0: i32, %arg1: i32) -> (i32, i32) {
    %c0_i32 = arith.constant 0 : i32
    %c0_i32_0 = arith.constant 0 : i32
    %c0_i32_1 = arith.constant 0 : i32
    return %c0_i32, %c0_i32_0 : i32, i32
  }
  func.func @transform_3(%arg0: i32, %arg1: i32) -> (i32, i32) {
    %c0_i32 = arith.constant 0 : i32
    %c0_i32_0 = arith.constant 0 : i32
    %c0_i32_1 = arith.constant 0 : i32
    return %c0_i32, %c0_i32_0 : i32, i32
  }
  func.func @transform_4(%arg0: i32, %arg1: i32) -> (i32, i32) {
    %c0_i32 = arith.constant 0 : i32
    %c0_i32_0 = arith.constant 0 : i32
    %c0_i32_1 = arith.constant 0 : i32
    return %c0_i32, %c0_i32_0 : i32, i32
  }
  func.func @transform_5(%arg0: i32, %arg1: i32) -> (i32, i32) {
    %c0_i32 = arith.constant 0 : i32
    %c0_i32_0 = arith.constant 0 : i32
    %c0_i32_1 = arith.constant 0 : i32
    return %c0_i32, %c0_i32_0 : i32, i32
  }
  func.func @transform_6(%arg0: i32, %arg1: i32) -> (i32, i32) {
    %c0_i32 = arith.constant 0 : i32
    %c0_i32_0 = arith.constant 0 : i32
    %c0_i32_1 = arith.constant 0 : i32
    return %c0_i32, %c0_i32_0 : i32, i32
  }
  func.func @transform_7(%arg0: i32, %arg1: i32) -> (i32, i32) {
    %c0_i32 = arith.constant 0 : i32
    %c0_i32_0 = arith.constant 0 : i32
    %c0_i32_1 = arith.constant 0 : i32
    return %c0_i32, %c0_i32_0 : i32, i32
  }
  func.func @transform_8(%arg0: i32, %arg1: i32) -> (i32, i32) {
    %c0_i32 = arith.constant 0 : i32
    %c0_i32_0 = arith.constant 0 : i32
    %c0_i32_1 = arith.constant 0 : i32
    return %c0_i32, %c0_i32_0 : i32, i32
  }
  func.func @transform_9(%arg0: i32, %arg1: i32) -> (i32, i32) {
    %c0_i32 = arith.constant 0 : i32
    %c0_i32_0 = arith.constant 0 : i32
    %c0_i32_1 = arith.constant 0 : i32
    return %c0_i32, %c0_i32_0 : i32, i32
  }
  func.func @transform_10(%arg0: i32, %arg1: i32) -> (i32, i32, i32) {
    %c0_i32 = arith.constant 0 : i32
    %c0_i32_0 = arith.constant 0 : i32
    return %arg0, %arg1, %c0_i32 : i32, i32, i32
  }
}

module attributes {stable_mosaic.version = 11 : i64} {
  func.func @_ffn_ln_kernel(%arg0: i32, %arg1: memref<16x64xf32, #tpu.memory_space<vmem>>, %arg2: memref<64x128xbf16, #tpu.memory_space<vmem>>, %arg3: memref<1x128xf32, #tpu.memory_space<vmem>>, %arg4: memref<128x64xbf16, #tpu.memory_space<vmem>>, %arg5: memref<1x64xf32, #tpu.memory_space<vmem>>, %arg6: memref<1x64xf32, #tpu.memory_space<vmem>>, %arg7: memref<1x64xf32, #tpu.memory_space<vmem>>, %arg8: memref<16x64xf32, #tpu.memory_space<vmem>>) attributes {dimension_semantics = [#tpu.dimension_semantics<parallel>], iteration_bounds = array<i64: 2>, scalar_prefetch = 0 : i64, scratch_operands = 0 : i64, tpu.core_type = #tpu.core_type<tc>, window_params = [{transform_indices = @transform_0, window_bounds = array<i64: 16, 64>}, {pipeline_mode = #tpu.pipeline_mode<synchronous>, transform_indices = @transform_1, window_bounds = array<i64: 64, 128>}, {pipeline_mode = #tpu.pipeline_mode<synchronous>, transform_indices = @transform_2, window_bounds = array<i64: 1, 128>}, {pipeline_mode = #tpu.pipeline_mode<synchronous>, transform_indices = @transform_3, window_bounds = array<i64: 128, 64>}, {pipeline_mode = #tpu.pipeline_mode<synchronous>, transform_indices = @transform_4, window_bounds = array<i64: 1, 64>}, {pipeline_mode = #tpu.pipeline_mode<synchronous>, transform_indices = @transform_5, window_bounds = array<i64: 1, 64>}, {pipeline_mode = #tpu.pipeline_mode<synchronous>, transform_indices = @transform_6, window_bounds = array<i64: 1, 64>}, {transform_indices = @transform_7, window_bounds = array<i64: 16, 64>}]} {
    %c0 = arith.constant 0 : index
    %c0_0 = arith.constant 0 : index
    %0 = vector.load %arg1[%c0, %c0_0] : memref<16x64xf32, #tpu.memory_space<vmem>>, vector<16x64xf32>
    %c0_1 = arith.constant 0 : index
    %c0_2 = arith.constant 0 : index
    %1 = vector.load %arg2[%c0_1, %c0_2] : memref<64x128xbf16, #tpu.memory_space<vmem>>, vector<64x128xbf16>
    %2 = arith.truncf %0 : vector<16x64xf32> to vector<16x64xbf16>
    %cst = arith.constant dense<0.000000e+00> : vector<16x128xf32>
    %3 = tpu.matmul %2, %1, %cst {dimension_numbers = #tpu.dot_dimension_numbers<[1], [0], [0], [1], [0, 0, 1, 1], [], []>} : vector<16x64xbf16>, vector<64x128xbf16>, vector<16x128xf32> -> vector<16x128xf32>
    %c0_3 = arith.constant 0 : index
    %c0_4 = arith.constant 0 : index
    %4 = vector.load %arg3[%c0_3, %c0_4] : memref<1x128xf32, #tpu.memory_space<vmem>>, vector<1x128xf32>
    %5 = vector.broadcast %4 : vector<1x128xf32> to vector<16x128xf32>
    %6 = arith.addf %3, %5 : vector<16x128xf32>
    %cst_5 = arith.constant 0.000000e+00 : f32
    %7 = vector.broadcast %cst_5 : f32 to vector<16x128xf32>
    %8 = arith.maximumf %6, %7 : vector<16x128xf32>
    %c0_6 = arith.constant 0 : index
    %c0_7 = arith.constant 0 : index
    %9 = vector.load %arg4[%c0_6, %c0_7] : memref<128x64xbf16, #tpu.memory_space<vmem>>, vector<128x64xbf16>
    %10 = arith.truncf %8 : vector<16x128xf32> to vector<16x128xbf16>
    %cst_8 = arith.constant dense<0.000000e+00> : vector<16x64xf32>
    %11 = tpu.matmul %10, %9, %cst_8 {dimension_numbers = #tpu.dot_dimension_numbers<[1], [0], [0], [1], [0, 0, 1, 1], [], []>} : vector<16x128xbf16>, vector<128x64xbf16>, vector<16x64xf32> -> vector<16x64xf32>
    %c0_9 = arith.constant 0 : index
    %c0_10 = arith.constant 0 : index
    %12 = vector.load %arg5[%c0_9, %c0_10] : memref<1x64xf32, #tpu.memory_space<vmem>>, vector<1x64xf32>
    %13 = vector.broadcast %12 : vector<1x64xf32> to vector<16x64xf32>
    %14 = arith.addf %11, %13 : vector<16x64xf32>
    %15 = arith.addf %0, %14 : vector<16x64xf32>
    %c0_11 = arith.constant 0 : index
    %c0_12 = arith.constant 0 : index
    %16 = vector.load %arg6[%c0_11, %c0_12] : memref<1x64xf32, #tpu.memory_space<vmem>>, vector<1x64xf32>
    %c0_13 = arith.constant 0 : index
    %c0_14 = arith.constant 0 : index
    %17 = vector.load %arg7[%c0_13, %c0_14] : memref<1x64xf32, #tpu.memory_space<vmem>>, vector<1x64xf32>
    %cst_15 = arith.constant dense<0.000000e+00> : vector<16xf32>
    %18 = vector.multi_reduction <add>, %15, %cst_15 [1] : vector<16x64xf32> to vector<16xf32>
    %19 = vector.shape_cast %18 : vector<16xf32> to vector<16x1xf32>
    %cst_16 = arith.constant 6.400000e+01 : f32
    %20 = vector.broadcast %cst_16 : f32 to vector<16x1xf32>
    %21 = arith.divf %19, %20 : vector<16x1xf32>
    %22 = vector.broadcast %21 : vector<16x1xf32> to vector<16x64xf32>
    %23 = arith.subf %15, %22 : vector<16x64xf32>
    %24 = arith.mulf %23, %23 : vector<16x64xf32>
    %cst_17 = arith.constant dense<0.000000e+00> : vector<16xf32>
    %25 = vector.multi_reduction <add>, %24, %cst_17 [1] : vector<16x64xf32> to vector<16xf32>
    %26 = vector.shape_cast %25 : vector<16xf32> to vector<16x1xf32>
    %cst_18 = arith.constant 6.400000e+01 : f32
    %27 = vector.broadcast %cst_18 : f32 to vector<16x1xf32>
    %28 = arith.divf %26, %27 : vector<16x1xf32>
    %29 = vector.broadcast %21 : vector<16x1xf32> to vector<16x64xf32>
    %30 = arith.subf %15, %29 : vector<16x64xf32>
    %cst_19 = arith.constant 9.99999974E-6 : f32
    %31 = vector.broadcast %cst_19 : f32 to vector<16x1xf32>
    %32 = arith.addf %28, %31 : vector<16x1xf32>
    %33 = math.rsqrt %32 : vector<16x1xf32>
    %34 = vector.broadcast %33 : vector<16x1xf32> to vector<16x64xf32>
    %35 = arith.mulf %30, %34 : vector<16x64xf32>
    %36 = vector.broadcast %16 : vector<1x64xf32> to vector<16x64xf32>
    %37 = arith.mulf %35, %36 : vector<16x64xf32>
    %38 = vector.broadcast %17 : vector<1x64xf32> to vector<16x64xf32>
    %39 = arith.addf %37, %38 : vector<16x64xf32>
    %c0_20 = arith.constant 0 : index
    %c0_21 = arith.constant 0 : index
    %40 = vector.load %arg8[%c0_20, %c0_21] : memref<16x64xf32, #tpu.memory_space<vmem>>, vector<16x64xf32>
    tpu.vector_store %arg8[%c0_20, %c0_21], %39 {strides = array<i32>} : memref<16x64xf32, #tpu.memory_space<vmem>>, vector<16x64xf32>,
    return
  }
  func.func @transform_0(%arg0: i32) -> (i32, i32) {
    %c0_i32 = arith.constant 0 : i32
    %c0_i32_0 = arith.constant 0 : i32
    return %arg0, %c0_i32 : i32, i32
  }
  func.func @transform_1(%arg0: i32) -> (i32, i32) {
    %c0_i32 = arith.constant 0 : i32
    %c0_i32_0 = arith.constant 0 : i32
    %c0_i32_1 = arith.constant 0 : i32
    return %c0_i32, %c0_i32_0 : i32, i32
  }
  func.func @transform_2(%arg0: i32) -> (i32, i32) {
    %c0_i32 = arith.constant 0 : i32
    %c0_i32_0 = arith.constant 0 : i32
    %c0_i32_1 = arith.constant 0 : i32
    return %c0_i32, %c0_i32_0 : i32, i32
  }
  func.func @transform_3(%arg0: i32) -> (i32, i32) {
    %c0_i32 = arith.constant 0 : i32
    %c0_i32_0 = arith.constant 0 : i32
    %c0_i32_1 = arith.constant 0 : i32
    return %c0_i32, %c0_i32_0 : i32, i32
  }
  func.func @transform_4(%arg0: i32) -> (i32, i32) {
    %c0_i32 = arith.constant 0 : i32
    %c0_i32_0 = arith.constant 0 : i32
    %c0_i32_1 = arith.constant 0 : i32
    return %c0_i32, %c0_i32_0 : i32, i32
  }
  func.func @transform_5(%arg0: i32) -> (i32, i32) {
    %c0_i32 = arith.constant 0 : i32
    %c0_i32_0 = arith.constant 0 : i32
    %c0_i32_1 = arith.constant 0 : i32
    return %c0_i32, %c0_i32_0 : i32, i32
  }
  func.func @transform_6(%arg0: i32) -> (i32, i32) {
    %c0_i32 = arith.constant 0 : i32
    %c0_i32_0 = arith.constant 0 : i32
    %c0_i32_1 = arith.constant 0 : i32
    return %c0_i32, %c0_i32_0 : i32, i32
  }
  func.func @transform_7(%arg0: i32) -> (i32, i32) {
    %c0_i32 = arith.constant 0 : i32
    %c0_i32_0 = arith.constant 0 : i32
    return %arg0, %c0_i32 : i32, i32
  }
}

</mosaic_0001>

<bundles_post_ra>
// kernel: pe_conditional_transformer.9
= control target key start
LH: loop header
LB: loop body
LE: loop exit
PB: predicated region body
PF: predicated region fallthrough
CT: control target
= control target key end

     0   :  { %s740_s24 = smov 0   ;;  %s819_s0 = inlined_call_operand.vmem [shape: f32[48,64], index: 0, kind: input, shape index: {}]   ;;  %s820_s1 = inlined_call_operand.vmem [shape: bf16[64,128], index: 1, kind: input, shape index: {}]   ;;  %s821_s2 = inlined_call_operand.vmem [shape: f32[1,128], index: 2, kind: input, shape index: {}]   ;;  %s822_s3 = inlined_call_operand.vmem [shape: bf16[128,64], index: 3, kind: input, shape index: {}]   ;;  %s823_s4 = inlined_call_operand.vmem [shape: f32[1,64], index: 4, kind: input, shape index: {}]   ;;  %s824_s5 = inlined_call_operand.vmem [shape: f32[1,64], index: 5, kind: input, shape index: {}]   ;;  %s825_s6 = inlined_call_operand.vmem [shape: f32[1,64], index: 6, kind: input, shape index: {}]   ;;  %s826_s7 = inlined_call_operand.vmem [shape: f32[48,64], index: 7, kind: output, shape index: {}]  }
   0x1 LB: > { %s590_s25 = sadd.s32 4294967295, %s696_s24   ;;  %p594_p0 = scmp.ge.s32.totalorder %s696_s24, 1  ;;  %s696_s24 = sphi %s740_s24, %s17_s24  }
   0x2   : > { %p238_p1 = scmp.lt.s32.totalorder %s696_s24, 4 }
   0x4   : > { %p239_p2 = pnand %p594_p0, %p238_p1 }
   0x5   : > { %v674_v0 = vld [vmem:[%s820_s1] sm:$0xff] (!%p239_p2)   ;;  %v698_v1 = vmov (!%p239_p2), 0.0   ;;  %v675_v2 = vld [vmem:[%s820_s1 + $0x8] sm:$0xff] (!%p239_p2)   ;;  %vm699_vm0 = vmmov (!%p239_p2), 0   ;;  %s595_s30 = sshll.u32 (!%p239_p2), %s590_s25, 1  ;;  %v676_v4 = vld [vmem:[%s820_s1 + $0x10] sm:$0xff] (!%p239_p2)  }
   0x6   : > { %242 = sbr.rel (%p239_p2) target bundleno = 776 (0x308), region = 48  ;;  %632 = vmatprep.subr.bf16.mxu0 (!%p239_p2), %v698_v1  ;;  %644 = vmatprep.subr.bf16.mxu1 (!%p239_p2), %v698_v1  ;;  %p271_p3 = scmp.lt.s32.totalorder (!%p239_p2), %s595_s30, 5  ;;  %v678_v3 = vld [vmem:[%s822_s3] sm:$0xff] (!%p239_p2)   ;;  %v679_v5 = vld [vmem:[%s822_s3 + $0x8] sm:$0xff] (!%p239_p2)   ;;  %v677_v6 = vld [vmem:[%s820_s1 + $0x18] sm:$0xff] (!%p239_p2)   ;;  %vm325_vm1 = vcmask (!%p239_p2), 523264  }
   0x7   : > { %633 = vmatpush3.bf16.msra.mxu0 (!%p239_p2), %v674_v0  ;;  %640 = vmatprep.mubr.msk.bf16.mxu0 (!%p239_p2), %vm699_vm0, %v698_v1  ;;  %v680_v7 = vld [vmem:[%s822_s3 + $0x10] sm:$0xff] (!%p239_p2)   ;;  %v681_v11 = vld [vmem:[%s822_s3 + $0x18] sm:$0xff] (!%p239_p2)   ;;  %v682_v12 = vld [vmem:[%s822_s3 + $0x20] sm:$0xff] (!%p239_p2)  }
   0x8   : > { %634 = vmatprep.subr.bf16.mxu0 (!%p239_p2), %v698_v1  ;;  %660 = vmatprep.mubr.msk.bf16.mxu1 (!%p239_p2), %vm699_vm0, %v698_v1  ;;  %v683_v13 = vld [vmem:[%s822_s3 + $0x28] sm:$0xff] (!%p239_p2)   ;;  %v684_v14 = vld [vmem:[%s822_s3 + $0x30] sm:$0xff] (!%p239_p2)   ;;  %v685_v15 = vld [vmem:[%s822_s3 + $0x38] sm:$0xff] (!%p239_p2)  }
   0x9   : > { %645 = vmatpush3.bf16.msra.mxu1 (!%p239_p2), %v678_v3  ;;  %v599_v16 = vld [vmem:[%s821_s2] ss:$0 sm:$0xff] (!%p239_p2) }
   0xa   : > { %646 = vmatprep.subr.bf16.mxu1 (!%p239_p2), %v698_v1  ;;  %v605_v26 = vld [vmem:[%s823_s4] ss:$0 sm:$0xff] (!%p239_p2) }
   0xb   : > { %635 = vmatpush3.bf16.msra.mxu0 (!%p239_p2), %v675_v2  ;;  %v614_v54 = vld [vmem:[%s824_s5] ss:$0 sm:$0xff] (!%p239_p2) }
   0xc   : > { %636 = vmatprep.subr.bf16.mxu0 (!%p239_p2), %v698_v1  ;;  %v615_v56 = vld [vmem:[%s825_s6] ss:$0 sm:$0xff] (!%p239_p2) }
   0xd   : > { %s828_s30 = smov (!%p271_p3, %s595_s30), 5  ;;  %647 = vmatpush3.bf16.msra.mxu1 %v679_v5 }
   0xe   : > { %s596_s14 = sshll.u32 %s828_s30, 3  ;;  %648 = vmatprep.subr.bf16.mxu1 %v698_v1 }
   0xf   : > { %s274_s17 = scalar_lea.vmem %s819_s0, %s596_s14  ;;  %637 = vmatpush3.bf16.msra.mxu0 %v676_v4  ;;  %s280_s22 = scalar_lea.vmem %s826_s7, %s596_s14 }
  0x10   : > { %v283_v8 = vld [vmem:[%s274_s17] sm:$0xff]  ;;  %v284_v9 = vld [vmem:[%s274_s17 + $0x8] sm:$0xff]  ;;  %638 = vmatprep.subr.bf16.mxu0 %v698_v1 }
  0x11   : > { %v293_v10 = vpack.c.bf16 %v284_v9, %v283_v8  ;;  %649 = vmatpush3.bf16.msra.mxu1 %v680_v7 }
  0x12   : > { %650 = vmatprep.subr.bf16.mxu1 %v698_v1 }
  0x13   : > { %639 = vmatpush3.bf16.msra.mxu0 %v677_v6 }
  0x15   : > { %651 = vmatpush3.bf16.msra.mxu1 %v681_v11 }
  0x16   : > { %641 = vmatmul.mubr.msk.bf16.vlgmr.msra.gmra.mrb[0].mxu0 %vm325_vm1, %v293_v10  ;;  %652 = vmatprep.subr.bf16.mxu1 %v698_v1 }
  0x19   : > { %653 = vmatpush3.bf16.msra.mxu1 %v682_v12 }
  0x1a   : > { %654 = vmatprep.subr.bf16.mxu1 %v698_v1 }
  0x1d   : > { %655 = vmatpush3.bf16.msra.mxu1 %v683_v13 }
  0x1e   : > { %656 = vmatprep.subr.bf16.mxu1 %v698_v1 }
  0x21   : > { %657 = vmatpush3.bf16.msra.mxu1 %v684_v14 }
  0x22   : > { %658 = vmatprep.subr.bf16.mxu1 %v698_v1 }
  0x25   : > { %659 = vmatpush3.bf16.msra.mxu1 %v685_v15 }
  0xe9   : > { %v363_v17 = vpop.f32.mrb[0].mxu0 }
  0xea   : > { %v364_v18 = vadd.f32 %v599_v16, %v363_v17  ;;  %v642_v19 = vpop.f32.mrb[1].mxu0 }
  0xeb   : > { %v366_v20 = vpop.f32.mrb[2].mxu0 }
  0xec   : > { %v367_v21 = vadd.f32 %v599_v16, %v366_v20  ;;  %v643_v22 = vpop.f32.mrb[3].mxu0  ;;  %v370_v23 = vmax.f32 %v364_v18, 0.0 }
  0xee   : > { %v371_v24 = vmax.f32 %v367_v21, 0.0 }
  0xf0   : > { %v388_v25 = vpack.c.bf16 %v371_v24, %v370_v23 }
  0xf2   : > { %661 = vmatmul.mubr.bf16.vlgmr.msra.gmra.mrb[0].mxu1 %v388_v25 }
 0x1c5   : > { %v478_v27 = vpop.f32.mrb[0].mxu1 }
 0x1c6   : > { %v479_v28 = vadd.f32 %v605_v26, %v478_v27  ;;  %v662_v29 = vpop.f32.mrb[1].mxu1 }
 0x1c7   : > { %v481_v30 = vpop.f32.mrb[2].mxu1 }
 0x1c8   : > { %v482_v31 = vadd.f32 %v605_v26, %v481_v30  ;;  %v663_v32 = vpop.f32.mrb[3].mxu1  ;;  %v485_v33 = vadd.f32 %v479_v28, %v283_v8 }
 0x1ca   : > { %v489_v34 = vsel %vm325_vm1, %v485_v33, 0.0  ;;  %v486_v35 = vadd.f32 %v482_v31, %v284_v9 }
 0x1cb   : > { %490 = vadd.xlane.f32.xlu0 %v489_v34 }
 0x1cc   : > { %v492_v36 = vsel %vm325_vm1, %v486_v35, 0.0 }
 0x1cf   : > { %493 = vadd.xlane.f32.xlu0 %v492_v36 }
 0x258   : > { %v491_v37 = vpop.xlane.xlu0 %490 }
 0x259   : > { %v496_v38 = vmul.f32 0.015625, %v491_v37 }
 0x25b   : > { %v498_v39 = vsub.f32 %v485_v33, %v496_v38 }
 0x25c   : > { %v494_v40 = vpop.xlane.xlu0 %493 }
 0x25d   : > { %v497_v41 = vmul.f32 0.015625, %v494_v40  ;;  %v500_v42 = vmul.f32 %v498_v39, %v498_v39 }
 0x25f   : > { %v499_v43 = vsub.f32 %v486_v35, %v497_v41  ;;  %v502_v44 = vsel %vm325_vm1, %v500_v42, 0.0 }
 0x260   : > { %503 = vadd.xlane.f32.xlu1 %v502_v44 }
 0x261   : > { %v501_v45 = vmul.f32 %v499_v43, %v499_v43 }
 0x263   : > { %v505_v46 = vsel %vm325_vm1, %v501_v45, 0.0 }
 0x264   : > { %506 = vadd.xlane.f32.xlu1 %v505_v46 }
 0x2ed   : > { %v504_v47 = vpop.xlane.xlu1 %503 }
 0x2ee   : > { %v508_v48 = vmul.f32 0.015625, %v504_v47 }
 0x2f0   : > { %v510_v49 = vadd.f32 1e-05, %v508_v48 }
 0x2f1   : > { %v507_v50 = vpop.xlane.xlu1 %506 }
 0x2f2   : > { %686 = vrsqrt.f32 %v510_v49  ;;  %v509_v51 = vmul.f32 0.015625, %v507_v50 }
 0x2f4   : > { %v511_v52 = vadd.f32 1e-05, %v509_v51 }
 0x2f6   : > { %688 = vrsqrt.f32 %v511_v52 }
 0x2fc   : > { %v687_v53 = vpop.eup %686 }
 0x2fd   : > { %v514_v55 = vmul.f32 %v687_v53, %v498_v39 }
 0x2ff   : > { %v522_v57 = vmul.f32 %v614_v54, %v514_v55 }
 0x300   : > { %v689_v58 = vpop.eup %688 }
 0x301   : > { %v530_v59 = vadd.f32 %v615_v56, %v522_v57  ;;  %v515_v60 = vmul.f32 %v689_v58, %v499_v43 }
 0x303   : > { %532 = vst.msk [vmem:[%s280_s22] sm:$0xff] %vm325_vm1, %v530_v59  ;;  %v523_v61 = vmul.f32 %v614_v54, %v515_v60 }
 0x305   : > { %v531_v62 = vadd.f32 %v615_v56, %v523_v61 }
 0x307   : > { %533 = vst.msk [vmem:[%s280_s22 + $0x8] sm:$0xff] %vm325_vm1, %v531_v62 }
 0x308 PF: > { %s17_s24 = sadd.s32 1, %s696_s24  }
 0x309   : > { %p14_p4 = scmp.ge.s32.totalorder %s17_s24, 5  }
 0x30b   :  { %16 = sbr.rel (!%p14_p4) target bundleno = 1 (0x1), region = 78 }

// kernel: pe_conditional_transformer.11
= control target key start
LH: loop header
LB: loop body
LE: loop exit
PB: predicated region body
PF: predicated region fallthrough
CT: control target
= control target key end

     0   :  { %s740_s24 = smov 0   ;;  %s819_s0 = inlined_call_operand.vmem [shape: f32[32,64], index: 0, kind: input, shape index: {}]   ;;  %s820_s1 = inlined_call_operand.vmem [shape: bf16[64,128], index: 1, kind: input, shape index: {}]   ;;  %s821_s2 = inlined_call_operand.vmem [shape: f32[1,128], index: 2, kind: input, shape index: {}]   ;;  %s822_s3 = inlined_call_operand.vmem [shape: bf16[128,64], index: 3, kind: input, shape index: {}]   ;;  %s823_s4 = inlined_call_operand.vmem [shape: f32[1,64], index: 4, kind: input, shape index: {}]   ;;  %s824_s5 = inlined_call_operand.vmem [shape: f32[1,64], index: 5, kind: input, shape index: {}]   ;;  %s825_s6 = inlined_call_operand.vmem [shape: f32[1,64], index: 6, kind: input, shape index: {}]   ;;  %s826_s7 = inlined_call_operand.vmem [shape: f32[32,64], index: 7, kind: output, shape index: {}]  }
   0x1 LB: > { %s590_s25 = sadd.s32 4294967295, %s696_s24   ;;  %p594_p0 = scmp.ge.s32.totalorder %s696_s24, 1  ;;  %s696_s24 = sphi %s740_s24, %s17_s24  }
   0x2   : > { %p238_p1 = scmp.lt.s32.totalorder %s696_s24, 3 }
   0x4   : > { %p239_p2 = pnand %p594_p0, %p238_p1 }
   0x5   : > { %v674_v0 = vld [vmem:[%s820_s1] sm:$0xff] (!%p239_p2)   ;;  %v698_v1 = vmov (!%p239_p2), 0.0   ;;  %v675_v2 = vld [vmem:[%s820_s1 + $0x8] sm:$0xff] (!%p239_p2)   ;;  %vm699_vm0 = vmmov (!%p239_p2), 0   ;;  %s595_s30 = sshll.u32 (!%p239_p2), %s590_s25, 1  ;;  %v676_v4 = vld [vmem:[%s820_s1 + $0x10] sm:$0xff] (!%p239_p2)  }
   0x6   : > { %242 = sbr.rel (%p239_p2) target bundleno = 776 (0x308), region = 48  ;;  %632 = vmatprep.subr.bf16.mxu0 (!%p239_p2), %v698_v1  ;;  %644 = vmatprep.subr.bf16.mxu1 (!%p239_p2), %v698_v1  ;;  %p271_p3 = scmp.lt.s32.totalorder (!%p239_p2), %s595_s30, 3  ;;  %v678_v3 = vld [vmem:[%s822_s3] sm:$0xff] (!%p239_p2)   ;;  %v679_v5 = vld [vmem:[%s822_s3 + $0x8] sm:$0xff] (!%p239_p2)   ;;  %v677_v6 = vld [vmem:[%s820_s1 + $0x18] sm:$0xff] (!%p239_p2)   ;;  %vm325_vm1 = vcmask (!%p239_p2), 523264  }
   0x7   : > { %633 = vmatpush3.bf16.msra.mxu0 (!%p239_p2), %v674_v0  ;;  %640 = vmatprep.mubr.msk.bf16.mxu0 (!%p239_p2), %vm699_vm0, %v698_v1  ;;  %v680_v7 = vld [vmem:[%s822_s3 + $0x10] sm:$0xff] (!%p239_p2)   ;;  %v681_v11 = vld [vmem:[%s822_s3 + $0x18] sm:$0xff] (!%p239_p2)   ;;  %v682_v12 = vld [vmem:[%s822_s3 + $0x20] sm:$0xff] (!%p239_p2)  }
   0x8   : > { %634 = vmatprep.subr.bf16.mxu0 (!%p239_p2), %v698_v1  ;;  %660 = vmatprep.mubr.msk.bf16.mxu1 (!%p239_p2), %vm699_vm0, %v698_v1  ;;  %v683_v13 = vld [vmem:[%s822_s3 + $0x28] sm:$0xff] (!%p239_p2)   ;;  %v684_v14 = vld [vmem:[%s822_s3 + $0x30] sm:$0xff] (!%p239_p2)   ;;  %v685_v15 = vld [vmem:[%s822_s3 + $0x38] sm:$0xff] (!%p239_p2)  }
   0x9   : > { %645 = vmatpush3.bf16.msra.mxu1 (!%p239_p2), %v678_v3  ;;  %v599_v16 = vld [vmem:[%s821_s2] ss:$0 sm:$0xff] (!%p239_p2) }
   0xa   : > { %646 = vmatprep.subr.bf16.mxu1 (!%p239_p2), %v698_v1  ;;  %v605_v26 = vld [vmem:[%s823_s4] ss:$0 sm:$0xff] (!%p239_p2) }
   0xb   : > { %635 = vmatpush3.bf16.msra.mxu0 (!%p239_p2), %v675_v2  ;;  %v614_v54 = vld [vmem:[%s824_s5] ss:$0 sm:$0xff] (!%p239_p2) }
   0xc   : > { %636 = vmatprep.subr.bf16.mxu0 (!%p239_p2), %v698_v1  ;;  %v615_v56 = vld [vmem:[%s825_s6] ss:$0 sm:$0xff] (!%p239_p2) }
   0xd   : > { %s828_s30 = smov (!%p271_p3, %s595_s30), 3  ;;  %647 = vmatpush3.bf16.msra.mxu1 %v679_v5 }
   0xe   : > { %s596_s14 = sshll.u32 %s828_s30, 3  ;;  %648 = vmatprep.subr.bf16.mxu1 %v698_v1 }
   0xf   : > { %s274_s17 = scalar_lea.vmem %s819_s0, %s596_s14  ;;  %637 = vmatpush3.bf16.msra.mxu0 %v676_v4  ;;  %s280_s22 = scalar_lea.vmem %s826_s7, %s596_s14 }
  0x10   : > { %v283_v8 = vld [vmem:[%s274_s17] sm:$0xff]  ;;  %v284_v9 = vld [vmem:[%s274_s17 + $0x8] sm:$0xff]  ;;  %638 = vmatprep.subr.bf16.mxu0 %v698_v1 }
  0x11   : > { %v293_v10 = vpack.c.bf16 %v284_v9, %v283_v8  ;;  %649 = vmatpush3.bf16.msra.mxu1 %v680_v7 }
  0x12   : > { %650 = vmatprep.subr.bf16.mxu1 %v698_v1 }
  0x13   : > { %639 = vmatpush3.bf16.msra.mxu0 %v677_v6 }
  0x15   : > { %651 = vmatpush3.bf16.msra.mxu1 %v681_v11 }
  0x16   : > { %641 = vmatmul.mubr.msk.bf16.vlgmr.msra.gmra.mrb[0].mxu0 %vm325_vm1, %v293_v10  ;;  %652 = vmatprep.subr.bf16.mxu1 %v698_v1 }
  0x19   : > { %653 = vmatpush3.bf16.msra.mxu1 %v682_v12 }
  0x1a   : > { %654 = vmatprep.subr.bf16.mxu1 %v698_v1 }
  0x1d   : > { %655 = vmatpush3.bf16.msra.mxu1 %v683_v13 }
  0x1e   : > { %656 = vmatprep.subr.bf16.mxu1 %v698_v1 }
  0x21   : > { %657 = vmatpush3.bf16.msra.mxu1 %v684_v14 }
  0x22   : > { %658 = vmatprep.subr.bf16.mxu1 %v698_v1 }
  0x25   : > { %659 = vmatpush3.bf16.msra.mxu1 %v685_v15 }
  0xe9   : > { %v363_v17 = vpop.f32.mrb[0].mxu0 }
  0xea   : > { %v364_v18 = vadd.f32 %v599_v16, %v363_v17  ;;  %v642_v19 = vpop.f32.mrb[1].mxu0 }
  0xeb   : > { %v366_v20 = vpop.f32.mrb[2].mxu0 }
  0xec   : > { %v367_v21 = vadd.f32 %v599_v16, %v366_v20  ;;  %v643_v22 = vpop.f32.mrb[3].mxu0  ;;  %v370_v23 = vmax.f32 %v364_v18, 0.0 }
  0xee   : > { %v371_v24 = vmax.f32 %v367_v21, 0.0 }
  0xf0   : > { %v388_v25 = vpack.c.bf16 %v371_v24, %v370_v23 }
  0xf2   : > { %661 = vmatmul.mubr.bf16.vlgmr.msra.gmra.mrb[0].mxu1 %v388_v25 }
 0x1c5   : > { %v478_v27 = vpop.f32.mrb[0].mxu1 }
 0x1c6   : > { %v479_v28 = vadd.f32 %v605_v26, %v478_v27  ;;  %v662_v29 = vpop.f32.mrb[1].mxu1 }
 0x1c7   : > { %v481_v30 = vpop.f32.mrb[2].mxu1 }
 0x1c8   : > { %v482_v31 = vadd.f32 %v605_v26, %v481_v30  ;;  %v663_v32 = vpop.f32.mrb[3].mxu1  ;;  %v485_v33 = vadd.f32 %v479_v28, %v283_v8 }
 0x1ca   : > { %v489_v34 = vsel %vm325_vm1, %v485_v33, 0.0  ;;  %v486_v35 = vadd.f32 %v482_v31, %v284_v9 }
 0x1cb   : > { %490 = vadd.xlane.f32.xlu0 %v489_v34 }
 0x1cc   : > { %v492_v36 = vsel %vm325_vm1, %v486_v35, 0.0 }
 0x1cf   : > { %493 = vadd.xlane.f32.xlu0 %v492_v36 }
 0x258   : > { %v491_v37 = vpop.xlane.xlu0 %490 }
 0x259   : > { %v496_v38 = vmul.f32 0.015625, %v491_v37 }
 0x25b   : > { %v498_v39 = vsub.f32 %v485_v33, %v496_v38 }
 0x25c   : > { %v494_v40 = vpop.xlane.xlu0 %493 }
 0x25d   : > { %v497_v41 = vmul.f32 0.015625, %v494_v40  ;;  %v500_v42 = vmul.f32 %v498_v39, %v498_v39 }
 0x25f   : > { %v499_v43 = vsub.f32 %v486_v35, %v497_v41  ;;  %v502_v44 = vsel %vm325_vm1, %v500_v42, 0.0 }
 0x260   : > { %503 = vadd.xlane.f32.xlu1 %v502_v44 }
 0x261   : > { %v501_v45 = vmul.f32 %v499_v43, %v499_v43 }
 0x263   : > { %v505_v46 = vsel %vm325_vm1, %v501_v45, 0.0 }
 0x264   : > { %506 = vadd.xlane.f32.xlu1 %v505_v46 }
 0x2ed   : > { %v504_v47 = vpop.xlane.xlu1 %503 }
 0x2ee   : > { %v508_v48 = vmul.f32 0.015625, %v504_v47 }
 0x2f0   : > { %v510_v49 = vadd.f32 1e-05, %v508_v48 }
 0x2f1   : > { %v507_v50 = vpop.xlane.xlu1 %506 }
 0x2f2   : > { %686 = vrsqrt.f32 %v510_v49  ;;  %v509_v51 = vmul.f32 0.015625, %v507_v50 }
 0x2f4   : > { %v511_v52 = vadd.f32 1e-05, %v509_v51 }
 0x2f6   : > { %688 = vrsqrt.f32 %v511_v52 }
 0x2fc   : > { %v687_v53 = vpop.eup %686 }
 0x2fd   : > { %v514_v55 = vmul.f32 %v687_v53, %v498_v39 }
 0x2ff   : > { %v522_v57 = vmul.f32 %v614_v54, %v514_v55 }
 0x300   : > { %v689_v58 = vpop.eup %688 }
 0x301   : > { %v530_v59 = vadd.f32 %v615_v56, %v522_v57  ;;  %v515_v60 = vmul.f32 %v689_v58, %v499_v43 }
 0x303   : > { %532 = vst.msk [vmem:[%s280_s22] sm:$0xff] %vm325_vm1, %v530_v59  ;;  %v523_v61 = vmul.f32 %v614_v54, %v515_v60 }
 0x305   : > { %v531_v62 = vadd.f32 %v615_v56, %v523_v61 }
 0x307   : > { %533 = vst.msk [vmem:[%s280_s22 + $0x8] sm:$0xff] %vm325_vm1, %v531_v62 }
 0x308 PF: > { %s17_s24 = sadd.s32 1, %s696_s24  }
 0x309   : > { %p14_p4 = scmp.ge.s32.totalorder %s17_s24, 4  }
 0x30b   :  { %16 = sbr.rel (!%p14_p4) target bundleno = 1 (0x1), region = 78 }

// kernel: pe_conditional_transformer.8
= control target key start
LH: loop header
LB: loop body
LE: loop exit
PB: predicated region body
PF: predicated region fallthrough
CT: control target
= control target key end

     0   :  { %s2451_s29 = smov 0   ;;  %s2453_s30 = smov 0   ;;  %s2701_s0 = inlined_call_operand.vmem [shape: f32[2,24,64], index: 0, kind: input, shape index: {}]   ;;  %s2702_s1 = inlined_call_operand.vmem [shape: f32[2,24,64], index: 1, kind: input, shape index: {}]   ;;  %s2703_s2 = inlined_call_operand.vmem [shape: f32[2,20,64], index: 2, kind: input, shape index: {}]   ;;  %s2704_s3 = inlined_call_operand.vmem [shape: f32[2,20,64], index: 3, kind: input, shape index: {}]   ;;  %s2705_s4 = inlined_call_operand.vmem [shape: bf16[64,64], index: 4, kind: input, shape index: {}]   ;;  %s2706_s5 = inlined_call_operand.vmem [shape: f32[1,64], index: 5, kind: input, shape index: {}]   ;;  %s2707_s6 = inlined_call_operand.vmem [shape: bf16[64,128], index: 6, kind: input, shape index: {}]   ;;  %s2708_s7 = inlined_call_operand.vmem [shape: f32[1,128], index: 7, kind: input, shape index: {}]   ;;  %s2709_s8 = inlined_call_operand.vmem [shape: bf16[64,64], index: 8, kind: input, shape index: {}]   ;;  %s2710_s9 = inlined_call_operand.vmem [shape: f32[1,64], index: 9, kind: input, shape index: {}]   ;;  %s2711_s10 = inlined_call_operand.vmem [shape: bf16[64,64], index: 10, kind: input, shape index: {}]   ;;  %s2712_s11 = inlined_call_operand.vmem [shape: f32[1,64], index: 11, kind: input, shape index: {}]   ;;  %s2713_s12 = inlined_call_operand.vmem [shape: f32[1,64], index: 12, kind: input, shape index: {}]   ;;  %s2714_s13 = inlined_call_operand.vmem [shape: f32[1,64], index: 13, kind: input, shape index: {}]   ;;  %s2715_s14 = inlined_call_operand.vmem [shape: f32[2,24,64], index: 14, kind: output, shape index: {}]  }
   0x1   :  { %s2455_s15 = smov 0   ;;  %s2457_s16 = smov 0  }
   0x2   :  { %s2459_s17 = smov 0  }
   0x3 LB: > { %2718 = sst [smem:[#allocation2_spill]] %s2355_s15  ;;  %s33_s18 = sadd.s32 1, %s2355_s15  ;;  %s2363_s17 = sphi %s2459_s17, %s24_s17   ;;  %s2359_s16 = sphi %s2457_s16, %s2725_s16   ;;  %s2355_s15 = sphi %s2455_s15, %s2724_s15   ;;  %s2351_s30 = sphi %s2453_s30, %s2723_s30   ;;  %s2347_s29 = sphi %s2451_s29, %s2722_s29  }
   0x4   : > { %2719 = sst [smem:[#allocation3_spill]] %s2359_s16  ;;  %s36_s19 = sadd.s32 1, %s2359_s16 }
   0x5   : > { %p34_p0 = scmp.ge.s32.totalorder %s33_s18, 3  ;;  %p2039_p1 = scmp.ge.s32.totalorder %s2363_s17, 1 }
   0x6   : > { %p466_p2 = scmp.lt.s32.totalorder %s2363_s17, 7 }
   0x7   : > { %s2727_s18 = smov (%p34_p0, %s33_s18), 0  ;;  %s2729_s19 = smov (!%p34_p0, %s36_s19), %s2359_s16 }
   0x8   : > { %2720 = sst [smem:[#allocation4_spill]] %s2727_s18  ;;  %p467_p3 = pnand %p2039_p1, %p466_p2 }
   0x9   : > { %p38_p4 = scmp.ge.s32.totalorder %s2729_s19, 2  ;;  %v2291_v0 = vld [vmem:[%s2705_s4] sm:$0xff] (!%p467_p3)   ;;  %v2365_v1 = vmov (!%p467_p3), 0.0   ;;  %v2293_v3 = vld [vmem:[%s2705_s4 + $0x8] sm:$0xff] (!%p467_p3)   ;;  %vm2366_vm0 = vmmov (!%p467_p3), 0   ;;  %p536_p5 = scmp.lt.s32.totalorder (!%p467_p3), %s2351_s30, 1 }
   0xa   : > { %470 = sbr.rel (%p467_p3) target bundleno = 2112 (0x840), region = 76  ;;  %2129 = vmatprep.subr.bf16.mxu0 (!%p467_p3), %v2365_v1  ;;  %2141 = vmatprep.subr.bf16.mxu1 (!%p467_p3), %v2365_v1  ;;  %v2292_v2 = vld [vmem:[%s2709_s8] sm:$0xff] (!%p467_p3)   ;;  %v2294_v4 = vld [vmem:[%s2709_s8 + $0x8] sm:$0xff] (!%p467_p3)   ;;  %p538_p6 = scmp.lt.s32.totalorder (!%p467_p3), %s2347_s29, 2  ;;  %v2295_v5 = vld [vmem:[%s2705_s4 + $0x10] sm:$0xff] (!%p467_p3)   ;;  %vm619_vm1 = vcmask (!%p467_p3), 523264  }
   0xb   : > { %s2731_s19 = smov (%p38_p4, %s2729_s19), 0  ;;  %2130 = vmatpush3.bf16.msra.mxu0 (!%p467_p3), %v2291_v0  ;;  %2137 = vmatprep.mubr.msk.bf16.mxu0 (!%p467_p3), %vm2366_vm0, %v2365_v1  ;;  %v2296_v6 = vld [vmem:[%s2709_s8 + $0x10] sm:$0xff] (!%p467_p3)   ;;  %v2297_v7 = vld [vmem:[%s2705_s4 + $0x18] sm:$0xff] (!%p467_p3)   ;;  %v2299_v9 = vld [vmem:[%s2707_s6] sm:$0xff] (!%p467_p3)   ;;  %s2367_s16 = smov (!%p467_p3), 96   ;;  %vm1013_vm2 = vcmask (!%p467_p3), 130048  }
   0xc   : > { %2721 = sst [smem:[#allocation5_spill]] %s2731_s19  ;;  %2142 = vmatpush3.bf16.msra.mxu1 (!%p467_p3), %v2292_v2  ;;  %2131 = vmatprep.subr.bf16.mxu0 (!%p467_p3), %v2365_v1  ;;  %v2298_v8 = vld [vmem:[%s2709_s8 + $0x18] sm:$0xff] (!%p467_p3)   ;;  %v2300_v16 = vld [vmem:[%s2707_s6 + $0x8] sm:$0xff] (!%p467_p3)   ;;  %v2301_v21 = vld [vmem:[%s2707_s6 + $0x10] sm:$0xff] (!%p467_p3)   ;;  %s2370_s20 = smov (!%p467_p3), 64   ;;  %vm1186_vm3 = vcmask (!%p467_p3), 162816  }
   0xd   : > { %2143 = vmatprep.subr.bf16.mxu1 (!%p467_p3), %v2365_v1  ;;  %2149 = vmatprep.mubr.msk.bf16.mxu1 (!%p467_p3), %vm2366_vm0, %v2365_v1  ;;  %v2302_v22 = vld [vmem:[%s2707_s6 + $0x18] sm:$0xff] (!%p467_p3)   ;;  %v2045_v27 = vld [vmem:[%s2706_s5] ss:$0 sm:$0xff] (!%p467_p3)  ;;  %s2374_s15 = smov (!%p467_p3), 16   ;;  %vm1788_vm4 = vcmask (!%p467_p3), 261120   ;;  %vm1790_vm5 = vcmask (!%p467_p3), 392192  }
   0xe   : > { %v2057_v38 = vld [vmem:[%s2708_s7] ss:$0 sm:$0xff] (!%p467_p3) }
   0xf   : > { %2132 = vmatpush3.bf16.msra.mxu0 (!%p467_p3), %v2293_v3  ;;  %v2056_v40 = vld [vmem:[%s2710_s9] ss:$0 sm:$0xff] (!%p467_p3) }
  0x10   : > { %2144 = vmatpush3.bf16.msra.mxu1 (!%p467_p3), %v2294_v4  ;;  %2133 = vmatprep.subr.bf16.mxu0 (!%p467_p3), %v2365_v1 }
  0x11   : > { %s2733_s30 = smov (!%p536_p5, %s2351_s30), 1  ;;  %s2735_s29 = smov (!%p538_p6, %s2347_s29), 2  ;;  %2145 = vmatprep.subr.bf16.mxu1 %v2365_v1 }
  0x12   : > { %s2237_s21 = smul.u32 3, %s2733_s30 }
  0x13   : > { %s2238_s27 = smul.u32 24, %s2733_s30  ;;  %2134 = vmatpush3.bf16.msra.mxu0 %v2295_v5 }
  0x14   : > { %s541_s26 = sadd.s32 %s2237_s21, %s2735_s29  ;;  %2146 = vmatpush3.bf16.msra.mxu1 %v2296_v6  ;;  %2135 = vmatprep.subr.bf16.mxu0 %v2365_v1 }
  0x15   : > { %s2523_s28 = sshll.u32 %s541_s26, 3  ;;  %s2542_s24 = scalar_lea.vmem %s2703_s2, %s2238_s27  ;;  %2147 = vmatprep.subr.bf16.mxu1 %v2365_v1 }
  0x16   : > { %s543_s23 = scalar_lea.vmem %s2701_s0, %s2523_s28  ;;  %s551_s18 = scalar_lea.vmem %s2702_s1, %s2523_s28  ;;  %v573_v13 = vld [vmem:[%s2542_s24] sm:$0xff]  ;;  %v574_v14 = vld [vmem:[%s2542_s24 + $0x8] sm:$0xff]  ;;  %v575_v23 = vld [vmem:[%s2542_s24 + $0x10] sm:$0xf] }
  0x17   : > { %v2533_v10 = vld [vmem:[%s543_s23] sm:$0xff]  ;;  %s2548_s25 = scalar_lea.vmem %s2704_s3, %s2238_s27  ;;  %2136 = vmatpush3.bf16.msra.mxu0 %v2297_v7  ;;  %v756_v19 = vpack.c.bf16 %v574_v14, %v573_v13  ;;  %v757_v25 = vpack.c.bf16 %v575_v23, %v575_v23  ;;  %s2369_s26 = smov 80  }
  0x18   : > { %v572_v11 = vld [vmem:[%s551_s18] sm:$0xff]  ;;  %v587_v12 = vpack.c.bf16 %v2533_v10, %v2533_v10  ;;  %v577_v18 = vld [vmem:[%s2548_s25 + $0x8] sm:$0xff]  ;;  %2148 = vmatpush3.bf16.msra.mxu1 %v2298_v8  ;;  %2153 = vmatprep.subr.bf16.mxu0 %v2299_v9  ;;  %v578_v24 = vld [vmem:[%s2548_s25 + $0x10] sm:$0xf]  ;;  %s2373_s24 = smov 32   ;;  %s569_s18 = scalar_lea.vmem %s2715_s14, %s2523_s28 }
  0x19   : > { %v671_v15 = vpack.c.bf16 %v572_v11, %v572_v11  ;;  %v576_v17 = vld [vmem:[%s2548_s25] sm:$0xff]  ;;  %2165 = vmatprep.subr.bf16.mxu1 %v2292_v2  ;;  %v844_v26 = vpack.c.bf16 %v578_v24, %v578_v24  ;;  %s2368_s25 = smov 112  }
  0x1a   : > { %2138 = vmatmul.mubr.msk.bf16.vlgmr.msra.gmra.mrb[0].mxu0 %vm619_vm1, %v587_v12  ;;  %v843_v20 = vpack.c.bf16 %v577_v18, %v576_v17 }
  0x1b   : > { %2150 = vmatmul.mubr.msk.bf16.vlgmr.msra.gmra.mrb[0].mxu1 %vm619_vm1, %v671_v15  ;;  %2154 = vmatpush3.bf16.msra.mxu0 %v2299_v9 }
  0x1c   : > { %2166 = vmatpush3.bf16.msra.mxu1 %v2292_v2  ;;  %2155 = vmatprep.subr.bf16.mxu0 %v2300_v16 }
  0x1d   : > { %2167 = vmatprep.subr.bf16.mxu1 %v2294_v4  ;;  %2161 = vmatprep.mubr.msk.bf16.mxu0 %vm619_vm1, %v756_v19 }
  0x1e   : > { %2173 = vmatprep.mubr.msk.bf16.mxu1 %vm619_vm1, %v843_v20 }
  0x1f   : > { %2156 = vmatpush3.bf16.msra.mxu0 %v2300_v16 }
  0x20   : > { %2168 = vmatpush3.bf16.msra.mxu1 %v2294_v4  ;;  %2157 = vmatprep.subr.bf16.mxu0 %v2301_v21 }
  0x21   : > { %2169 = vmatprep.subr.bf16.mxu1 %v2296_v6 }
  0x23   : > { %2158 = vmatpush3.bf16.msra.mxu0 %v2301_v21 }
  0x24   : > { %2170 = vmatpush3.bf16.msra.mxu1 %v2296_v6  ;;  %2159 = vmatprep.subr.bf16.mxu0 %v2302_v22 }
  0x25   : > { %2171 = vmatprep.subr.bf16.mxu1 %v2298_v8 }
  0x27   : > { %2160 = vmatpush3.bf16.msra.mxu0 %v2302_v22 }
  0x28   : > { %2172 = vmatpush3.bf16.msra.mxu1 %v2298_v8  ;;  %2189 = vmatprep.subr.bf16.mxu0 %v2365_v1 }
  0x29   : > { %2177 = vmatprep.subr.bf16.mxu1 %v2365_v1 }
  0x2a   : > { %2162 = vmatmul.mubr.msk.bf16.vlgmr.msra.gmra.mrb[4].mxu0 %vm619_vm1, %v757_v25 }
  0x2b   : > { %2174 = vmatmul.mubr.msk.bf16.vlgmr.msra.gmra.mrb[4].mxu1 %vm619_vm1, %v844_v26  ;;  %2191 = vmatprep.mubr.msk.bf16.mxu0 %vm2366_vm0, %v2365_v1 }
  0x2c   : > { %2179 = vmatprep.mubr.msk.bf16.mxu1 %vm2366_vm0, %v2365_v1 }
  0xed   : > { %v657_v28 = vpop.f32.mrb[0].mxu0 }
  0xee   : > { %v658_v29 = vadd.f32 %v2045_v27, %v657_v28  ;;  %v733_v30 = vpop.f32.mrb[0].mxu1  ;;  %v2139_v31 = vpop.f32.mrb[1].mxu0 }
  0xef   : > { %v2151_v32 = vpop.f32.mrb[1].mxu1  ;;  %v660_v33 = vpop.f32.mrb[2].mxu0 }
  0xf0   : > { %v739_v34 = vadd.f32 %v733_v30, %v658_v29  ;;  %v736_v35 = vpop.f32.mrb[2].mxu1  ;;  %v2140_v36 = vpop.f32.mrb[3].mxu0 }
  0xf1   : > { %v2152_v37 = vpop.f32.mrb[3].mxu1 }
  0xf2   : > { %v747_v59 = vadd.f32 %v2056_v40, %v739_v34 }
  0xf4   : > { %v902_v61 = vmul.f32 0.25, %v747_v59 }
  0xf6   : > { %v903_v62 = vpack.c.bf16 %v902_v61, %v902_v61 }
  0xfd   : > { %v2163_v39 = vpop.f32.mrb[4].mxu0 }
  0xfe   : > { %v838_v41 = vadd.f32 %v2163_v39, %v2057_v38  ;;  %v2175_v42 = vpop.f32.mrb[4].mxu1  ;;  %v829_v43 = vpop.f32.mrb[5].mxu0 }
  0xff   : > { %v894_v44 = vadd.f32 %v2175_v42, %v2056_v40  ;;  %v830_v45 = vadd.f32 %v2057_v38, %v829_v43  ;;  %v885_v46 = vpop.f32.mrb[5].mxu1  ;;  %v2164_v47 = vpop.f32.mrb[6].mxu0 }
 0x100   : > { %v886_v48 = vadd.f32 %v2056_v40, %v885_v46  ;;  %v2176_v49 = vpop.f32.mrb[6].mxu1  ;;  %v832_v50 = vpop.f32.mrb[7].mxu0  ;;  %v934_v5 = vpack.c.bf16 %v838_v41, %v838_v41 }
 0x101   : > { %v901_v51 = vadd.f32 %v894_v44, %v838_v41  ;;  %v833_v52 = vadd.f32 %v2057_v38, %v832_v50  ;;  %v888_v53 = vpop.f32.mrb[7].mxu1 }
 0x102   : > { %v899_v54 = vadd.f32 %v886_v48, %v830_v45  ;;  %v889_v55 = vadd.f32 %v2056_v40, %v888_v53 }
 0x103   : > { %v933_v56 = vpack.c.bf16 %v833_v52, %v830_v45  ;;  %v912_v60 = vpack.c.bf16 %v901_v51, %v901_v51 }
 0x104   : > { %v900_v57 = vadd.f32 %v889_v55, %v833_v52 }
 0x106   : > { %v911_v58 = vpack.c.bf16 %v900_v57, %v899_v54 }
 0x108   : > { %921 = vrot.lane.b32.xlu1 %v911_v58, %s2367_s16  ;;  %915 = vrot.lane.b32.xlu0 %v911_v58, %s2368_s25 }
 0x10c   : > { %927 = vrot.lane.b32.xlu1 %v911_v58, %s2369_s26  ;;  %917 = vrot.lane.b32.xlu0 %v912_v60, %s2368_s25 }
 0x110   : > { %929 = vrot.lane.b32.xlu1 %v912_v60, %s2369_s26  ;;  %923 = vrot.lane.b32.xlu0 %v912_v60, %s2367_s16 }
 0x114   : > { %907 = vrot.lane.b32.xlu1 %v903_v62, %s2367_s16  ;;  %905 = vrot.lane.b32.xlu0 %v903_v62, %s2368_s25 }
 0x118   : > { %909 = vrot.lane.b32.xlu0 %v903_v62, %s2369_s26 }
 0x137   : > { %949 = vxpose.xlu1.c.b16.start [1/2] (short) (narrow) %v911_v58, 16 }
 0x13b   : > { %950 = vxpose.xlu1.c.b16.end [2/2] (short) (narrow) %v912_v60, 16 }
 0x17a   : > { %v922_v63 = vpop.permute.xlu1 %921  ;;  %v916_v0 = vpop.permute.xlu0 %915 }
 0x17b   : > { %965 = vxpose.xlu0.c.b16.start [1/2] (short) (narrow) %v916_v0, 16 }
 0x17e   : > { %v928_v2 = vpop.permute.xlu1 %927  ;;  %v918_v3 = vpop.permute.xlu0 %917 }
 0x17f   : > { %997 = vxpose.xlu1.c.b16.start [1/2] (short) (narrow) %v928_v2, 16  ;;  %966 = vxpose.xlu0.c.b16.end [2/2] (short) (narrow) %v918_v3, 16 }
 0x182   : > { %v930_v4 = vpop.permute.xlu1 %929  ;;  %v924_v6 = vpop.permute.xlu0 %923 }
 0x183   : > { %998 = vxpose.xlu1.c.b16.end [2/2] (short) (narrow) %v930_v4, 16  ;;  %981 = vxpose.xlu0.c.b16.start [1/2] (short) (narrow) %v922_v63, 16 }
 0x186   : > { %v908_v7 = vpop.permute.xlu1 %907  ;;  %v906_v9 = vpop.permute.xlu0 %905 }
 0x187   : > { %939 = vrot.lane.b32.xlu1 %v934_v5, %s2368_s25  ;;  %982 = vxpose.xlu0.c.b16.end [2/2] (short) (narrow) %v924_v6, 16 }
 0x18a   : > { %v910_v11 = vpop.permute.xlu0 %909 }
 0x18b   : > { %941 = vrot.lane.b32.xlu1 %v933_v56, %s2367_s16 }
 0x18f   : > { %943 = vrot.lane.b32.xlu1 %v934_v5, %s2367_s16  ;;  %s2375_s16 = smov 48  }
 0x190   : > { %937 = vrot.lane.b32.xlu0 %v933_v56, %s2368_s25 }
 0x193   : > { %1235 = vrot.lane.b32.xlu1 %v933_v56, %s2370_s20 }
 0x194   : > { %945 = vrot.lane.b32.xlu0 %v933_v56, %s2369_s26 }
 0x197   : > { %1237 = vrot.lane.b32.xlu1 %v934_v5, %s2370_s20 }
 0x198   : > { %947 = vrot.lane.b32.xlu0 %v934_v5, %s2369_s26 }
 0x19d   : > { %v957_v8 = vpop.trf.xlu1 }
 0x19e   : > { %2178 = vmatpush3.bf16.msra.mxu1 %v957_v8 }
 0x19f   : > { %2183 = vmatprep.subr.bf16.mxu1 %v2365_v1 }
 0x1a1   : > { %2180 = vmatmul.mubr.msk.bf16.vlgmr.msra.gmra.mrb[8].mxu1 %vm1013_vm2, %v903_v62 }
 0x1a2   : > { %2185 = vmatprep.mubr.msk.bf16.mxu1 %vm2366_vm0, %v2365_v1 }
 0x1e1   : > { %v973_v12 = vpop.trf.xlu0 }
 0x1e2   : > { %2184 = vmatpush3.bf16.msra.mxu1 %v973_v12 }
 0x1e3   : > { %2195 = vmatprep.subr.bf16.mxu1 %v2365_v1 }
 0x1e5   : > { %2186 = vmatmul.mubr.msk.bf16.vlgmr.msra.gmra.mrb[12].mxu1 %vm1013_vm2, %v906_v9  ;;  %v1005_v13 = vpop.trf.xlu1 }
 0x1e6   : > { %2196 = vmatpush3.bf16.msra.mxu1 %v1005_v13  ;;  %2197 = vmatprep.mubr.msk.bf16.mxu1 %vm2366_vm0, %v2365_v1 }
 0x1e7   : > { %2207 = vmatprep.subr.bf16.mxu1 %v2365_v1 }
 0x1e9   : > { %v989_v14 = vpop.trf.xlu0 }
 0x1ea   : > { %2190 = vmatpush3.bf16.msra.mxu0 %v989_v14 }
 0x1eb   : > { %2201 = vmatprep.subr.bf16.mxu0 %v2365_v1 }
 0x1ed   : > { %2192 = vmatmul.mubr.msk.bf16.vlgmr.msra.gmra.mrb[8].mxu0 %vm1013_vm2, %v908_v7  ;;  %2198 = vmatmul.mubr.msk.bf16.vlgmr.msra.gmra.mrb[16].mxu1 %vm1013_vm2, %v910_v11 }
 0x1ee   : > { %2203 = vmatprep.mubr.msk.bf16.mxu0 %vm2366_vm0, %v2365_v1  ;;  %2209 = vmatprep.mubr.msk.bf16.mxu1 %vm2366_vm0, %v2365_v1 }
 0x1f9   : > { %v940_v16 = vpop.permute.xlu1 %939 }
 0x1fd   : > { %v942_v38 = vpop.permute.xlu1 %941 }
 0x201   : > { %v944_v47 = vpop.permute.xlu1 %943 }
 0x202   : > { %v938_v15 = vpop.permute.xlu0 %937 }
 0x203   : > { %1239 = vrot.lane.b32.xlu0 %v938_v15, %s2370_s20 }
 0x205   : > { %v1236_v48 = vpop.permute.xlu1 %1235 }
 0x206   : > { %v946_v37 = vpop.permute.xlu0 %945 }
 0x207   : > { %1241 = vrot.lane.b32.xlu0 %v940_v16, %s2370_s20 }
 0x209   : > { %v1238_v49 = vpop.permute.xlu1 %1237 }
 0x20a   : > { %v948_v39 = vpop.permute.xlu0 %947 }
 0x274   : > { %v1051_v17 = vpop.f32.mrb[8].mxu1 }
 0x275   : > { %v2181_v18 = vpop.f32.mrb[9].mxu1  ;;  %v1187_v19 = vsel %vm1186_vm3, %v1051_v17, -inf  ;;  %v1240_v40 = vpop.permute.xlu0 %1239 }
 0x276   : > { %v1054_v20 = vpop.f32.mrb[10].mxu1  ;;  %1188 = vmax.xlane.f32.xlu0 %v1187_v19 }
 0x277   : > { %v2182_v21 = vpop.f32.mrb[11].mxu1 }
 0x279   : > { %v1242_v41 = vpop.permute.xlu0 %1241 }
 0x2b8   : > { %v1094_v22 = vpop.f32.mrb[12].mxu1 }
 0x2b9   : > { %v2187_v23 = vpop.f32.mrb[13].mxu1  ;;  %v1190_v24 = vsel %vm1186_vm3, %v1094_v22, -inf }
 0x2ba   : > { %1191 = vmax.xlane.f32.xlu1 %v1190_v24  ;;  %v1097_v25 = vpop.f32.mrb[14].mxu1 }
 0x2bb   : > { %v2188_v26 = vpop.f32.mrb[15].mxu1 }
 0x2c0   : > { %v1137_v27 = vpop.f32.mrb[8].mxu0  ;;  %v1180_v28 = vpop.f32.mrb[16].mxu1 }
 0x2c1   : > { %v2193_v29 = vpop.f32.mrb[9].mxu0  ;;  %v2199_v30 = vpop.f32.mrb[17].mxu1  ;;  %v1196_v31 = vsel %vm1186_vm3, %v1180_v28, -inf  ;;  %v1193_v32 = vsel %vm1186_vm3, %v1137_v27, -inf }
 0x2c2   : > { %1197 = vmax.xlane.f32.xlu1 %v1196_v31  ;;  %v1140_v33 = vpop.f32.mrb[10].mxu0  ;;  %v1183_v34 = vpop.f32.mrb[18].mxu1  ;;  %1194 = vmax.xlane.f32.xlu0 %v1193_v32 }
 0x2c3   : > { %v2194_v35 = vpop.f32.mrb[11].mxu0  ;;  %v2200_v36 = vpop.f32.mrb[19].mxu1 }
 0x2d3   : > { %1247 = vrot.lane.b32.xlu1 %v946_v37, %s2370_s20 }
 0x2d8   : > { %1243 = vrot.lane.b32.xlu0 %v942_v38, %s2370_s20 }
 0x303   : > { %v1189_v42 = vpop.xlane.xlu0 %1188 }
 0x304   : > { %v1199_v43 = vsub.f32 %v1051_v17, %v1189_v42 }
 0x306   : > { %v1203_v44 = vmul.f32 1.442695, %v1199_v43 }
 0x308   : > { %2307 = vpow2.f32 %v1203_v44 }
 0x312   : > { %v2308_v45 = vpop.eup %2307 }
 0x313   : > { %v1211_v46 = vsel %vm1186_vm3, %v2308_v45, 0.0 }
 0x314   : > { %1212 = vadd.xlane.f32.xlu1 %v1211_v46 }
 0x325   : > { %1245 = vrot.lane.b32.xlu1 %v944_v47, %s2370_s20  ;;  %v2303_v47 = vld [vmem:[%s2711_s10] sm:$0xff]  }
 0x347   : > { %v1192_v50 = vpop.xlane.xlu1 %1191 }
 0x348   : > { %v1200_v51 = vsub.f32 %v1094_v22, %v1192_v50  ;;  %v2371_v50 = vmov 1983009808  }
 0x34a   : > { %v1205_v52 = vmul.f32 1.442695, %v1200_v51  ;;  %v1642_v51 = vunpack.c.l.s4 %v2371_v50 }
 0x34c   : > { %2309 = vpow2.f32 %v1205_v52  ;;  %v1644_v52 = vlaneseq }
 0x34f   : > { %v1195_v53 = vpop.xlane.xlu0 %1194  ;;  %v1198_v60 = vpop.xlane.xlu1 %1197 }
 0x350   : > { %v1201_v54 = vsub.f32 %v1137_v27, %v1195_v53  ;;  %v1202_v61 = vsub.f32 %v1180_v28, %v1198_v60 }
 0x352   : > { %v1207_v55 = vmul.f32 1.442695, %v1201_v54  ;;  %v1209_v62 = vmul.f32 1.442695, %v1202_v61  ;;  %v2372_v54 = vmov 1934713408  }
 0x353   : > { %v1248_v2 = vpop.permute.xlu1 %1247  ;;  %v1244_v8 = vpop.permute.xlu0 %1243 }
 0x354   : > { %2311 = vpow2.f32 %v1207_v55  ;;  %v1674_v55 = vunpack.c.l.s4 %v2372_v54 }
 0x355   : > { %2313 = vpow2.f32 %v1209_v62 }
 0x356   : > { %v2310_v56 = vpop.eup %2309 }
 0x357   : > { %v1214_v57 = vsel %vm1186_vm3, %v2310_v56, 0.0 }
 0x358   : > { %1215 = vadd.xlane.f32.xlu0 %v1214_v57  ;;  %v1645_v57 = vshrl.u32 %v1644_v52, 7 }
 0x35e   : > { %v2312_v58 = vpop.eup %2311 }
 0x35f   : > { %v1217_v59 = vsel %vm1186_vm3, %v2312_v58, 0.0  ;;  %v2314_v63 = vpop.eup %2313 }
 0x360   : > { %1218 = vadd.xlane.f32.xlu1 %v1217_v59  ;;  %v1220_v0 = vsel %vm1186_vm3, %v2314_v63, 0.0  ;;  %v1675_v59 = vunpack.c.0.s8 %v1674_v55 }
 0x36e   : > { %1249 = vrot.lane.b32.xlu0 %v948_v39, %s2370_s20 }
 0x38d   : > { %1221 = vadd.xlane.f32.xlu0 %v1220_v0  ;;  %1275 = vxpose.xlu1.c.b16.start [1/2] (short) (narrow) %v1240_v40, 16 }
 0x391   : > { %1276 = vxpose.xlu1.c.b16.end [2/2] (short) (narrow) %v1242_v41, 16 }
 0x395   : > { %1307 = vxpose.xlu1.c.b16.start [1/2] (short) (narrow) %v1248_v2, 16 }
 0x3a1   : > { %v1213_v3 = vpop.xlane.xlu1 %1212 }
 0x3a2   : > { %2315 = vrcp.f32 %v1213_v3  ;;  %v1678_v3 = vsub.s32 %v1675_v59, %v1645_v57 }
 0x3a5   : > { %v1246_v9 = vpop.permute.xlu1 %1245 }
 0x3ac   : > { %v2316_v4 = vpop.eup %2315 }
 0x3ad   : > { %v1224_v5 = vmul.f32 %v2316_v4, %v2308_v45 }
 0x3af   : > { %v1231_v6 = vpack.c.bf16 %v1224_v5, %v1224_v5 }
 0x3b1   : > { %v1327_v7 = vsel %vm1186_vm3, %v1231_v6, 0 }
 0x3b2   : > { %2202 = vmatpush3.bf16.xpose.msra.mxu0 %v1327_v7 }
 0x3b3   : > { %2213 = vmatprep.subr.bf16.mxu0 %v2365_v1 }
 0x3ba   : > { %1259 = vxpose.xlu0.c.b16.start [1/2] (short) (narrow) %v1236_v48, 16  ;;  %v2304_v48 = vld [vmem:[%s2711_s10 + $0x8] sm:$0xff]  }
 0x3be   : > { %1260 = vxpose.xlu0.c.b16.end [2/2] (short) (narrow) %v1238_v49, 16 }
 0x3c2   : > { %1291 = vxpose.xlu0.c.b16.start [1/2] (short) (narrow) %v1244_v8, 16 }
 0x3c6   : > { %1292 = vxpose.xlu0.c.b16.end [2/2] (short) (narrow) %v1246_v9, 16 }
 0x3e5   : > { %v1216_v11 = vpop.xlane.xlu0 %1215 }
 0x3e6   : > { %2317 = vrcp.f32 %v1216_v11 }
 0x3e9   : > { %v1250_v12 = vpop.permute.xlu0 %1249 }
 0x3ea   : > { %1308 = vxpose.xlu1.c.b16.end [2/2] (short) (narrow) %v1250_v12, 16 }
 0x3ed   : > { %v1219_v17 = vpop.xlane.xlu1 %1218 }
 0x3ee   : > { %2319 = vrcp.f32 %v1219_v17 }
 0x3f0   : > { %v2318_v13 = vpop.eup %2317 }
 0x3f1   : > { %v1226_v14 = vmul.f32 %v2318_v13, %v2310_v56  ;;  %v1643_v56 = vunpack.c.0.s8 %v1642_v51  ;;  %v2305_v13 = vld [vmem:[%s2711_s10 + $0x10] sm:$0xff]  }
 0x3f3   : > { %v1232_v15 = vpack.c.bf16 %v1226_v14, %v1226_v14  ;;  %v1283_v18 = vpop.trf.xlu1  ;;  %v1646_v60 = vsub.s32 %v1643_v56, %v1645_v57 }
 0x3f5   : > { %v1374_v16 = vsel %vm1186_vm3, %v1232_v15, 0 }
 0x3f6   : > { %2208 = vmatpush3.bf16.xpose.msra.mxu1 %v1374_v16 }
 0x3f7   : > { %2219 = vmatprep.subr.bf16.mxu1 %v2365_v1 }
 0x3f8   : > { %v2320_v19 = vpop.eup %2319 }
 0x3f9   : > { %v1228_v20 = vmul.f32 %v2320_v19, %v2312_v58 }
 0x3fb   : > { %v1233_v22 = vpack.c.bf16 %v1228_v20, %v1228_v20 }
 0x3fd   : > { %2210 = vmatmul.mubr.msk.bf16.vlgmr.msra.gmra.mrb[20].mxu1 %vm1186_vm3, %v1283_v18  ;;  %v1421_v24 = vsel %vm1186_vm3, %v1233_v22, 0  ;;  %v2306_v22 = vld [vmem:[%s2711_s10 + $0x18] sm:$0xff]  }
 0x3fe   : > { %2221 = vmatprep.mubr.msk.bf16.mxu1 %vm2366_vm0, %v2365_v1 }
 0x41a   : > { %v1222_v21 = vpop.xlane.xlu0 %1221 }
 0x41b   : > { %2321 = vrcp.f32 %v1222_v21 }
 0x420   : > { %v1267_v23 = vpop.trf.xlu0 }
 0x421   : > { %2204 = vmatmul.mubr.msk.bf16.vlgmr.msra.gmra.mrb[12].mxu0 %vm1186_vm3, %v1267_v23 }
 0x422   : > { %2214 = vmatpush3.bf16.xpose.msra.mxu0 %v1421_v24  ;;  %2215 = vmatprep.mubr.msk.bf16.mxu0 %vm2366_vm0, %v2365_v1 }
 0x423   : > { %2225 = vmatprep.subr.bf16.mxu0 %v2365_v1 }
 0x425   : > { %v2322_v25 = vpop.eup %2321 }
 0x426   : > { %v1230_v26 = vmul.f32 %v2322_v25, %v2314_v63 }
 0x428   : > { %v1234_v27 = vpack.c.bf16 %v1230_v26, %v1230_v26  ;;  %v1299_v28 = vpop.trf.xlu0 }
 0x429   : > { %2216 = vmatmul.mubr.msk.bf16.vlgmr.msra.gmra.mrb[16].mxu0 %vm1186_vm3, %v1299_v28 }
 0x42a   : > { %v1468_v29 = vsel %vm1186_vm3, %v1234_v27, 0  ;;  %2233 = vmatprep.mubr.msk.bf16.mxu0 %vm2366_vm0, %v2365_v1  ;;  %2226 = vmatpush3.bf16.msra.mxu0 %v2303_v47 }
 0x42b   : > { %2220 = vmatpush3.bf16.xpose.msra.mxu1 %v1468_v29  ;;  %2227 = vmatprep.subr.bf16.mxu0 %v2365_v1 }
 0x42e   : > { %2228 = vmatpush3.bf16.msra.mxu0 %v2304_v48 }
 0x42f   : > { %2229 = vmatprep.subr.bf16.mxu0 %v2365_v1 }
 0x432   : > { %2230 = vmatpush3.bf16.msra.mxu0 %v2305_v13 }
 0x433   : > { %2231 = vmatprep.subr.bf16.mxu0 %v2365_v1 }
 0x436   : > { %2232 = vmatpush3.bf16.msra.mxu0 %v2306_v22 }
 0x44c   : > { %v1315_v30 = vpop.trf.xlu1 }
 0x44d   : > { %2222 = vmatmul.mubr.msk.bf16.vlgmr.msra.gmra.mrb[24].mxu1 %vm1186_vm3, %v1315_v30 }
 0x4d0   : > { %v1410_v31 = vpop.f32.mrb[20].mxu1 }
 0x4d1   : > { %1543 = vxpose.xlu1.b32.start [1/2] (short) (narrow) %v1410_v31, 8  ;;  %v2211_v32 = vpop.f32.mrb[21].mxu1 }
 0x4d2   : > { %v1413_v33 = vpop.f32.mrb[22].mxu1 }
 0x4d3   : > { %v2212_v34 = vpop.f32.mrb[23].mxu1 }
 0x4d5   : > { %1544 = vxpose.xlu1.b32.end [2/2] (short) (narrow) %v1413_v33, 8 }
 0x4f4   : > { %v1363_v35 = vpop.f32.mrb[12].mxu0 }
 0x4f5   : > { %1511 = vxpose.xlu0.b32.start [1/2] (short) (narrow) %v1363_v35, 8  ;;  %v2205_v36 = vpop.f32.mrb[13].mxu0 }
 0x4f6   : > { %v1366_v37 = vpop.f32.mrb[14].mxu0 }
 0x4f7   : > { %v2206_v38 = vpop.f32.mrb[15].mxu0 }
 0x4f9   : > { %1512 = vxpose.xlu0.b32.end [2/2] (short) (narrow) %v1366_v37, 8 }
 0x4fc   : > { %v1457_v39 = vpop.f32.mrb[16].mxu0 }
 0x4fd   : > { %1575 = vxpose.xlu0.b32.start [1/2] (short) (narrow) %v1457_v39, 8  ;;  %v2217_v40 = vpop.f32.mrb[17].mxu0 }
 0x4fe   : > { %v1460_v41 = vpop.f32.mrb[18].mxu0 }
 0x4ff   : > { %v2218_v42 = vpop.f32.mrb[19].mxu0 }
 0x501   : > { %1576 = vxpose.xlu0.b32.end [2/2] (short) (narrow) %v1460_v41, 8 }
 0x520   : > { %v1504_v43 = vpop.f32.mrb[24].mxu1 }
 0x521   : > { %1607 = vxpose.xlu1.b32.start [1/2] (short) (narrow) %v1504_v43, 8  ;;  %v2223_v44 = vpop.f32.mrb[25].mxu1 }
 0x522   : > { %v1507_v45 = vpop.f32.mrb[26].mxu1 }
 0x523   : > { %v2224_v46 = vpop.f32.mrb[27].mxu1 }
 0x525   : > { %1608 = vxpose.xlu1.b32.end [2/2] (short) (narrow) %v1507_v45, 8  ;;  %v2076_v45 = vld [vmem:[%s2712_s11] ss:$0 sm:$0xff] }
 0x551   : > { %v1559_v53 = vpop.trf.xlu1 }
 0x575   : > { %v1527_v49 = vpop.trf.xlu0 }
 0x57d   : > { %v1591_v58 = vpop.trf.xlu0 }
 0x57e   : > { %v1639_v61 = vcombine.low %v1527_v49, %v1591_v58  ;;  %v1640_v62 = vcombine.high %v1527_v49, %v1591_v58 }
 0x580   : > { %v1647_v6 = vrot.slane %v1639_v61, %v1646_v60  ;;  %v1654_v7 = vrot.slane %v1640_v62, %v1646_v60 }
 0x5a1   : > { %v1623_v63 = vpop.trf.xlu1 }
 0x5a2   : > { %v1655_v0 = vcombine.low %v1559_v53, %v1623_v63  ;;  %v1656_v2 = vcombine.high %v1559_v53, %v1623_v63  ;;  %v2083_v63 = vld [vmem:[%s2714_s13] ss:$0 sm:$0xff] }
 0x5a4   : > { %v1663_v4 = vrot.slane %v1655_v0, %v1646_v60  ;;  %v1670_v5 = vrot.slane %v1656_v2, %v1646_v60 }
 0x5a6   : > { %v1671_v8 = vcombine.low %v1647_v6, %v1663_v4  ;;  %v1672_v9 = vcombine.high %v1647_v6, %v1663_v4  ;;  %v1687_v11 = vcombine.low %v1654_v7, %v1670_v5  ;;  %v1688_v12 = vcombine.high %v1654_v7, %v1670_v5 }
 0x5a8   : > { %v1679_v14 = vrot.slane %v1671_v8, %v1678_v3  ;;  %v1686_v15 = vrot.slane %v1672_v9, %v1678_v3  ;;  %v1695_v16 = vrot.slane %v1687_v11, %v1678_v3  ;;  %v1702_v17 = vrot.slane %v1688_v12, %v1678_v3 }
 0x5aa   : > { %v1707_v18 = vcombine.low %v1679_v14, %v1686_v15  ;;  %v2074_v19 = vcombine.high %v1679_v14, %v1686_v15  ;;  %v1723_v20 = vcombine.low %v1695_v16, %v1702_v17  ;;  %v2075_v21 = vcombine.high %v1695_v16, %v1702_v17 }
 0x5ac   : > { %v1714_v23 = vrot.slane %v1707_v18, %v1646_v60  ;;  %v1722_v24 = vrot.slane %v2074_v19, %v1646_v60  ;;  %v1730_v25 = vrot.slane %v1723_v20, %v1646_v60  ;;  %v1738_v26 = vrot.slane %v2075_v21, %v1646_v60 }
 0x5ae   : > { %v1740_v27 = vcombine.high %v1714_v23, %v1722_v24  ;;  %v1756_v28 = vcombine.high %v1730_v25, %v1738_v26  ;;  %v1739_v29 = vcombine.low %v1714_v23, %v1722_v24  ;;  %v1755_v30 = vcombine.low %v1730_v25, %v1738_v26 }
 0x5b0   : > { %v1754_v31 = vrot.slane %v1740_v27, %v1678_v3  ;;  %v1770_v32 = vrot.slane %v1756_v28, %v1678_v3  ;;  %v1747_v1 = vrot.slane %v1739_v29, %v1678_v3  ;;  %v1763_v33 = vrot.slane %v1755_v30, %v1678_v3 }
 0x5b2   : > { %v1773_v34 = vcombine.low %v1754_v31, %v1770_v32  ;;  %v1772_v35 = vcombine.high %v1747_v1, %v1763_v33  ;;  %v1771_v36 = vcombine.low %v1747_v1, %v1763_v33  ;;  %v1774_v37 = vcombine.high %v1754_v31, %v1770_v32 }
 0x5b4   : > { %1780 = vrot.lane.b32.xlu1 %v1773_v34, %s2373_s24  ;;  %1776 = vrot.lane.b32.xlu0 %v1772_v35, %s2374_s15 }
 0x5b8   : > { %1784 = vrot.lane.b32.xlu1 %v1774_v37, %s2375_s16 }
 0x626   : > { %v1781_v38 = vpop.permute.xlu1 %1780  ;;  %v1777_v39 = vpop.permute.xlu0 %1776 }
 0x627   : > { %v1787_v40 = vsel %vm1013_vm2, %v1771_v36, %v1777_v39 }
 0x628   : > { %v1789_v42 = vsel %vm1788_vm4, %v1787_v40, %v1781_v38 }
 0x62a   : > { %v1785_v41 = vpop.permute.xlu1 %1784 }
 0x62b   : > { %v1791_v43 = vsel %vm1790_vm5, %v1789_v42, %v1785_v41 }
 0x62c   : > { %v1800_v44 = vpack.c.bf16 %v1791_v43, %v1791_v43 }
 0x62e   : > { %2234 = vmatmul.mubr.msk.bf16.vlgmr.msra.gmra.mrb[20].mxu0 %vm619_vm1, %v1800_v44 }
 0x701   : > { %v1869_v46 = vpop.f32.mrb[20].mxu0 }
 0x702   : > { %v1870_v47 = vadd.f32 %v2076_v45, %v1869_v46  ;;  %v2235_v48 = vpop.f32.mrb[21].mxu0 }
 0x703   : > { %v1872_v49 = vpop.f32.mrb[22].mxu0 }
 0x704   : > { %v2236_v50 = vpop.f32.mrb[23].mxu0  ;;  %v1875_v51 = vadd.f32 %v1870_v47, %v2533_v10  ;;  %v2082_v10 = vld [vmem:[%s2713_s12] ss:$0 sm:$0xff] }
 0x706   : > { %v1878_v52 = vsel %vm619_vm1, %v1875_v51, 0.0 }
 0x707   : > { %1879 = vadd.xlane.f32.xlu0 %v1878_v52 }
 0x794   : > { %v1880_v53 = vpop.xlane.xlu0 %1879 }
 0x795   : > { %v1882_v54 = vmul.f32 0.015625, %v1880_v53 }
 0x797   : > { %v1883_v55 = vsub.f32 %v1875_v51, %v1882_v54 }
 0x799   : > { %v1884_v56 = vmul.f32 %v1883_v55, %v1883_v55 }
 0x79b   : > { %v1885_v57 = vsel %vm619_vm1, %v1884_v56, 0.0 }
 0x79c   : > { %1886 = vadd.xlane.f32.xlu1 %v1885_v57 }
 0x829   : > { %v1887_v58 = vpop.xlane.xlu1 %1886 }
 0x82a   : > { %v1888_v59 = vmul.f32 0.015625, %v1887_v58 }
 0x82c   : > { %v1889_v60 = vadd.f32 1e-05, %v1888_v59 }
 0x82e   : > { %2323 = vrsqrt.f32 %v1889_v60 }
 0x838   : > { %v2324_v61 = vpop.eup %2323 }
 0x839   : > { %v1891_v62 = vmul.f32 %v2324_v61, %v1883_v55 }
 0x83b   : > { %v1898_v0 = vmul.f32 %v2082_v10, %v1891_v62 }
 0x83d   : > { %v1905_v2 = vadd.f32 %v2083_v63, %v1898_v0 }
 0x83f   : > { %1906 = vst.msk [vmem:[%s569_s18] sm:$0xff] %vm619_vm1, %v1905_v2 }
 0x840 PF: > { %s24_s17 = sadd.s32 1, %s2363_s17   ;;  %s2722_s29 = sld [smem:[#allocation2_spill]] }
 0x841   : > { %p21_p7 = scmp.ge.s32.totalorder %s24_s17, 8   ;;  %s2723_s30 = sld [smem:[#allocation3_spill]] }
 0x842   : > { %s2724_s15 = sld [smem:[#allocation4_spill]]  ;;  %s2725_s16 = sld [smem:[#allocation5_spill]] }
 0x843   :  { %23 = sbr.rel (!%p21_p7) target bundleno = 3 (0x3), region = 115 }

// kernel: pe_conditional_transformer.10
= control target key start
LH: loop header
LB: loop body
LE: loop exit
PB: predicated region body
PF: predicated region fallthrough
CT: control target
= control target key end

     0   :  { %s2395_s29 = smov 0   ;;  %s2397_s30 = smov 0   ;;  %s2632_s0 = inlined_call_operand.vmem [shape: f32[2,16,64], index: 0, kind: input, shape index: {}, may-alias: {0,2}]   ;;  %s2633_s1 = inlined_call_operand.vmem [shape: f32[2,16,64], index: 1, kind: input, shape index: {}, may-alias: {1,3}]   ;;  %s2634_s2 = inlined_call_operand.vmem [shape: f32[2,16,64], index: 2, kind: input, shape index: {}, may-alias: {0,2}]   ;;  %s2635_s3 = inlined_call_operand.vmem [shape: f32[2,16,64], index: 3, kind: input, shape index: {}, may-alias: {1,3}]   ;;  %s2636_s4 = inlined_call_operand.vmem [shape: bf16[64,64], index: 4, kind: input, shape index: {}]   ;;  %s2637_s5 = inlined_call_operand.vmem [shape: f32[1,64], index: 5, kind: input, shape index: {}]   ;;  %s2638_s6 = inlined_call_operand.vmem [shape: bf16[64,128], index: 6, kind: input, shape index: {}]   ;;  %s2639_s7 = inlined_call_operand.vmem [shape: f32[1,128], index: 7, kind: input, shape index: {}]   ;;  %s2640_s8 = inlined_call_operand.vmem [shape: bf16[64,64], index: 8, kind: input, shape index: {}]   ;;  %s2641_s9 = inlined_call_operand.vmem [shape: f32[1,64], index: 9, kind: input, shape index: {}]   ;;  %s2642_s10 = inlined_call_operand.vmem [shape: bf16[64,64], index: 10, kind: input, shape index: {}]   ;;  %s2643_s11 = inlined_call_operand.vmem [shape: f32[1,64], index: 11, kind: input, shape index: {}]   ;;  %s2644_s12 = inlined_call_operand.vmem [shape: f32[1,64], index: 12, kind: input, shape index: {}]   ;;  %s2645_s13 = inlined_call_operand.vmem [shape: f32[1,64], index: 13, kind: input, shape index: {}]   ;;  %s2646_s14 = inlined_call_operand.vmem [shape: f32[2,16,64], index: 14, kind: output, shape index: {}]  }
   0x1   :  { %s2399_s15 = smov 0   ;;  %s2401_s16 = smov 0  }
   0x2   :  { %s2403_s17 = smov 0  }
   0x3 LB: > { %s33_s18 = sadd.s32 1, %s2299_s15  ;;  %s36_s19 = sadd.s32 1, %s2303_s16  ;;  %s2307_s17 = sphi %s2403_s17, %s24_s17   ;;  %s2303_s16 = sphi %s2401_s16, %s2652_s16   ;;  %s2299_s15 = sphi %s2399_s15, %s2651_s15   ;;  %s2295_s30 = sphi %s2397_s30, %s2650_s30   ;;  %s2291_s29 = sphi %s2395_s29, %s2649_s29  }
   0x4   : > { %p34_p0 = scmp.ge.s32.totalorder %s33_s18, 2  ;;  %p1982_p1 = scmp.ge.s32.totalorder %s2307_s17, 1 }
   0x5   : > { %p466_p2 = scmp.lt.s32.totalorder %s2307_s17, 5 }
   0x6   : > { %s2654_s18 = smov (%p34_p0, %s33_s18), 0  ;;  %s2656_s19 = smov (!%p34_p0, %s36_s19), %s2303_s16 }
   0x7   : > { %p467_p3 = pnand %p1982_p1, %p466_p2  ;;  %p38_p4 = scmp.ge.s32.totalorder %s2656_s19, 2 }
   0x8   : > { %v2235_v0 = vld [vmem:[%s2636_s4] sm:$0xff] (!%p467_p3)   ;;  %v2309_v1 = vmov (!%p467_p3), 0.0   ;;  %v2237_v3 = vld [vmem:[%s2636_s4 + $0x8] sm:$0xff] (!%p467_p3)   ;;  %vm2310_vm0 = vmmov (!%p467_p3), 0   ;;  %p536_p5 = scmp.lt.s32.totalorder (!%p467_p3), %s2295_s30, 1  ;;  %p538_p6 = scmp.lt.s32.totalorder (!%p467_p3), %s2291_s29, 1 }
   0x9   : > { %s2658_s19 = smov (%p38_p4, %s2656_s19), 0  ;;  %470 = sbr.rel (%p467_p3) target bundleno = 2115 (0x843), region = 76 }
   0xa   : > { %2647 = sst [smem:[#allocation2_spill]] %s2658_s19  ;;  %2075 = vmatprep.subr.bf16.mxu0 (!%p467_p3), %v2309_v1  ;;  %2087 = vmatprep.subr.bf16.mxu1 (!%p467_p3), %v2309_v1  ;;  %v2236_v2 = vld [vmem:[%s2640_s8] sm:$0xff] (!%p467_p3)   ;;  %v2238_v4 = vld [vmem:[%s2640_s8 + $0x8] sm:$0xff] (!%p467_p3)   ;;  %v2239_v5 = vld [vmem:[%s2636_s4 + $0x10] sm:$0xff] (!%p467_p3)   ;;  %vm617_vm1 = vcmask (!%p467_p3), 523264   ;;  %s2312_s26 = smov (!%p467_p3), 112  }
   0xb   : > { %2076 = vmatpush3.bf16.msra.mxu0 (!%p467_p3), %v2235_v0  ;;  %2083 = vmatprep.mubr.msk.bf16.mxu0 (!%p467_p3), %vm2310_vm0, %v2309_v1  ;;  %v2240_v6 = vld [vmem:[%s2640_s8 + $0x10] sm:$0xff] (!%p467_p3)   ;;  %v2241_v7 = vld [vmem:[%s2636_s4 + $0x18] sm:$0xff] (!%p467_p3)   ;;  %v2243_v13 = vld [vmem:[%s2638_s6] sm:$0xff] (!%p467_p3)   ;;  %vm969_vm2 = vcmask (!%p467_p3), 130048   ;;  %s2314_s27 = smov (!%p467_p3), 64   ;;  %vm1731_vm3 = vcmask (!%p467_p3), 261120  }
   0xc   : > { %2088 = vmatpush3.bf16.msra.mxu1 (!%p467_p3), %v2236_v2  ;;  %2077 = vmatprep.subr.bf16.mxu0 (!%p467_p3), %v2309_v1  ;;  %v2242_v9 = vld [vmem:[%s2640_s8 + $0x18] sm:$0xff] (!%p467_p3)   ;;  %v2244_v14 = vld [vmem:[%s2638_s6 + $0x8] sm:$0xff] (!%p467_p3)   ;;  %v2245_v15 = vld [vmem:[%s2638_s6 + $0x10] sm:$0xff] (!%p467_p3)   ;;  %vm1733_vm4 = vcmask (!%p467_p3), 392192  }
   0xd   : > { %2089 = vmatprep.subr.bf16.mxu1 (!%p467_p3), %v2309_v1  ;;  %2095 = vmatprep.mubr.msk.bf16.mxu1 (!%p467_p3), %vm2310_vm0, %v2309_v1  ;;  %v2246_v16 = vld [vmem:[%s2638_s6 + $0x18] sm:$0xff] (!%p467_p3)   ;;  %v1993_v23 = vld [vmem:[%s2637_s5] ss:$0 sm:$0xff] (!%p467_p3) }
   0xe   : > { %v2005_v34 = vld [vmem:[%s2639_s7] ss:$0 sm:$0xff] (!%p467_p3) }
   0xf   : > { %2078 = vmatpush3.bf16.msra.mxu0 (!%p467_p3), %v2237_v3  ;;  %v2004_v36 = vld [vmem:[%s2641_s9] ss:$0 sm:$0xff] (!%p467_p3) }
  0x10   : > { %s2660_s30 = smov (!%p536_p5, %s2295_s30), 1  ;;  %s2662_s29 = smov (!%p538_p6, %s2291_s29), 1  ;;  %2090 = vmatpush3.bf16.msra.mxu1 %v2238_v4  ;;  %2079 = vmatprep.subr.bf16.mxu0 %v2309_v1 }
  0x11   : > { %s1983_s21 = sshll.u32 %s2660_s30, 1  ;;  %2091 = vmatprep.subr.bf16.mxu1 %v2309_v1  ;;  %s2032_s20 = sshll.u32 %s2660_s30, 4 }
  0x12   : > { %s541_s24 = sadd.s32 %s1983_s21, %s2662_s29  ;;  %s561_s30 = scalar_lea.vmem %s2635_s3, %s2032_s20 }
  0x13   : > { %s2464_s25 = sshll.u32 %s541_s24, 3  ;;  %2080 = vmatpush3.bf16.msra.mxu0 %v2239_v5  ;;  %s556_s24 = scalar_lea.vmem %s2634_s2, %s2032_s20  ;;  %v575_v19 = vld [vmem:[%s561_s30] sm:$0xff]  ;;  %v576_v20 = vld [vmem:[%s561_s30 + $0x8] sm:$0xff] }
  0x14   : > { %s543_s19 = scalar_lea.vmem %s2632_s0, %s2464_s25  ;;  %s551_s29 = scalar_lea.vmem %s2633_s1, %s2464_s25  ;;  %2092 = vmatpush3.bf16.msra.mxu1 %v2240_v6  ;;  %2081 = vmatprep.subr.bf16.mxu0 %v2309_v1  ;;  %v573_v17 = vld [vmem:[%s556_s24] sm:$0xff]  ;;  %v574_v18 = vld [vmem:[%s556_s24 + $0x8] sm:$0xff]  ;;  %v830_v22 = vpack.c.bf16 %v576_v20, %v575_v19 }
  0x15   : > { %v2473_v8 = vld [vmem:[%s543_s19] sm:$0xff]  ;;  %2093 = vmatprep.subr.bf16.mxu1 %v2309_v1  ;;  %v754_v21 = vpack.c.bf16 %v574_v18, %v573_v17  ;;  %s2311_s19 = smov 80   ;;  %s2313_s30 = smov 96  }
  0x16   : > { %v572_v10 = vld [vmem:[%s551_s29] sm:$0xff]  ;;  %v585_v11 = vpack.c.bf16 %v2473_v8, %v2473_v8 }
  0x17   : > { %2082 = vmatpush3.bf16.msra.mxu0 %v2241_v7  ;;  %v669_v12 = vpack.c.bf16 %v572_v10, %v572_v10 }
  0x18   : > { %2094 = vmatpush3.bf16.msra.mxu1 %v2242_v9  ;;  %2099 = vmatprep.subr.bf16.mxu0 %v2309_v1 }
  0x19   : > { %2111 = vmatprep.subr.bf16.mxu1 %v2309_v1 }
  0x1a   : > { %2084 = vmatmul.mubr.msk.bf16.vlgmr.msra.gmra.mrb[0].mxu0 %vm617_vm1, %v585_v11 }
  0x1b   : > { %2096 = vmatmul.mubr.msk.bf16.vlgmr.msra.gmra.mrb[0].mxu1 %vm617_vm1, %v669_v12  ;;  %2100 = vmatpush3.bf16.msra.mxu0 %v2243_v13 }
  0x1c   : > { %2112 = vmatpush3.bf16.msra.mxu1 %v2236_v2  ;;  %2101 = vmatprep.subr.bf16.mxu0 %v2309_v1 }
  0x1d   : > { %2113 = vmatprep.subr.bf16.mxu1 %v2309_v1  ;;  %2107 = vmatprep.mubr.msk.bf16.mxu0 %vm2310_vm0, %v2309_v1 }
  0x1e   : > { %2119 = vmatprep.mubr.msk.bf16.mxu1 %vm2310_vm0, %v2309_v1 }
  0x1f   : > { %2102 = vmatpush3.bf16.msra.mxu0 %v2244_v14 }
  0x20   : > { %2114 = vmatpush3.bf16.msra.mxu1 %v2238_v4  ;;  %2103 = vmatprep.subr.bf16.mxu0 %v2309_v1 }
  0x21   : > { %2115 = vmatprep.subr.bf16.mxu1 %v2309_v1 }
  0x23   : > { %2104 = vmatpush3.bf16.msra.mxu0 %v2245_v15 }
  0x24   : > { %2116 = vmatpush3.bf16.msra.mxu1 %v2240_v6  ;;  %2105 = vmatprep.subr.bf16.mxu0 %v2309_v1 }
  0x25   : > { %2117 = vmatprep.subr.bf16.mxu1 %v2309_v1 }
  0x27   : > { %2106 = vmatpush3.bf16.msra.mxu0 %v2246_v16 }
  0x28   : > { %2118 = vmatpush3.bf16.msra.mxu1 %v2242_v9  ;;  %2135 = vmatprep.subr.bf16.mxu0 %v2309_v1 }
  0x29   : > { %2123 = vmatprep.subr.bf16.mxu1 %v2309_v1 }
  0x2a   : > { %2108 = vmatmul.mubr.msk.bf16.vlgmr.msra.gmra.mrb[4].mxu0 %vm617_vm1, %v754_v21 }
  0x2b   : > { %2120 = vmatmul.mubr.msk.bf16.vlgmr.msra.gmra.mrb[4].mxu1 %vm617_vm1, %v830_v22  ;;  %2137 = vmatprep.mubr.msk.bf16.mxu0 %vm2310_vm0, %v2309_v1 }
  0x2c   : > { %2125 = vmatprep.mubr.msk.bf16.mxu1 %vm2310_vm0, %v2309_v1 }
  0xed   : > { %v655_v24 = vpop.f32.mrb[0].mxu0 }
  0xee   : > { %v656_v25 = vadd.f32 %v1993_v23, %v655_v24  ;;  %v731_v26 = vpop.f32.mrb[0].mxu1  ;;  %v2085_v27 = vpop.f32.mrb[1].mxu0 }
  0xef   : > { %v2097_v28 = vpop.f32.mrb[1].mxu1  ;;  %v658_v29 = vpop.f32.mrb[2].mxu0 }
  0xf0   : > { %v737_v30 = vadd.f32 %v731_v26, %v656_v25  ;;  %v734_v31 = vpop.f32.mrb[2].mxu1  ;;  %v2086_v32 = vpop.f32.mrb[3].mxu0 }
  0xf1   : > { %v2098_v33 = vpop.f32.mrb[3].mxu1 }
  0xf2   : > { %v745_v46 = vadd.f32 %v2004_v36, %v737_v30 }
  0xf4   : > { %v877_v52 = vmul.f32 0.25, %v745_v46 }
  0xf6   : > { %v878_v54 = vpack.c.bf16 %v877_v52, %v877_v52 }
  0xfd   : > { %v823_v35 = vpop.f32.mrb[4].mxu0 }
  0xfe   : > { %v824_v37 = vadd.f32 %v2005_v34, %v823_v35  ;;  %v868_v38 = vpop.f32.mrb[4].mxu1  ;;  %v2109_v39 = vpop.f32.mrb[5].mxu0 }
  0xff   : > { %v869_v40 = vadd.f32 %v2004_v36, %v868_v38  ;;  %v2121_v41 = vpop.f32.mrb[5].mxu1  ;;  %v826_v42 = vpop.f32.mrb[6].mxu0 }
 0x100   : > { %v827_v43 = vadd.f32 %v2005_v34, %v826_v42  ;;  %v871_v44 = vpop.f32.mrb[6].mxu1  ;;  %v2110_v45 = vpop.f32.mrb[7].mxu0 }
 0x101   : > { %v875_v47 = vadd.f32 %v869_v40, %v824_v37  ;;  %v872_v48 = vadd.f32 %v2004_v36, %v871_v44  ;;  %v2122_v49 = vpop.f32.mrb[7].mxu1 }
 0x102   : > { %v2536_v50 = vpack.c.bf16 %v827_v43, %v824_v37 }
 0x103   : > { %v876_v51 = vadd.f32 %v872_v48, %v827_v43 }
 0x105   : > { %v886_v53 = vpack.c.bf16 %v876_v51, %v875_v47 }
 0x107   : > { %894 = vrot.lane.b32.xlu1 %v886_v53, %s2311_s19  ;;  %888 = vrot.lane.b32.xlu0 %v886_v53, %s2312_s26 }
 0x10b   : > { %880 = vrot.lane.b32.xlu1 %v878_v54, %s2312_s26  ;;  %891 = vrot.lane.b32.xlu0 %v886_v53, %s2313_s30 }
 0x10f   : > { %884 = vrot.lane.b32.xlu1 %v878_v54, %s2311_s19  ;;  %882 = vrot.lane.b32.xlu0 %v878_v54, %s2313_s30 }
 0x12d   : > { %905 = vxpose.xlu0.c.b16.start.end [1/1] (short) (narrow) %v886_v53, 16 }
 0x179   : > { %v889_v55 = vpop.permute.xlu0 %888  ;;  %v895_v57 = vpop.permute.xlu1 %894 }
 0x17a   : > { %921 = vxpose.xlu1.c.b16.start.end [1/1] (short) (narrow) %v889_v55, 16 }
 0x17d   : > { %v892_v56 = vpop.permute.xlu0 %891  ;;  %v881_v60 = vpop.permute.xlu1 %880 }
 0x17e   : > { %899 = vrot.lane.b32.xlu1 %v2536_v50, %s2312_s26  ;;  %937 = vxpose.xlu0.c.b16.start.end [1/1] (short) (narrow) %v892_v56, 16  ;;  %s2317_s26 = smov 32  }
 0x181   : > { %v883_v58 = vpop.permute.xlu0 %882  ;;  %v885_v61 = vpop.permute.xlu1 %884 }
 0x182   : > { %903 = vrot.lane.b32.xlu1 %v2536_v50, %s2311_s19  ;;  %953 = vxpose.xlu0.c.b16.start.end [1/1] (short) (narrow) %v895_v57, 16 }
 0x18b   : > { %901 = vrot.lane.b32.xlu0 %v2536_v50, %s2313_s30  ;;  %s2318_s30 = smov 16  }
 0x193   : > { %v913_v59 = vpop.trf.xlu0 }
 0x194   : > { %2124 = vmatpush3.bf16.msra.mxu1 %v913_v59 }
 0x195   : > { %2129 = vmatprep.subr.bf16.mxu1 %v2309_v1 }
 0x197   : > { %2126 = vmatmul.mubr.msk.bf16.vlgmr.msra.gmra.mrb[8].mxu1 %vm969_vm2, %v878_v54 }
 0x198   : > { %2131 = vmatprep.mubr.msk.bf16.mxu1 %vm2310_vm0, %v2309_v1 }
 0x1e0   : > { %v929_v62 = vpop.trf.xlu1 }
 0x1e1   : > { %2130 = vmatpush3.bf16.msra.mxu1 %v929_v62 }
 0x1e2   : > { %2141 = vmatprep.subr.bf16.mxu1 %v2309_v1 }
 0x1e4   : > { %2132 = vmatmul.mubr.msk.bf16.vlgmr.msra.gmra.mrb[12].mxu1 %vm969_vm2, %v881_v60  ;;  %v945_v63 = vpop.trf.xlu0 }
 0x1e5   : > { %2136 = vmatpush3.bf16.msra.mxu0 %v945_v63  ;;  %2143 = vmatprep.mubr.msk.bf16.mxu1 %vm2310_vm0, %v2309_v1 }
 0x1e6   : > { %2147 = vmatprep.subr.bf16.mxu0 %v2309_v1 }
 0x1e8   : > { %2138 = vmatmul.mubr.msk.bf16.vlgmr.msra.gmra.mrb[8].mxu0 %vm969_vm2, %v883_v58  ;;  %v961_v0 = vpop.trf.xlu0 }
 0x1e9   : > { %2142 = vmatpush3.bf16.msra.mxu1 %v961_v0  ;;  %2149 = vmatprep.mubr.msk.bf16.mxu0 %vm2310_vm0, %v2309_v1 }
 0x1ea   : > { %2153 = vmatprep.subr.bf16.mxu1 %v2309_v1 }
 0x1ec   : > { %2144 = vmatmul.mubr.msk.bf16.vlgmr.msra.gmra.mrb[16].mxu1 %vm969_vm2, %v885_v61 }
 0x1ed   : > { %2155 = vmatprep.mubr.msk.bf16.mxu1 %vm2310_vm0, %v2309_v1 }
 0x1f0   : > { %v900_v23 = vpop.permute.xlu1 %899 }
 0x1f4   : > { %v904_v24 = vpop.permute.xlu1 %903 }
 0x1fd   : > { %v902_v30 = vpop.permute.xlu0 %901 }
 0x26a   : > { %v1007_v2 = vpop.f32.mrb[8].mxu1 }
 0x26b   : > { %v2127_v3 = vpop.f32.mrb[9].mxu1  ;;  %v1142_v4 = vsel %vm969_vm2, %v1007_v2, -inf }
 0x26c   : > { %1143 = vmax.xlane.f32.xlu1 %v1142_v4  ;;  %v1010_v5 = vpop.f32.mrb[10].mxu1 }
 0x26d   : > { %v2128_v6 = vpop.f32.mrb[11].mxu1 }
 0x2b7   : > { %v1050_v7 = vpop.f32.mrb[12].mxu1 }
 0x2b8   : > { %v2133_v9 = vpop.f32.mrb[13].mxu1  ;;  %v1145_v10 = vsel %vm969_vm2, %v1050_v7, -inf }
 0x2b9   : > { %1146 = vmax.xlane.f32.xlu0 %v1145_v10  ;;  %v1053_v11 = vpop.f32.mrb[14].mxu1 }
 0x2ba   : > { %v2134_v12 = vpop.f32.mrb[15].mxu1 }
 0x2bb   : > { %v1093_v13 = vpop.f32.mrb[8].mxu0 }
 0x2bc   : > { %v2139_v14 = vpop.f32.mrb[9].mxu0  ;;  %v1148_v15 = vsel %vm969_vm2, %v1093_v13, -inf }
 0x2bd   : > { %1149 = vmax.xlane.f32.xlu1 %v1148_v15  ;;  %v1096_v16 = vpop.f32.mrb[10].mxu0 }
 0x2be   : > { %v2140_v17 = vpop.f32.mrb[11].mxu0 }
 0x2bf   : > { %v1136_v18 = vpop.f32.mrb[16].mxu1 }
 0x2c0   : > { %v2145_v19 = vpop.f32.mrb[17].mxu1  ;;  %v1151_v20 = vsel %vm969_vm2, %v1136_v18, -inf }
 0x2c1   : > { %1152 = vmax.xlane.f32.xlu0 %v1151_v20  ;;  %v1139_v21 = vpop.f32.mrb[18].mxu1 }
 0x2c2   : > { %v2146_v22 = vpop.f32.mrb[19].mxu1 }
 0x2ce   : > { %1190 = vrot.lane.b32.xlu1 %v2536_v50, %s2314_s27 }
 0x2d7   : > { %1192 = vrot.lane.b32.xlu0 %v900_v23, %s2314_s27 }
 0x2f9   : > { %v1144_v25 = vpop.xlane.xlu1 %1143 }
 0x2fa   : > { %v1154_v26 = vsub.f32 %v1007_v2, %v1144_v25 }
 0x2fc   : > { %v1158_v27 = vmul.f32 1.442695, %v1154_v26 }
 0x2fe   : > { %2251 = vpow2.f32 %v1158_v27 }
 0x308   : > { %v2252_v28 = vpop.eup %2251 }
 0x309   : > { %v1166_v29 = vsel %vm969_vm2, %v2252_v28, 0.0 }
 0x30a   : > { %1167 = vadd.xlane.f32.xlu1 %v1166_v29  ;;  %v2248_v29 = vld [vmem:[%s2642_s10 + $0x8] sm:$0xff]  }
 0x31b   : > { %1196 = vrot.lane.b32.xlu1 %v904_v24, %s2314_s27 }
 0x346   : > { %v1147_v31 = vpop.xlane.xlu0 %1146 }
 0x347   : > { %v1155_v32 = vsub.f32 %v1050_v7, %v1147_v31  ;;  %v2315_v31 = vmov 1983009808  }
 0x349   : > { %v1160_v33 = vmul.f32 1.442695, %v1155_v32  ;;  %v1585_v32 = vunpack.c.l.s4 %v2315_v31 }
 0x34a   : > { %v1150_v34 = vpop.xlane.xlu1 %1149 }
 0x34b   : > { %2253 = vpow2.f32 %v1160_v33  ;;  %v1156_v35 = vsub.f32 %v1093_v13, %v1150_v34  ;;  %v1587_v33 = vlaneseq }
 0x34d   : > { %v1162_v36 = vmul.f32 1.442695, %v1156_v35  ;;  %v2316_v35 = vmov 1934713408  }
 0x34e   : > { %v1153_v41 = vpop.xlane.xlu0 %1152  ;;  %v1191_v47 = vpop.permute.xlu1 %1190 }
 0x34f   : > { %2255 = vpow2.f32 %v1162_v36  ;;  %v1157_v42 = vsub.f32 %v1136_v18, %v1153_v41  ;;  %v1617_v36 = vunpack.c.l.s4 %v2316_v35 }
 0x351   : > { %v1164_v43 = vmul.f32 1.442695, %v1157_v42 }
 0x352   : > { %v1193_v44 = vpop.permute.xlu0 %1192 }
 0x353   : > { %2257 = vpow2.f32 %v1164_v43 }
 0x355   : > { %v2254_v37 = vpop.eup %2253 }
 0x356   : > { %v1169_v38 = vsel %vm969_vm2, %v2254_v37, 0.0 }
 0x357   : > { %1170 = vadd.xlane.f32.xlu0 %v1169_v38  ;;  %v1588_v38 = vshrl.u32 %v1587_v33, 7 }
 0x359   : > { %v2256_v39 = vpop.eup %2255 }
 0x35a   : > { %v1172_v40 = vsel %vm969_vm2, %v2256_v39, 0.0 }
 0x35b   : > { %1173 = vadd.xlane.f32.xlu1 %v1172_v40  ;;  %v1618_v40 = vunpack.c.0.s8 %v1617_v36 }
 0x35d   : > { %v2258_v45 = vpop.eup %2257 }
 0x35e   : > { %v1175_v46 = vsel %vm969_vm2, %v2258_v45, 0.0 }
 0x36d   : > { %1194 = vrot.lane.b32.xlu0 %v902_v30, %s2314_s27  ;;  %s2319_s27 = smov 48  }
 0x388   : > { %1218 = vxpose.xlu1.c.b16.start.end [1/1] (short) (narrow) %v1193_v44, 16 }
 0x38c   : > { %1176 = vadd.xlane.f32.xlu0 %v1175_v46 }
 0x397   : > { %v1168_v48 = vpop.xlane.xlu1 %1167 }
 0x398   : > { %2259 = vrcp.f32 %v1168_v48 }
 0x39b   : > { %v1197_v49 = vpop.permute.xlu1 %1196 }
 0x39c   : > { %1250 = vxpose.xlu1.c.b16.start.end [1/1] (short) (narrow) %v1197_v49, 16 }
 0x3a2   : > { %v2260_v50 = vpop.eup %2259 }
 0x3a3   : > { %v1179_v51 = vmul.f32 %v2260_v50, %v2252_v28  ;;  %v2247_v28 = vld [vmem:[%s2642_s10] sm:$0xff]  }
 0x3a5   : > { %v1186_v52 = vpack.c.bf16 %v1179_v51, %v1179_v51 }
 0x3a7   : > { %v1270_v53 = vsel %vm969_vm2, %v1186_v52, 0 }
 0x3a8   : > { %2148 = vmatpush3.bf16.xpose.msra.mxu0 %v1270_v53 }
 0x3a9   : > { %2159 = vmatprep.subr.bf16.mxu0 %v2309_v1 }
 0x3b9   : > { %1202 = vxpose.xlu0.c.b16.start.end [1/1] (short) (narrow) %v1191_v47, 16  ;;  %v1621_v47 = vsub.s32 %v1618_v40, %v1588_v38 }
 0x3e4   : > { %v1171_v54 = vpop.xlane.xlu0 %1170 }
 0x3e5   : > { %2261 = vrcp.f32 %v1171_v54 }
 0x3e8   : > { %v1195_v55 = vpop.permute.xlu0 %1194  ;;  %v1174_v60 = vpop.xlane.xlu1 %1173 }
 0x3e9   : > { %1234 = vxpose.xlu0.c.b16.start.end [1/1] (short) (narrow) %v1195_v55, 16  ;;  %2263 = vrcp.f32 %v1174_v60 }
 0x3ee   : > { %v1226_v61 = vpop.trf.xlu1 }
 0x3ef   : > { %v2262_v56 = vpop.eup %2261 }
 0x3f0   : > { %v1181_v57 = vmul.f32 %v2262_v56, %v2254_v37  ;;  %v1586_v37 = vunpack.c.0.s8 %v1585_v32  ;;  %v2249_v56 = vld [vmem:[%s2642_s10 + $0x10] sm:$0xff]  }
 0x3f2   : > { %v1187_v58 = vpack.c.bf16 %v1181_v57, %v1181_v57  ;;  %v1589_v41 = vsub.s32 %v1586_v37, %v1588_v38 }
 0x3f3   : > { %v2264_v62 = vpop.eup %2263 }
 0x3f4   : > { %v1317_v59 = vsel %vm969_vm2, %v1187_v58, 0  ;;  %v1183_v63 = vmul.f32 %v2264_v62, %v2256_v39 }
 0x3f5   : > { %2154 = vmatpush3.bf16.xpose.msra.mxu1 %v1317_v59 }
 0x3f6   : > { %2165 = vmatprep.subr.bf16.mxu1 %v2309_v1  ;;  %v1188_v2 = vpack.c.bf16 %v1183_v63, %v1183_v63 }
 0x3f8   : > { %v1364_v4 = vsel %vm969_vm2, %v1188_v2, 0  ;;  %v2250_v2 = vld [vmem:[%s2642_s10 + $0x18] sm:$0xff]  }
 0x3fc   : > { %2156 = vmatmul.mubr.msk.bf16.vlgmr.msra.gmra.mrb[20].mxu1 %vm969_vm2, %v1226_v61 }
 0x3fd   : > { %2167 = vmatprep.mubr.msk.bf16.mxu1 %vm2310_vm0, %v2309_v1 }
 0x402   : > { %v1258_v10 = vpop.trf.xlu1 }
 0x419   : > { %v1177_v0 = vpop.xlane.xlu0 %1176 }
 0x41a   : > { %2265 = vrcp.f32 %v1177_v0 }
 0x41f   : > { %v1210_v3 = vpop.trf.xlu0 }
 0x420   : > { %2150 = vmatmul.mubr.msk.bf16.vlgmr.msra.gmra.mrb[12].mxu0 %vm969_vm2, %v1210_v3 }
 0x421   : > { %2160 = vmatpush3.bf16.xpose.msra.mxu0 %v1364_v4  ;;  %2161 = vmatprep.mubr.msk.bf16.mxu0 %vm2310_vm0, %v2309_v1 }
 0x422   : > { %2171 = vmatprep.subr.bf16.mxu0 %v2309_v1 }
 0x424   : > { %v2266_v5 = vpop.eup %2265 }
 0x425   : > { %v1185_v6 = vmul.f32 %v2266_v5, %v2258_v45 }
 0x427   : > { %v1189_v7 = vpack.c.bf16 %v1185_v6, %v1185_v6 }
 0x429   : > { %v1411_v9 = vsel %vm969_vm2, %v1189_v7, 0 }
 0x42a   : > { %2166 = vmatpush3.bf16.xpose.msra.mxu1 %v1411_v9 }
 0x431   : > { %2168 = vmatmul.mubr.msk.bf16.vlgmr.msra.gmra.mrb[24].mxu1 %vm969_vm2, %v1258_v10 }
 0x44f   : > { %v1242_v11 = vpop.trf.xlu0 }
 0x450   : > { %2162 = vmatmul.mubr.msk.bf16.vlgmr.msra.gmra.mrb[16].mxu0 %vm969_vm2, %v1242_v11 }
 0x451   : > { %2179 = vmatprep.mubr.msk.bf16.mxu0 %vm2310_vm0, %v2309_v1  ;;  %2172 = vmatpush3.bf16.msra.mxu0 %v2247_v28 }
 0x452   : > { %2173 = vmatprep.subr.bf16.mxu0 %v2309_v1 }
 0x455   : > { %2174 = vmatpush3.bf16.msra.mxu0 %v2248_v29 }
 0x456   : > { %2175 = vmatprep.subr.bf16.mxu0 %v2309_v1 }
 0x459   : > { %2176 = vmatpush3.bf16.msra.mxu0 %v2249_v56 }
 0x45a   : > { %2177 = vmatprep.subr.bf16.mxu0 %v2309_v1 }
 0x45d   : > { %2178 = vmatpush3.bf16.msra.mxu0 %v2250_v2 }
 0x4cf   : > { %v1353_v12 = vpop.f32.mrb[20].mxu1 }
 0x4d0   : > { %1486 = vxpose.xlu1.b32.start [1/2] (short) (narrow) %v1353_v12, 8  ;;  %v2157_v13 = vpop.f32.mrb[21].mxu1 }
 0x4d1   : > { %v1356_v14 = vpop.f32.mrb[22].mxu1 }
 0x4d2   : > { %v2158_v15 = vpop.f32.mrb[23].mxu1 }
 0x4d4   : > { %1487 = vxpose.xlu1.b32.end [2/2] (short) (narrow) %v1356_v14, 8 }
 0x4f3   : > { %v1306_v16 = vpop.f32.mrb[12].mxu0 }
 0x4f4   : > { %1454 = vxpose.xlu0.b32.start [1/2] (short) (narrow) %v1306_v16, 8  ;;  %v2151_v17 = vpop.f32.mrb[13].mxu0 }
 0x4f5   : > { %v1309_v18 = vpop.f32.mrb[14].mxu0 }
 0x4f6   : > { %v2152_v19 = vpop.f32.mrb[15].mxu0 }
 0x4f8   : > { %1455 = vxpose.xlu0.b32.end [2/2] (short) (narrow) %v1309_v18, 8 }
 0x504   : > { %v1447_v20 = vpop.f32.mrb[24].mxu1 }
 0x505   : > { %1550 = vxpose.xlu1.b32.start [1/2] (short) (narrow) %v1447_v20, 8  ;;  %v2169_v21 = vpop.f32.mrb[25].mxu1 }
 0x506   : > { %v1450_v22 = vpop.f32.mrb[26].mxu1 }
 0x507   : > { %v2170_v23 = vpop.f32.mrb[27].mxu1 }
 0x509   : > { %1551 = vxpose.xlu1.b32.end [2/2] (short) (narrow) %v1450_v22, 8 }
 0x523   : > { %v1400_v24 = vpop.f32.mrb[16].mxu0 }
 0x524   : > { %1518 = vxpose.xlu0.b32.start [1/2] (short) (narrow) %v1400_v24, 8  ;;  %v2163_v25 = vpop.f32.mrb[17].mxu0 }
 0x525   : > { %v1403_v26 = vpop.f32.mrb[18].mxu0 }
 0x526   : > { %v2164_v27 = vpop.f32.mrb[19].mxu0 }
 0x528   : > { %1519 = vxpose.xlu0.b32.end [2/2] (short) (narrow) %v1403_v26, 8  ;;  %v2022_v26 = vld [vmem:[%s2643_s11] ss:$0 sm:$0xff] }
 0x550   : > { %v1502_v30 = vpop.trf.xlu1 }
 0x574   : > { %v1470_v34 = vpop.trf.xlu0 }
 0x585   : > { %v1566_v39 = vpop.trf.xlu1 }
 0x586   : > { %v1598_v42 = vcombine.low %v1502_v30, %v1566_v39  ;;  %v1599_v43 = vcombine.high %v1502_v30, %v1566_v39 }
 0x588   : > { %v1606_v48 = vrot.slane %v1598_v42, %v1589_v41  ;;  %v1613_v49 = vrot.slane %v1599_v43, %v1589_v41 }
 0x5a4   : > { %v1534_v44 = vpop.trf.xlu0 }
 0x5a5   : > { %v1582_v45 = vcombine.low %v1470_v34, %v1534_v44  ;;  %v1583_v46 = vcombine.high %v1470_v34, %v1534_v44  ;;  %v2029_v44 = vld [vmem:[%s2645_s13] ss:$0 sm:$0xff] }
 0x5a7   : > { %v1590_v50 = vrot.slane %v1582_v45, %v1589_v41  ;;  %v1597_v51 = vrot.slane %v1583_v46, %v1589_v41 }
 0x5a9   : > { %v1614_v52 = vcombine.low %v1590_v50, %v1606_v48  ;;  %v1615_v53 = vcombine.high %v1590_v50, %v1606_v48  ;;  %v1630_v54 = vcombine.low %v1597_v51, %v1613_v49  ;;  %v1631_v55 = vcombine.high %v1597_v51, %v1613_v49 }
 0x5ab   : > { %v1622_v57 = vrot.slane %v1614_v52, %v1621_v47  ;;  %v1629_v58 = vrot.slane %v1615_v53, %v1621_v47  ;;  %v1638_v59 = vrot.slane %v1630_v54, %v1621_v47  ;;  %v1645_v60 = vrot.slane %v1631_v55, %v1621_v47 }
 0x5ad   : > { %v1650_v61 = vcombine.low %v1622_v57, %v1629_v58  ;;  %v2020_v62 = vcombine.high %v1622_v57, %v1629_v58  ;;  %v1666_v63 = vcombine.low %v1638_v59, %v1645_v60  ;;  %v2021_v0 = vcombine.high %v1638_v59, %v1645_v60 }
 0x5af   : > { %v1657_v3 = vrot.slane %v1650_v61, %v1589_v41  ;;  %v1665_v4 = vrot.slane %v2020_v62, %v1589_v41  ;;  %v1673_v5 = vrot.slane %v1666_v63, %v1589_v41  ;;  %v1681_v6 = vrot.slane %v2021_v0, %v1589_v41 }
 0x5b1   : > { %v1683_v7 = vcombine.high %v1657_v3, %v1665_v4  ;;  %v1699_v9 = vcombine.high %v1673_v5, %v1681_v6  ;;  %v1682_v10 = vcombine.low %v1657_v3, %v1665_v4  ;;  %v1698_v11 = vcombine.low %v1673_v5, %v1681_v6 }
 0x5b3   : > { %v1697_v12 = vrot.slane %v1683_v7, %v1621_v47  ;;  %v1713_v13 = vrot.slane %v1699_v9, %v1621_v47  ;;  %v1690_v1 = vrot.slane %v1682_v10, %v1621_v47  ;;  %v1706_v14 = vrot.slane %v1698_v11, %v1621_v47 }
 0x5b5   : > { %v1716_v15 = vcombine.low %v1697_v12, %v1713_v13  ;;  %v1715_v16 = vcombine.high %v1690_v1, %v1706_v14  ;;  %v1714_v17 = vcombine.low %v1690_v1, %v1706_v14  ;;  %v1717_v18 = vcombine.high %v1697_v12, %v1713_v13 }
 0x5b7   : > { %1723 = vrot.lane.b32.xlu1 %v1716_v15, %s2317_s26  ;;  %1719 = vrot.lane.b32.xlu0 %v1715_v16, %s2318_s30  ;;  %s569_s26 = scalar_lea.vmem %s2646_s14, %s2464_s25 }
 0x5bb   : > { %1727 = vrot.lane.b32.xlu1 %v1717_v18, %s2319_s27 }
 0x629   : > { %v1724_v19 = vpop.permute.xlu1 %1723  ;;  %v1720_v20 = vpop.permute.xlu0 %1719 }
 0x62a   : > { %v1730_v21 = vsel %vm969_vm2, %v1714_v17, %v1720_v20 }
 0x62b   : > { %v1732_v23 = vsel %vm1731_vm3, %v1730_v21, %v1724_v19 }
 0x62d   : > { %v1728_v22 = vpop.permute.xlu1 %1727 }
 0x62e   : > { %v1734_v24 = vsel %vm1733_vm4, %v1732_v23, %v1728_v22 }
 0x62f   : > { %v1743_v25 = vpack.c.bf16 %v1734_v24, %v1734_v24 }
 0x631   : > { %2180 = vmatmul.mubr.msk.bf16.vlgmr.msra.gmra.mrb[20].mxu0 %vm617_vm1, %v1743_v25 }
 0x704   : > { %v1812_v27 = vpop.f32.mrb[20].mxu0 }
 0x705   : > { %v1813_v28 = vadd.f32 %v2022_v26, %v1812_v27  ;;  %v2181_v29 = vpop.f32.mrb[21].mxu0 }
 0x706   : > { %v1815_v30 = vpop.f32.mrb[22].mxu0 }
 0x707   : > { %v2182_v31 = vpop.f32.mrb[23].mxu0  ;;  %v1818_v32 = vadd.f32 %v1813_v28, %v2473_v8  ;;  %v2028_v8 = vld [vmem:[%s2644_s12] ss:$0 sm:$0xff] }
 0x709   : > { %v1821_v33 = vsel %vm617_vm1, %v1818_v32, 0.0 }
 0x70a   : > { %1822 = vadd.xlane.f32.xlu0 %v1821_v33 }
 0x797   : > { %v1823_v34 = vpop.xlane.xlu0 %1822 }
 0x798   : > { %v1825_v35 = vmul.f32 0.015625, %v1823_v34 }
 0x79a   : > { %v1826_v36 = vsub.f32 %v1818_v32, %v1825_v35 }
 0x79c   : > { %v1827_v37 = vmul.f32 %v1826_v36, %v1826_v36 }
 0x79e   : > { %v1828_v38 = vsel %vm617_vm1, %v1827_v37, 0.0 }
 0x79f   : > { %1829 = vadd.xlane.f32.xlu1 %v1828_v38 }
 0x82c   : > { %v1830_v39 = vpop.xlane.xlu1 %1829 }
 0x82d   : > { %v1831_v40 = vmul.f32 0.015625, %v1830_v39 }
 0x82f   : > { %v1832_v41 = vadd.f32 1e-05, %v1831_v40 }
 0x831   : > { %2267 = vrsqrt.f32 %v1832_v41 }
 0x83b   : > { %v2268_v42 = vpop.eup %2267 }
 0x83c   : > { %v1834_v43 = vmul.f32 %v2268_v42, %v1826_v36 }
 0x83e   : > { %v1841_v45 = vmul.f32 %v2028_v8, %v1834_v43 }
 0x840   : > { %v1848_v46 = vadd.f32 %v2029_v44, %v1841_v45 }
 0x842   : > { %1849 = vst.msk [vmem:[%s569_s26] sm:$0xff] %vm617_vm1, %v1848_v46 }
 0x843 PF: > { %s24_s17 = sadd.s32 1, %s2307_s17   ;;  %s2648_s27 = sld [smem:[#allocation2_spill]] }
 0x844   : > { %p21_p7 = scmp.ge.s32.totalorder %s24_s17, 6   ;;  %s2649_s29 = smov %s2299_s15 }
 0x845   : > { %s2650_s30 = smov %s2303_s16  ;;  %s2651_s15 = smov %s2654_s18 }
 0x846   :  { %23 = sbr.rel (!%p21_p7) target bundleno = 3 (0x3), region = 115 }
 0x849   : > { %s2652_s16 = smov %s2648_s27 }

// kernel: pe_conditional_transformer.15
= control target key start
LH: loop header
LB: loop body
LE: loop exit
PB: predicated region body
PF: predicated region fallthrough
CT: control target
= control target key end

     0   :  { %12 = vsyncpa [#allocation3], 0  ;;  %s1009_s0 = inlined_call_operand.vmem [shape: f32[32,64], index: 0, kind: input, shape index: {}]   ;;  %s1010_s1 = inlined_call_operand.vmem [shape: bf16[64,128], index: 1, kind: input, shape index: {}]   ;;  %s1011_s2 = inlined_call_operand.vmem [shape: f32[1,128], index: 2, kind: input, shape index: {}]   ;;  %s1012_s3 = inlined_call_operand.vmem [shape: bf16[128,64], index: 3, kind: input, shape index: {}]   ;;  %s1013_s4 = inlined_call_operand.vmem [shape: f32[1,64], index: 4, kind: input, shape index: {}]   ;;  %s1014_s5 = inlined_call_operand.vmem [shape: f32[1,64], index: 5, kind: input, shape index: {}]   ;;  %s1015_s6 = inlined_call_operand.vmem [shape: f32[1,64], index: 6, kind: input, shape index: {}]   ;;  %s1016_s7 = inlined_call_operand.hbm [shape: f32[32,64], index: 7, kind: output, shape index: {}]  }
   0x1   :  { %14 = vsyncpa [#allocation3 + $0x1], 0  ;;  %s852_s24 = smov 0   ;;  %s854_s25 = smov 0  }
   0x2   :  { %s856_s26 = smov 0   ;;  %s858_s27 = smov 0  }
   0x3 LB: > { %s873_s28 = sadd.s32 4294967295, %s805_s27   ;;  %s608_s29 = sadd.s32 4294967294, %s805_s27   ;;  %s805_s27 = sphi %s858_s27, %s1022_s27   ;;  %s801_s26 = sphi %s856_s26, %s1021_s26   ;;  %s797_s25 = sphi %s854_s25, %s1020_s25   ;;  %s793_s24 = sphi %s852_s24, %s1019_s24  }
   0x4   : > { %s877_s30 = sadd.s32 1, %s805_s27   ;;  %s179_s8 = sadd.s32 1, %s801_s26 }
   0x5   : > { %s176_s9 = ssub.s32 %s805_s27, %s877_s30  ;;  %p189_p0 = scmp.ne.s32.totalorder %s801_s26, %s797_s25 }
   0x6   : > { %p177_p1 = scmp.eq.s32.totalorder %s176_s9, 0  ;;  %p190_p2 = scmp.eq.s32.totalorder %s873_s28, 1 }
   0x7   : > { %p195_p3 = scmp.ne.s32.totalorder %s797_s25, %s793_s24  ;;  %p196_p4 = scmp.eq.s32.totalorder %s608_s29, 1 }
   0x8   : > { %s888_s10 = scalar_select %p177_p1, %s801_s26, %s179_s8  }
   0x9   : > { %p890_p5 = por %p190_p2, %p189_p0  ;;  %p894_p6 = por %p196_p4, %p195_p3 }
   0xa   : > { %p611_p7 = scmp.ge.s32.totalorder %s805_s27, 1  ;;  %p241_p8 = scmp.lt.s32.totalorder %s805_s27, 3 }
   0xc   : > { %p242_p9 = pnand %p611_p7, %p241_p8 }
   0xd   : > { %v727_v0 = vld [vmem:[%s1010_s1] sm:$0xff] (!%p242_p9)   ;;  %v807_v1 = vmov (!%p242_p9), 0.0   ;;  %v728_v2 = vld [vmem:[%s1010_s1 + $0x8] sm:$0xff] (!%p242_p9)   ;;  %vm808_vm0 = vmmov (!%p242_p9), 0   ;;  %s613_s17 = sshll.u32 (!%p242_p9), %s873_s28, 1  ;;  %v729_v4 = vld [vmem:[%s1010_s1 + $0x10] sm:$0xff] (!%p242_p9)  }
   0xe   : > { %245 = sbr.rel (%p242_p9) target bundleno = 798 (0x31e), region = 48  ;;  %652 = vmatprep.subr.bf16.mxu0 (!%p242_p9), %v807_v1  ;;  %664 = vmatprep.subr.bf16.mxu1 (!%p242_p9), %v807_v1  ;;  %p274_p10 = scmp.lt.s32.totalorder (!%p242_p9), %s613_s17, 3  ;;  %v731_v3 = vld [vmem:[%s1012_s3] sm:$0xff] (!%p242_p9)   ;;  %v732_v5 = vld [vmem:[%s1012_s3 + $0x8] sm:$0xff] (!%p242_p9)   ;;  %v730_v6 = vld [vmem:[%s1010_s1 + $0x18] sm:$0xff] (!%p242_p9)   ;;  %vm323_vm1 = vcmask (!%p242_p9), 523264  }
   0xf   : > { %653 = vmatpush3.bf16.msra.mxu0 (!%p242_p9), %v727_v0  ;;  %660 = vmatprep.mubr.msk.bf16.mxu0 (!%p242_p9), %vm808_vm0, %v807_v1  ;;  %v733_v7 = vld [vmem:[%s1012_s3 + $0x10] sm:$0xff] (!%p242_p9)   ;;  %v734_v11 = vld [vmem:[%s1012_s3 + $0x18] sm:$0xff] (!%p242_p9)   ;;  %v735_v12 = vld [vmem:[%s1012_s3 + $0x20] sm:$0xff] (!%p242_p9)   ;;  %s809_s18 = smov (!%p242_p9), [#allocation2]  }
  0x10   : > { %654 = vmatprep.subr.bf16.mxu0 (!%p242_p9), %v807_v1  ;;  %680 = vmatprep.mubr.msk.bf16.mxu1 (!%p242_p9), %vm808_vm0, %v807_v1  ;;  %v736_v13 = vld [vmem:[%s1012_s3 + $0x28] sm:$0xff] (!%p242_p9)   ;;  %v737_v14 = vld [vmem:[%s1012_s3 + $0x30] sm:$0xff] (!%p242_p9)   ;;  %v738_v15 = vld [vmem:[%s1012_s3 + $0x38] sm:$0xff] (!%p242_p9)   ;;  %s747_s19 = sshll.u32 (!%p242_p9), %s809_s18, 4  ;;  %s748_s19 = int_to_ptr.vmem [resolvable:$false] %s747_s19 }
  0x11   : > { %665 = vmatpush3.bf16.msra.mxu1 (!%p242_p9), %v731_v3  ;;  %v615_v16 = vld [vmem:[%s1011_s2] ss:$0 sm:$0xff] (!%p242_p9)  ;;  %s749_s20 = scalar_lea.vmem (!%p242_p9), %s748_s19, 512 }
  0x12   : > { %666 = vmatprep.subr.bf16.mxu1 (!%p242_p9), %v807_v1  ;;  %v621_v26 = vld [vmem:[%s1013_s4] ss:$0 sm:$0xff] (!%p242_p9) }
  0x13   : > { %655 = vmatpush3.bf16.msra.mxu0 (!%p242_p9), %v728_v2  ;;  %v630_v54 = vld [vmem:[%s1014_s5] ss:$0 sm:$0xff] (!%p242_p9) }
  0x14   : > { %656 = vmatprep.subr.bf16.mxu0 (!%p242_p9), %v807_v1  ;;  %v631_v56 = vld [vmem:[%s1015_s6] ss:$0 sm:$0xff] (!%p242_p9) }
  0x15   : > { %s1024_s17 = smov (!%p274_p10, %s613_s17), 3  ;;  %667 = vmatpush3.bf16.msra.mxu1 %v732_v5 }
  0x16   : > { %s614_s29 = sshll.u32 %s1024_s17, 3  ;;  %668 = vmatprep.subr.bf16.mxu1 %v807_v1  ;;  %s270_s17 = sand.u32 1, %s797_s25  }
  0x17   : > { %s277_s13 = scalar_lea.vmem %s1009_s0, %s614_s29  ;;  %657 = vmatpush3.bf16.msra.mxu0 %v729_v4  ;;  %s612_s21 = sshll.u32 %s270_s17, 4 }
  0x18   : > { %v281_v8 = vld [vmem:[%s277_s13] sm:$0xff]  ;;  %v282_v9 = vld [vmem:[%s277_s13 + $0x8] sm:$0xff]  ;;  %658 = vmatprep.subr.bf16.mxu0 %v807_v1  ;;  %s637_s29 = sshll.u32 %s873_s28, 8  ;;  %s272_s8 = scalar_lea.vmem [#allocation2], %s612_s21 }
  0x19   : > { %v291_v10 = vpack.c.bf16 %v282_v9, %v281_v8  ;;  %669 = vmatpush3.bf16.msra.mxu1 %v733_v7  ;;  %s546_s9 = sshll.u32 %s272_s8, 4  ;;  %s963_s15 = scalar_lea.hbm %s1016_s7, %s637_s29  ;;  %s965_s9 = int_to_ptr.vmem [resolvable:$true] %s546_s9 }
  0x1a   : > { %670 = vmatprep.subr.bf16.mxu1 %v807_v1  ;;  %s968_s16 = scalar_lea.sflag [#allocation3], %s270_s17  ;;  %s743_s28 = scalar_lea.vmem %s965_s9, 256 }
  0x1b   : > { %659 = vmatpush3.bf16.msra.mxu0 %v730_v6  ;;  %p744_p11 = scmp.ne.s32.totalorder %s965_s9, %s743_s28  ;;  %p750_p0 = scmp.lt.s32.totalorder %s965_s9, %s748_s19 }
  0x1c   : > { %p751_p1 = scmp.lt.s32.totalorder %s749_s20, %s743_s28 }
  0x1d   : > { %671 = vmatpush3.bf16.msra.mxu1 %v734_v11  ;;  %p745_p12 = pnand %p744_p11, %p890_p5 }
  0x1e   : > { %661 = vmatmul.mubr.msk.bf16.vlgmr.msra.gmra.mrb[0].mxu0 %vm323_vm1, %v291_v10  ;;  %672 = vmatprep.subr.bf16.mxu1 %v807_v1  ;;  %p752_p2 = por %p751_p1, %p750_p0 }
  0x1f   : > { %p746_p13 = pneg %p745_p12 }
  0x21   : > { %673 = vmatpush3.bf16.msra.mxu1 %v735_v12  ;;  %p753_p3 = pnand %p752_p2, %p746_p13 }
  0x22   : > { %674 = vmatprep.subr.bf16.mxu1 %v807_v1 }
  0x25   : > { %675 = vmatpush3.bf16.msra.mxu1 %v736_v13 }
  0x26   : > { %676 = vmatprep.subr.bf16.mxu1 %v807_v1 }
  0x29   : > { %677 = vmatpush3.bf16.msra.mxu1 %v737_v14 }
  0x2a   : > { %678 = vmatprep.subr.bf16.mxu1 %v807_v1 }
  0x2d   : > { %679 = vmatpush3.bf16.msra.mxu1 %v738_v15 }
  0xf1   : > { %v361_v17 = vpop.f32.mrb[0].mxu0 }
  0xf2   : > { %v362_v18 = vadd.f32 %v615_v16, %v361_v17  ;;  %v662_v19 = vpop.f32.mrb[1].mxu0 }
  0xf3   : > { %v364_v20 = vpop.f32.mrb[2].mxu0 }
  0xf4   : > { %v365_v21 = vadd.f32 %v615_v16, %v364_v20  ;;  %v663_v22 = vpop.f32.mrb[3].mxu0  ;;  %v368_v23 = vmax.f32 %v362_v18, 0.0 }
  0xf6   : > { %v369_v24 = vmax.f32 %v365_v21, 0.0 }
  0xf8   : > { %v386_v25 = vpack.c.bf16 %v369_v24, %v368_v23 }
  0xfa   : > { %681 = vmatmul.mubr.bf16.vlgmr.msra.gmra.mrb[0].mxu1 %v386_v25 }
 0x1cd   : > { %v476_v27 = vpop.f32.mrb[0].mxu1 }
 0x1ce   : > { %v477_v28 = vadd.f32 %v621_v26, %v476_v27  ;;  %v682_v29 = vpop.f32.mrb[1].mxu1 }
 0x1cf   : > { %v479_v30 = vpop.f32.mrb[2].mxu1 }
 0x1d0   : > { %v480_v31 = vadd.f32 %v621_v26, %v479_v30  ;;  %v683_v32 = vpop.f32.mrb[3].mxu1  ;;  %v483_v33 = vadd.f32 %v477_v28, %v281_v8 }
 0x1d2   : > { %v487_v34 = vsel %vm323_vm1, %v483_v33, 0.0  ;;  %v484_v35 = vadd.f32 %v480_v31, %v282_v9 }
 0x1d3   : > { %488 = vadd.xlane.f32.xlu0 %v487_v34 }
 0x1d4   : > { %v490_v36 = vsel %vm323_vm1, %v484_v35, 0.0 }
 0x1d7   : > { %491 = vadd.xlane.f32.xlu0 %v490_v36 }
 0x260   : > { %v489_v37 = vpop.xlane.xlu0 %488 }
 0x261   : > { %v494_v38 = vmul.f32 0.015625, %v489_v37 }
 0x263   : > { %v496_v39 = vsub.f32 %v483_v33, %v494_v38 }
 0x264   : > { %v492_v40 = vpop.xlane.xlu0 %491 }
 0x265   : > { %v495_v41 = vmul.f32 0.015625, %v492_v40  ;;  %v498_v42 = vmul.f32 %v496_v39, %v496_v39 }
 0x267   : > { %v497_v43 = vsub.f32 %v484_v35, %v495_v41  ;;  %v500_v44 = vsel %vm323_vm1, %v498_v42, 0.0 }
 0x268   : > { %501 = vadd.xlane.f32.xlu1 %v500_v44 }
 0x269   : > { %v499_v45 = vmul.f32 %v497_v43, %v497_v43 }
 0x26b   : > { %v503_v46 = vsel %vm323_vm1, %v499_v45, 0.0 }
 0x26c   : > { %504 = vadd.xlane.f32.xlu1 %v503_v46 }
 0x2f5   : > { %v502_v47 = vpop.xlane.xlu1 %501 }
 0x2f6   : > { %v506_v48 = vmul.f32 0.015625, %v502_v47 }
 0x2f8   : > { %v508_v49 = vadd.f32 1e-05, %v506_v48 }
 0x2f9   : > { %v505_v50 = vpop.xlane.xlu1 %504 }
 0x2fa   : > { %739 = vrsqrt.f32 %v508_v49  ;;  %v507_v51 = vmul.f32 0.015625, %v505_v50 }
 0x2fc   : > { %v509_v52 = vadd.f32 1e-05, %v507_v51 }
 0x2fe   : > { %741 = vrsqrt.f32 %v509_v52 }
 0x304   : > { %v740_v53 = vpop.eup %739 }
 0x305   : > { %v512_v55 = vmul.f32 %v740_v53, %v496_v39 }
 0x307   : > { %v520_v57 = vmul.f32 %v630_v54, %v512_v55 }
 0x308   : > { %v742_v58 = vpop.eup %741 }
 0x309   : > { %v513_v59 = vmul.f32 %v742_v58, %v497_v43  ;;  %v528_v60 = vadd.f32 %v631_v56, %v520_v57 }
 0x30b   : > { %v521_v61 = vmul.f32 %v630_v54, %v513_v59  ;;  %530 = vst.msk [vmem:[%s272_s8] sm:$0xff] %vm323_vm1, %v528_v60 }
 0x30d   : > { %v529_v62 = vadd.f32 %v631_v56, %v521_v61 }
 0x30f   : > { %531 = vst.msk [vmem:[%s272_s8 + $0x8] sm:$0xff] %vm323_vm1, %v529_v62 }
 0x310   : > { %756 = shalt.err (!%p753_p3)
}
 0x311   : > { %s757_s17 = scalar_lea.hbm %s963_s15, 256  ;;  %s761_s23 = scalar_lea.hbm %s1016_s7, 512 }
 0x312   : > { %p758_p4 = scmp.ne.s32.totalorder %s963_s15, %s757_s17  ;;  %p762_p9 = scmp.lt.u32.totalorder %s963_s15, %s1016_s7 }
 0x313   : > { %p763_p10 = scmp.lt.u32.totalorder %s761_s23, %s757_s17  ;;  %p765_p12 = scmp.lt.u32.totalorder %s757_s17, %s963_s15 }
 0x314   : > { %p759_p7 = pnand %p758_p4, %p890_p5 }
 0x315   : > { %p764_p11 = por %p763_p10, %p762_p9 }
 0x316   : > { %p760_p8 = pneg %p759_p7 }
 0x317   : > { %p766_p13 = por %p765_p12, %p764_p11 }
 0x319   : > { %p767_p0 = pnand %p766_p13, %p760_p8 }
 0x31b   : > { %770 = shalt.err (!%p767_p0)
}
 0x31c   : > { %s810_s13 = smov 128   ;;  %s811_s14 = smov 8  }
 0x31d   : > { %684 = dma.vmem_to_hbm [thread:$0]  (%p890_p5), %s965_s9, 256, %s963_s15, %s968_s16, %s810_s13, %s810_s13, %s811_s14  }
 0x31e PF: > { %p690_p1 = scmp.ge.s32.totalorder %s805_s27, 2  ;;  %s561_s28 = sand.u32 1, %s793_s24  }
 0x31f   : > { %s562_s18 = scalar_lea.sflag [#allocation3], %s561_s28 }
 0x320   : > { %p687_p2 = pnand %p690_p1, %p894_p6 }
 0x322   : > { %788 = dma.done.wait (!%p687_p2), %s562_s18, 256  }
 0x323   : > { %790 = vsyncadd (!%p687_p2), %s562_s18, 4294967040  ;;  %p17_p3 = scmp.ge.s32.totalorder %s877_s30, 4   ;;  %s1019_s24 = smov %s797_s25 }
 0x324   : > { %s1020_s25 = smov %s801_s26  ;;  %s1021_s26 = smov %s888_s10 }
 0x325   : > { %s1022_s27 = smov %s877_s30  ;;  %19 = sbr.rel (!%p17_p3) target bundleno = 3 (0x3), region = 83 }
 0x32c   :  { %567 = vsyncpa [#allocation3], 1 }
 0x32d   :  { %569 = vsyncpa [#allocation3 + $0x1], 1 }

// kernel: pe_conditional_transformer.12
= control target key start
LH: loop header
LB: loop body
LE: loop exit
PB: predicated region body
PF: predicated region fallthrough
CT: control target
= control target key end

     0   :  { %s1992_s13 = smov 0   ;;  %s1994_s14 = smov 0   ;;  %s2193_s0 = inlined_call_operand.vmem [shape: f32[2,24,64], index: 0, kind: input, shape index: {}]   ;;  %s2194_s1 = inlined_call_operand.vmem [shape: f32[2,16,64], index: 1, kind: input, shape index: {}]   ;;  %s2195_s2 = inlined_call_operand.vmem [shape: bf16[64,64], index: 2, kind: input, shape index: {}]   ;;  %s2196_s3 = inlined_call_operand.vmem [shape: f32[1,64], index: 3, kind: input, shape index: {}]   ;;  %s2197_s4 = inlined_call_operand.vmem [shape: bf16[64,128], index: 4, kind: input, shape index: {}]   ;;  %s2198_s5 = inlined_call_operand.vmem [shape: f32[1,128], index: 5, kind: input, shape index: {}]   ;;  %s2199_s6 = inlined_call_operand.vmem [shape: bf16[64,64], index: 6, kind: input, shape index: {}]   ;;  %s2200_s7 = inlined_call_operand.vmem [shape: f32[1,64], index: 7, kind: input, shape index: {}]   ;;  %s2201_s8 = inlined_call_operand.vmem [shape: f32[1,64], index: 8, kind: input, shape index: {}]   ;;  %s2202_s9 = inlined_call_operand.vmem [shape: f32[1,64], index: 9, kind: input, shape index: {}]   ;;  %s2203_s10 = inlined_call_operand.vmem [shape: f32[2,24,64], index: 10, kind: output, shape index: {}]  }
   0x1   :  { %s1996_s15 = smov 0   ;;  %s1998_s16 = smov 0  }
   0x2   :  { %s2000_s17 = smov 0  }
   0x3 LB: > { %s29_s18 = sadd.s32 1, %s1916_s15  ;;  %s32_s19 = sadd.s32 1, %s1920_s16  ;;  %s1924_s17 = sphi %s2000_s17, %s20_s17   ;;  %s1920_s16 = sphi %s1998_s16, %s2207_s16   ;;  %s1916_s15 = sphi %s1996_s15, %s2206_s15   ;;  %s1912_s14 = sphi %s1994_s14, %s2205_s14   ;;  %s1908_s13 = sphi %s1992_s13, %s2204_s13  }
   0x4   : > { %p30_p0 = scmp.ge.s32.totalorder %s29_s18, 3  ;;  %p1650_p1 = scmp.ge.s32.totalorder %s1924_s17, 1 }
   0x5   : > { %p341_p2 = scmp.lt.s32.totalorder %s1924_s17, 7 }
   0x6   : > { %s2209_s18 = smov (%p30_p0, %s29_s18), 0  ;;  %s2211_s19 = smov (!%p30_p0, %s32_s19), %s1920_s16 }
   0x7   : > { %p342_p3 = pnand %p1650_p1, %p341_p2  ;;  %p34_p4 = scmp.ge.s32.totalorder %s2211_s19, 2 }
   0x8   : > { %v1856_v0 = vld [vmem:[%s2197_s4] sm:$0xff] (!%p342_p3)   ;;  %v1926_v1 = vmov (!%p342_p3), 0.0   ;;  %v1857_v2 = vld [vmem:[%s2197_s4 + $0x8] sm:$0xff] (!%p342_p3)   ;;  %vm1927_vm0 = vmmov (!%p342_p3), 0   ;;  %p390_p5 = scmp.lt.s32.totalorder (!%p342_p3), %s1912_s14, 1  ;;  %p392_p6 = scmp.lt.s32.totalorder (!%p342_p3), %s1908_s13, 2 }
   0x9   : > { %s2213_s19 = smov (%p34_p4, %s2211_s19), 0  ;;  %345 = sbr.rel (%p342_p3) target bundleno = 2096 (0x830), region = 60 }
   0xa   : > { %1731 = vmatprep.subr.bf16.mxu1 (!%p342_p3), %v1926_v1  ;;  %1719 = vmatprep.subr.bf16.mxu0 (!%p342_p3), %v1926_v1  ;;  %v1858_v3 = vld [vmem:[%s2195_s2] sm:$0xff] (!%p342_p3)   ;;  %v1860_v4 = vld [vmem:[%s2195_s2 + $0x8] sm:$0xff] (!%p342_p3)   ;;  %v1859_v5 = vld [vmem:[%s2197_s4 + $0x10] sm:$0xff] (!%p342_p3)   ;;  %vm455_vm1 = vcmask (!%p342_p3), 523264   ;;  %s1928_s22 = smov (!%p342_p3), 80   ;;  %s1929_s23 = smov (!%p342_p3), 112  }
   0xb   : > { %1732 = vmatpush3.bf16.msra.mxu1 (!%p342_p3), %v1856_v0  ;;  %1739 = vmatprep.mubr.msk.bf16.mxu1 (!%p342_p3), %vm1927_vm0, %v1926_v1  ;;  %v1861_v6 = vld [vmem:[%s2197_s4 + $0x18] sm:$0xff] (!%p342_p3)   ;;  %v1862_v9 = vld [vmem:[%s2195_s2 + $0x10] sm:$0xff] (!%p342_p3)   ;;  %v1661_v14 = vld [vmem:[%s2198_s5] ss:$0 sm:$0xff] (!%p342_p3)  ;;  %s1930_s24 = smov (!%p342_p3), 96   ;;  %vm667_vm2 = vcmask (!%p342_p3), 130048  }
   0xc   : > { %1733 = vmatprep.subr.bf16.mxu1 (!%p342_p3), %v1926_v1  ;;  %1727 = vmatprep.mubr.msk.bf16.mxu0 (!%p342_p3), %vm1927_vm0, %v1926_v1  ;;  %v1863_v10 = vld [vmem:[%s2195_s2 + $0x18] sm:$0xff] (!%p342_p3)   ;;  %v1655_v16 = vld [vmem:[%s2196_s3] ss:$0 sm:$0xff] (!%p342_p3)  ;;  %s1931_s25 = smov (!%p342_p3), 64   ;;  %vm1429_vm3 = vcmask (!%p342_p3), 261120   ;;  %vm1431_vm4 = vcmask (!%p342_p3), 392192  }
   0xd   : > { %1720 = vmatpush3.bf16.msra.mxu0 (!%p342_p3), %v1858_v3 }
   0xe   : > { %1721 = vmatprep.subr.bf16.mxu0 (!%p342_p3), %v1926_v1 }
   0xf   : > { %1734 = vmatpush3.bf16.msra.mxu1 (!%p342_p3), %v1857_v2 }
  0x10   : > { %s2215_s14 = smov (!%p390_p5, %s1912_s14), 1  ;;  %1735 = vmatprep.subr.bf16.mxu1 %v1926_v1  ;;  %s2217_s13 = smov (!%p392_p6, %s1908_s13), 2 }
  0x11   : > { %s1687_s30 = sshll.u32 %s2215_s14, 4  ;;  %s1803_s21 = smul.u32 3, %s2215_s14  ;;  %1722 = vmatpush3.bf16.msra.mxu0 %v1860_v4 }
  0x12   : > { %s402_s20 = scalar_lea.vmem %s2194_s1, %s1687_s30  ;;  %1723 = vmatprep.subr.bf16.mxu0 %v1926_v1 }
  0x13   : > { %v413_v7 = vld [vmem:[%s402_s20] sm:$0xff]  ;;  %v414_v8 = vld [vmem:[%s402_s20 + $0x8] sm:$0xff]  ;;  %1736 = vmatpush3.bf16.msra.mxu1 %v1859_v5  ;;  %s2060_s26 = sadd.s32 %s1803_s21, %s2217_s13  ;;  %s1934_s21 = smov 32  }
  0x14   : > { %1737 = vmatprep.subr.bf16.mxu1 %v1926_v1  ;;  %s1651_s14 = sshll.u32 %s2060_s26, 3  ;;  %v507_v11 = vpack.c.bf16 %v414_v8, %v413_v7 }
  0x15   : > { %1724 = vmatpush3.bf16.msra.mxu0 %v1862_v9  ;;  %s397_s11 = scalar_lea.vmem %s2193_s0, %s1651_s14  ;;  %s410_s12 = scalar_lea.vmem %s2203_s10, %s1651_s14 }
  0x16   : > { %1725 = vmatprep.subr.bf16.mxu0 %v1926_v1  ;;  %v2073_v12 = vld [vmem:[%s397_s11] sm:$0xff] }
  0x17   : > { %1738 = vmatpush3.bf16.msra.mxu1 %v1861_v6  ;;  %v423_v13 = vpack.c.bf16 %v2073_v12, %v2073_v12 }
  0x18   : > { %1743 = vmatprep.subr.bf16.mxu1 %v1926_v1 }
  0x19   : > { %1726 = vmatpush3.bf16.msra.mxu0 %v1863_v10 }
  0x1a   : > { %1740 = vmatmul.mubr.msk.bf16.vlgmr.msra.gmra.mrb[0].mxu1 %vm455_vm1, %v507_v11  ;;  %1755 = vmatprep.subr.bf16.mxu0 %v1926_v1 }
  0x1b   : > { %1745 = vmatprep.mubr.msk.bf16.mxu1 %vm1927_vm0, %v1926_v1 }
  0x1c   : > { %1728 = vmatmul.mubr.msk.bf16.vlgmr.msra.gmra.mrb[0].mxu0 %vm455_vm1, %v423_v13 }
  0x1d   : > { %1757 = vmatprep.mubr.msk.bf16.mxu0 %vm1927_vm0, %v1926_v1 }
  0xed   : > { %v576_v15 = vpop.f32.mrb[0].mxu1 }
  0xee   : > { %v1741_v17 = vpop.f32.mrb[1].mxu1  ;;  %v577_v20 = vadd.f32 %v1661_v14, %v576_v15 }
  0xef   : > { %v579_v18 = vpop.f32.mrb[2].mxu1  ;;  %v493_v19 = vpop.f32.mrb[0].mxu0 }
  0xf0   : > { %v580_v21 = vadd.f32 %v1661_v14, %v579_v18  ;;  %v1742_v22 = vpop.f32.mrb[3].mxu1  ;;  %v494_v23 = vadd.f32 %v1655_v16, %v493_v19  ;;  %v1729_v24 = vpop.f32.mrb[1].mxu0 }
  0xf1   : > { %v496_v25 = vpop.f32.mrb[2].mxu0 }
  0xf2   : > { %v2091_v26 = vpack.c.bf16 %v580_v21, %v577_v20  ;;  %v583_v27 = vmul.f32 0.25, %v494_v23  ;;  %v1730_v28 = vpop.f32.mrb[3].mxu0 }
  0xf4   : > { %600 = vrot.lane.b32.xlu1 %v2091_v26, %s1928_s22  ;;  %594 = vrot.lane.b32.xlu0 %v2091_v26, %s1929_s23  ;;  %v584_v29 = vpack.c.bf16 %v583_v27, %v583_v27 }
  0xf8   : > { %597 = vrot.lane.b32.xlu0 %v2091_v26, %s1930_s24  ;;  %586 = vrot.lane.b32.xlu1 %v584_v29, %s1929_s23  ;;  %s1936_s23 = smov 48  }
  0xfc   : > { %588 = vrot.lane.b32.xlu0 %v584_v29, %s1930_s24  ;;  %590 = vrot.lane.b32.xlu1 %v584_v29, %s1928_s22  ;;  %s1935_s22 = smov 16  }
 0x11a   : > { %603 = vxpose.xlu0.c.b16.start.end [1/1] (short) (narrow) %v2091_v26, 16 }
 0x166   : > { %v595_v30 = vpop.permute.xlu0 %594  ;;  %v2097_v32 = vpop.permute.xlu1 %600 }
 0x167   : > { %619 = vxpose.xlu1.c.b16.start.end [1/1] (short) (narrow) %v595_v30, 16 }
 0x16a   : > { %v598_v31 = vpop.permute.xlu0 %597  ;;  %v587_v35 = vpop.permute.xlu1 %586 }
 0x16b   : > { %635 = vxpose.xlu0.c.b16.start.end [1/1] (short) (narrow) %v598_v31, 16 }
 0x16e   : > { %v589_v33 = vpop.permute.xlu0 %588  ;;  %v591_v36 = vpop.permute.xlu1 %590 }
 0x16f   : > { %651 = vxpose.xlu0.c.b16.start.end [1/1] (short) (narrow) %v2097_v32, 16 }
 0x180   : > { %v611_v34 = vpop.trf.xlu0 }
 0x181   : > { %1744 = vmatpush3.bf16.msra.mxu1 %v611_v34 }
 0x182   : > { %1749 = vmatprep.subr.bf16.mxu1 %v1926_v1 }
 0x184   : > { %1746 = vmatmul.mubr.msk.bf16.vlgmr.msra.gmra.mrb[4].mxu1 %vm667_vm2, %v584_v29 }
 0x185   : > { %1751 = vmatprep.mubr.msk.bf16.mxu1 %vm1927_vm0, %v1926_v1 }
 0x1cd   : > { %v627_v37 = vpop.trf.xlu1 }
 0x1ce   : > { %1750 = vmatpush3.bf16.msra.mxu1 %v627_v37 }
 0x1cf   : > { %1761 = vmatprep.subr.bf16.mxu1 %v1926_v1 }
 0x1d1   : > { %v643_v38 = vpop.trf.xlu0  ;;  %1752 = vmatmul.mubr.msk.bf16.vlgmr.msra.gmra.mrb[8].mxu1 %vm667_vm2, %v587_v35 }
 0x1d2   : > { %1756 = vmatpush3.bf16.msra.mxu0 %v643_v38  ;;  %1763 = vmatprep.mubr.msk.bf16.mxu1 %vm1927_vm0, %v1926_v1 }
 0x1d3   : > { %1767 = vmatprep.subr.bf16.mxu0 %v1926_v1 }
 0x1d5   : > { %1758 = vmatmul.mubr.msk.bf16.vlgmr.msra.gmra.mrb[4].mxu0 %vm667_vm2, %v589_v33  ;;  %v659_v39 = vpop.trf.xlu0 }
 0x1d6   : > { %1762 = vmatpush3.bf16.msra.mxu1 %v659_v39  ;;  %1769 = vmatprep.mubr.msk.bf16.mxu0 %vm1927_vm0, %v1926_v1 }
 0x1d7   : > { %1773 = vmatprep.subr.bf16.mxu1 %v1926_v1 }
 0x1d9   : > { %1764 = vmatmul.mubr.msk.bf16.vlgmr.msra.gmra.mrb[12].mxu1 %vm667_vm2, %v591_v36 }
 0x1da   : > { %1775 = vmatprep.mubr.msk.bf16.mxu1 %vm1927_vm0, %v1926_v1 }
 0x257   : > { %v705_v40 = vpop.f32.mrb[4].mxu1 }
 0x258   : > { %v1747_v41 = vpop.f32.mrb[5].mxu1  ;;  %v840_v42 = vsel %vm667_vm2, %v705_v40, -inf }
 0x259   : > { %v708_v43 = vpop.f32.mrb[6].mxu1  ;;  %841 = vmax.xlane.f32.xlu1 %v840_v42 }
 0x25a   : > { %v1748_v44 = vpop.f32.mrb[7].mxu1 }
 0x2a4   : > { %v748_v45 = vpop.f32.mrb[8].mxu1 }
 0x2a5   : > { %v1753_v46 = vpop.f32.mrb[9].mxu1  ;;  %v843_v47 = vsel %vm667_vm2, %v748_v45, -inf }
 0x2a6   : > { %844 = vmax.xlane.f32.xlu0 %v843_v47  ;;  %v751_v48 = vpop.f32.mrb[10].mxu1 }
 0x2a7   : > { %v1754_v49 = vpop.f32.mrb[11].mxu1 }
 0x2a8   : > { %v791_v50 = vpop.f32.mrb[4].mxu0 }
 0x2a9   : > { %v1759_v51 = vpop.f32.mrb[5].mxu0  ;;  %v846_v52 = vsel %vm667_vm2, %v791_v50, -inf }
 0x2aa   : > { %847 = vmax.xlane.f32.xlu1 %v846_v52  ;;  %v794_v53 = vpop.f32.mrb[6].mxu0 }
 0x2ab   : > { %v1760_v54 = vpop.f32.mrb[7].mxu0 }
 0x2ac   : > { %v834_v55 = vpop.f32.mrb[12].mxu1 }
 0x2ad   : > { %v1765_v56 = vpop.f32.mrb[13].mxu1  ;;  %v849_v57 = vsel %vm667_vm2, %v834_v55, -inf }
 0x2ae   : > { %850 = vmax.xlane.f32.xlu0 %v849_v57  ;;  %v837_v58 = vpop.f32.mrb[14].mxu1 }
 0x2af   : > { %v1766_v59 = vpop.f32.mrb[15].mxu1 }
 0x2bb   : > { %888 = vrot.lane.b32.xlu1 %v2091_v26, %s1931_s25 }
 0x2c4   : > { %890 = vrot.lane.b32.xlu0 %v595_v30, %s1931_s25 }
 0x2e6   : > { %v842_v60 = vpop.xlane.xlu1 %841 }
 0x2e7   : > { %v852_v61 = vsub.f32 %v705_v40, %v842_v60 }
 0x2e9   : > { %v856_v62 = vmul.f32 1.442695, %v852_v61 }
 0x2eb   : > { %1868 = vpow2.f32 %v856_v62  ;;  %v1864_v62 = vld [vmem:[%s2199_s6] sm:$0xff]  }
 0x2f5   : > { %v1869_v63 = vpop.eup %1868 }
 0x2f6   : > { %v864_v0 = vsel %vm667_vm2, %v1869_v63, 0.0 }
 0x2f7   : > { %865 = vadd.xlane.f32.xlu1 %v864_v0 }
 0x308   : > { %892 = vrot.lane.b32.xlu1 %v598_v31, %s1931_s25 }
 0x333   : > { %v845_v2 = vpop.xlane.xlu0 %844 }
 0x334   : > { %v853_v3 = vsub.f32 %v748_v45, %v845_v2  ;;  %v1932_v2 = vmov 1983009808  }
 0x336   : > { %v858_v4 = vmul.f32 1.442695, %v853_v3  ;;  %v1283_v3 = vunpack.c.l.s4 %v1932_v2 }
 0x337   : > { %v848_v5 = vpop.xlane.xlu1 %847 }
 0x338   : > { %1870 = vpow2.f32 %v858_v4  ;;  %v854_v6 = vsub.f32 %v791_v50, %v848_v5  ;;  %v1285_v4 = vlaneseq }
 0x33a   : > { %v860_v7 = vmul.f32 1.442695, %v854_v6  ;;  %v1933_v6 = vmov 1934713408  }
 0x33b   : > { %v851_v13 = vpop.xlane.xlu0 %850  ;;  %v889_v16 = vpop.permute.xlu1 %888 }
 0x33c   : > { %1872 = vpow2.f32 %v860_v7  ;;  %v855_v14 = vsub.f32 %v834_v55, %v851_v13  ;;  %v1315_v7 = vunpack.c.l.s4 %v1933_v6 }
 0x33e   : > { %v862_v15 = vmul.f32 1.442695, %v855_v14 }
 0x33f   : > { %v891_v25 = vpop.permute.xlu0 %890 }
 0x340   : > { %1874 = vpow2.f32 %v862_v15 }
 0x342   : > { %v1871_v8 = vpop.eup %1870 }
 0x343   : > { %v867_v9 = vsel %vm667_vm2, %v1871_v8, 0.0 }
 0x344   : > { %868 = vadd.xlane.f32.xlu0 %v867_v9  ;;  %v1286_v9 = vshrl.u32 %v1285_v4, 7 }
 0x346   : > { %v1873_v10 = vpop.eup %1872 }
 0x347   : > { %v870_v11 = vsel %vm667_vm2, %v1873_v10, 0.0 }
 0x348   : > { %871 = vadd.xlane.f32.xlu1 %v870_v11  ;;  %v1316_v11 = vunpack.c.0.s8 %v1315_v7 }
 0x34a   : > { %v1875_v17 = vpop.eup %1874 }
 0x34b   : > { %v873_v18 = vsel %vm667_vm2, %v1875_v17, 0.0 }
 0x35a   : > { %894 = vrot.lane.b32.xlu0 %v2097_v32, %s1931_s25 }
 0x375   : > { %900 = vxpose.xlu1.c.b16.start.end [1/1] (short) (narrow) %v889_v16, 16 }
 0x379   : > { %874 = vadd.xlane.f32.xlu0 %v873_v18 }
 0x384   : > { %v866_v19 = vpop.xlane.xlu1 %865 }
 0x385   : > { %1876 = vrcp.f32 %v866_v19  ;;  %v1319_v19 = vsub.s32 %v1316_v11, %v1286_v9 }
 0x388   : > { %v893_v20 = vpop.permute.xlu1 %892 }
 0x389   : > { %932 = vxpose.xlu1.c.b16.start.end [1/1] (short) (narrow) %v893_v20, 16 }
 0x38f   : > { %v1877_v21 = vpop.eup %1876 }
 0x390   : > { %v877_v22 = vmul.f32 %v1877_v21, %v1869_v63  ;;  %v1865_v63 = vld [vmem:[%s2199_s6 + $0x8] sm:$0xff]  }
 0x392   : > { %v884_v23 = vpack.c.bf16 %v877_v22, %v877_v22 }
 0x394   : > { %v968_v24 = vsel %vm667_vm2, %v884_v23, 0 }
 0x395   : > { %1768 = vmatpush3.bf16.xpose.msra.mxu0 %v968_v24  ;;  %v1866_v24 = vld [vmem:[%s2199_s6 + $0x10] sm:$0xff]  }
 0x396   : > { %1779 = vmatprep.subr.bf16.mxu0 %v1926_v1 }
 0x3a6   : > { %916 = vxpose.xlu0.c.b16.start.end [1/1] (short) (narrow) %v891_v25, 16 }
 0x3d1   : > { %v869_v26 = vpop.xlane.xlu0 %868 }
 0x3d2   : > { %1878 = vrcp.f32 %v869_v26 }
 0x3d5   : > { %v895_v27 = vpop.permute.xlu0 %894  ;;  %v872_v28 = vpop.xlane.xlu1 %871 }
 0x3d6   : > { %1880 = vrcp.f32 %v872_v28  ;;  %948 = vxpose.xlu0.c.b16.start.end [1/1] (short) (narrow) %v895_v27, 16 }
 0x3db   : > { %v908_v29 = vpop.trf.xlu1 }
 0x3dc   : > { %v1879_v30 = vpop.eup %1878  ;;  %1770 = vmatmul.mubr.msk.bf16.vlgmr.msra.gmra.mrb[8].mxu0 %vm667_vm2, %v908_v29 }
 0x3dd   : > { %v879_v31 = vmul.f32 %v1879_v30, %v1871_v8  ;;  %1781 = vmatprep.mubr.msk.bf16.mxu0 %vm1927_vm0, %v1926_v1  ;;  %v1284_v8 = vunpack.c.0.s8 %v1283_v3 }
 0x3df   : > { %v885_v32 = vpack.c.bf16 %v879_v31, %v879_v31  ;;  %v1287_v13 = vsub.s32 %v1284_v8, %v1286_v9 }
 0x3e0   : > { %v1881_v33 = vpop.eup %1880 }
 0x3e1   : > { %v1015_v34 = vsel %vm667_vm2, %v885_v32, 0  ;;  %v881_v35 = vmul.f32 %v1881_v33, %v1873_v10  ;;  %v1867_v33 = vld [vmem:[%s2199_s6 + $0x18] sm:$0xff]  }
 0x3e2   : > { %1774 = vmatpush3.bf16.xpose.msra.mxu1 %v1015_v34 }
 0x3e3   : > { %v886_v36 = vpack.c.bf16 %v881_v35, %v881_v35  ;;  %1785 = vmatprep.subr.bf16.mxu1 %v1926_v1 }
 0x3e5   : > { %v1062_v37 = vsel %vm667_vm2, %v886_v36, 0 }
 0x3e6   : > { %1780 = vmatpush3.bf16.xpose.msra.mxu0 %v1062_v37 }
 0x3e7   : > { %1791 = vmatprep.subr.bf16.mxu0 %v1926_v1 }
 0x3ef   : > { %v940_v38 = vpop.trf.xlu1 }
 0x3f0   : > { %1782 = vmatmul.mubr.msk.bf16.vlgmr.msra.gmra.mrb[12].mxu0 %vm667_vm2, %v940_v38 }
 0x3f1   : > { %1799 = vmatprep.mubr.msk.bf16.mxu0 %vm1927_vm0, %v1926_v1  ;;  %1792 = vmatpush3.bf16.msra.mxu0 %v1864_v62 }
 0x3f2   : > { %1793 = vmatprep.subr.bf16.mxu0 %v1926_v1 }
 0x3f5   : > { %1794 = vmatpush3.bf16.msra.mxu0 %v1865_v63 }
 0x3f6   : > { %1795 = vmatprep.subr.bf16.mxu0 %v1926_v1 }
 0x3f9   : > { %1796 = vmatpush3.bf16.msra.mxu0 %v1866_v24 }
 0x3fa   : > { %1797 = vmatprep.subr.bf16.mxu0 %v1926_v1 }
 0x3fd   : > { %1798 = vmatpush3.bf16.msra.mxu0 %v1867_v33 }
 0x406   : > { %v875_v39 = vpop.xlane.xlu0 %874 }
 0x407   : > { %1882 = vrcp.f32 %v875_v39 }
 0x40c   : > { %v924_v40 = vpop.trf.xlu0 }
 0x40d   : > { %1776 = vmatmul.mubr.msk.bf16.vlgmr.msra.gmra.mrb[16].mxu1 %vm667_vm2, %v924_v40 }
 0x40e   : > { %1787 = vmatprep.mubr.msk.bf16.mxu1 %vm1927_vm0, %v1926_v1 }
 0x411   : > { %v1883_v41 = vpop.eup %1882 }
 0x412   : > { %v883_v42 = vmul.f32 %v1883_v41, %v1875_v17 }
 0x414   : > { %v887_v43 = vpack.c.bf16 %v883_v42, %v883_v42 }
 0x416   : > { %v1109_v44 = vsel %vm667_vm2, %v887_v43, 0 }
 0x417   : > { %1786 = vmatpush3.bf16.xpose.msra.mxu1 %v1109_v44 }
 0x43c   : > { %v956_v45 = vpop.trf.xlu0 }
 0x43d   : > { %1788 = vmatmul.mubr.msk.bf16.vlgmr.msra.gmra.mrb[20].mxu1 %vm667_vm2, %v956_v45 }
 0x4af   : > { %v1004_v46 = vpop.f32.mrb[8].mxu0 }
 0x4b0   : > { %1152 = vxpose.xlu1.b32.start [1/2] (short) (narrow) %v1004_v46, 8  ;;  %v1771_v47 = vpop.f32.mrb[9].mxu0 }
 0x4b1   : > { %v1007_v48 = vpop.f32.mrb[10].mxu0 }
 0x4b2   : > { %v1772_v49 = vpop.f32.mrb[11].mxu0 }
 0x4b4   : > { %1153 = vxpose.xlu1.b32.end [2/2] (short) (narrow) %v1007_v48, 8 }
 0x4c3   : > { %v1098_v50 = vpop.f32.mrb[12].mxu0 }
 0x4c4   : > { %v1783_v51 = vpop.f32.mrb[13].mxu0 }
 0x4c5   : > { %v1101_v52 = vpop.f32.mrb[14].mxu0 }
 0x4c6   : > { %v1784_v53 = vpop.f32.mrb[15].mxu0 }
 0x4e0   : > { %v1051_v54 = vpop.f32.mrb[16].mxu1 }
 0x4e1   : > { %1184 = vxpose.xlu0.b32.start [1/2] (short) (narrow) %v1051_v54, 8  ;;  %v1777_v55 = vpop.f32.mrb[17].mxu1 }
 0x4e2   : > { %v1054_v56 = vpop.f32.mrb[18].mxu1 }
 0x4e3   : > { %v1778_v57 = vpop.f32.mrb[19].mxu1 }
 0x4e5   : > { %1185 = vxpose.xlu0.b32.end [2/2] (short) (narrow) %v1054_v56, 8 }
 0x4e9   : > { %1216 = vxpose.xlu0.b32.start [1/2] (short) (narrow) %v1098_v50, 8 }
 0x4ed   : > { %1217 = vxpose.xlu0.b32.end [2/2] (short) (narrow) %v1101_v52, 8 }
 0x510   : > { %v1145_v58 = vpop.f32.mrb[20].mxu1 }
 0x511   : > { %1248 = vxpose.xlu1.b32.start [1/2] (short) (narrow) %v1145_v58, 8  ;;  %v1789_v59 = vpop.f32.mrb[21].mxu1 }
 0x512   : > { %v1148_v60 = vpop.f32.mrb[22].mxu1 }
 0x513   : > { %v1790_v61 = vpop.f32.mrb[23].mxu1 }
 0x515   : > { %1249 = vxpose.xlu1.b32.end [2/2] (short) (narrow) %v1148_v60, 8  ;;  %v1677_v60 = vld [vmem:[%s2200_s7] ss:$0 sm:$0xff] }
 0x530   : > { %v1168_v5 = vpop.trf.xlu1 }
 0x561   : > { %v1200_v0 = vpop.trf.xlu0 }
 0x569   : > { %v1232_v10 = vpop.trf.xlu0 }
 0x56a   : > { %v1280_v14 = vcombine.low %v1168_v5, %v1232_v10  ;;  %v1281_v15 = vcombine.high %v1168_v5, %v1232_v10 }
 0x56c   : > { %v1288_v22 = vrot.slane %v1280_v14, %v1287_v13  ;;  %v1295_v23 = vrot.slane %v1281_v15, %v1287_v13 }
 0x591   : > { %v1264_v16 = vpop.trf.xlu1 }
 0x592   : > { %v1296_v17 = vcombine.low %v1200_v0, %v1264_v16  ;;  %v1297_v18 = vcombine.high %v1200_v0, %v1264_v16  ;;  %v1684_v16 = vld [vmem:[%s2202_s9] ss:$0 sm:$0xff] }
 0x594   : > { %v1304_v20 = vrot.slane %v1296_v17, %v1287_v13  ;;  %v1311_v21 = vrot.slane %v1297_v18, %v1287_v13 }
 0x596   : > { %v1312_v25 = vcombine.low %v1288_v22, %v1304_v20  ;;  %v1313_v26 = vcombine.high %v1288_v22, %v1304_v20  ;;  %v1328_v27 = vcombine.low %v1295_v23, %v1311_v21  ;;  %v1329_v28 = vcombine.high %v1295_v23, %v1311_v21 }
 0x598   : > { %v1320_v29 = vrot.slane %v1312_v25, %v1319_v19  ;;  %v1327_v30 = vrot.slane %v1313_v26, %v1319_v19  ;;  %v1336_v31 = vrot.slane %v1328_v27, %v1319_v19  ;;  %v1343_v32 = vrot.slane %v1329_v28, %v1319_v19 }
 0x59a   : > { %v1348_v34 = vcombine.low %v1320_v29, %v1327_v30  ;;  %v1675_v35 = vcombine.high %v1320_v29, %v1327_v30  ;;  %v1364_v36 = vcombine.low %v1336_v31, %v1343_v32  ;;  %v1676_v37 = vcombine.high %v1336_v31, %v1343_v32 }
 0x59c   : > { %v1355_v38 = vrot.slane %v1348_v34, %v1287_v13  ;;  %v1363_v39 = vrot.slane %v1675_v35, %v1287_v13  ;;  %v1371_v40 = vrot.slane %v1364_v36, %v1287_v13  ;;  %v1379_v41 = vrot.slane %v1676_v37, %v1287_v13 }
 0x59e   : > { %v1381_v42 = vcombine.high %v1355_v38, %v1363_v39  ;;  %v1397_v43 = vcombine.high %v1371_v40, %v1379_v41  ;;  %v1380_v44 = vcombine.low %v1355_v38, %v1363_v39  ;;  %v1396_v45 = vcombine.low %v1371_v40, %v1379_v41 }
 0x5a0   : > { %v1395_v46 = vrot.slane %v1381_v42, %v1319_v19  ;;  %v1411_v47 = vrot.slane %v1397_v43, %v1319_v19  ;;  %v1388_v1 = vrot.slane %v1380_v44, %v1319_v19  ;;  %v1404_v48 = vrot.slane %v1396_v45, %v1319_v19 }
 0x5a2   : > { %v1414_v49 = vcombine.low %v1395_v46, %v1411_v47  ;;  %v1413_v50 = vcombine.high %v1388_v1, %v1404_v48  ;;  %v1412_v51 = vcombine.low %v1388_v1, %v1404_v48  ;;  %v1415_v52 = vcombine.high %v1395_v46, %v1411_v47 }
 0x5a4   : > { %1421 = vrot.lane.b32.xlu1 %v1414_v49, %s1934_s21  ;;  %1417 = vrot.lane.b32.xlu0 %v1413_v50, %s1935_s22 }
 0x5a8   : > { %1425 = vrot.lane.b32.xlu1 %v1415_v52, %s1936_s23 }
 0x616   : > { %v1422_v53 = vpop.permute.xlu1 %1421  ;;  %v1418_v54 = vpop.permute.xlu0 %1417 }
 0x617   : > { %v1428_v55 = vsel %vm667_vm2, %v1412_v51, %v1418_v54 }
 0x618   : > { %v1430_v57 = vsel %vm1429_vm3, %v1428_v55, %v1422_v53 }
 0x61a   : > { %v1426_v56 = vpop.permute.xlu1 %1425 }
 0x61b   : > { %v1432_v58 = vsel %vm1431_vm4, %v1430_v57, %v1426_v56 }
 0x61c   : > { %v1441_v59 = vpack.c.bf16 %v1432_v58, %v1432_v58 }
 0x61e   : > { %1800 = vmatmul.mubr.msk.bf16.vlgmr.msra.gmra.mrb[16].mxu0 %vm455_vm1, %v1441_v59 }
 0x6f1   : > { %v1510_v61 = vpop.f32.mrb[16].mxu0 }
 0x6f2   : > { %v1511_v62 = vadd.f32 %v1677_v60, %v1510_v61  ;;  %v1801_v63 = vpop.f32.mrb[17].mxu0 }
 0x6f3   : > { %v1513_v0 = vpop.f32.mrb[18].mxu0 }
 0x6f4   : > { %v1802_v2 = vpop.f32.mrb[19].mxu0  ;;  %v1516_v3 = vadd.f32 %v1511_v62, %v2073_v12  ;;  %v1683_v12 = vld [vmem:[%s2201_s8] ss:$0 sm:$0xff] }
 0x6f6   : > { %v1519_v4 = vsel %vm455_vm1, %v1516_v3, 0.0 }
 0x6f7   : > { %1520 = vadd.xlane.f32.xlu1 %v1519_v4 }
 0x784   : > { %v1521_v5 = vpop.xlane.xlu1 %1520 }
 0x785   : > { %v1523_v6 = vmul.f32 0.015625, %v1521_v5 }
 0x787   : > { %v1524_v7 = vsub.f32 %v1516_v3, %v1523_v6 }
 0x789   : > { %v1525_v8 = vmul.f32 %v1524_v7, %v1524_v7 }
 0x78b   : > { %v1526_v9 = vsel %vm455_vm1, %v1525_v8, 0.0 }
 0x78c   : > { %1527 = vadd.xlane.f32.xlu0 %v1526_v9 }
 0x819   : > { %v1528_v10 = vpop.xlane.xlu0 %1527 }
 0x81a   : > { %v1529_v11 = vmul.f32 0.015625, %v1528_v10 }
 0x81c   : > { %v1530_v13 = vadd.f32 1e-05, %v1529_v11 }
 0x81e   : > { %1884 = vrsqrt.f32 %v1530_v13 }
 0x828   : > { %v1885_v14 = vpop.eup %1884 }
 0x829   : > { %v1532_v15 = vmul.f32 %v1885_v14, %v1524_v7 }
 0x82b   : > { %v1539_v17 = vmul.f32 %v1683_v12, %v1532_v15 }
 0x82d   : > { %v1546_v18 = vadd.f32 %v1684_v16, %v1539_v17 }
 0x82f   : > { %1547 = vst.msk [vmem:[%s410_s12] sm:$0xff] %vm455_vm1, %v1546_v18 }
 0x830 PF: > { %s20_s17 = sadd.s32 1, %s1924_s17   ;;  %s2204_s13 = smov %s1916_s15 }
 0x831   : > { %p17_p7 = scmp.ge.s32.totalorder %s20_s17, 8   ;;  %s2205_s14 = smov %s1920_s16 }
 0x832   : > { %s2206_s15 = smov %s2209_s18  ;;  %s2207_s16 = smov %s2213_s19 }
 0x833   :  { %19 = sbr.rel (!%p17_p7) target bundleno = 3 (0x3), region = 93 }

// kernel: pe_conditional_transformer.14
= control target key start
LH: loop header
LB: loop body
LE: loop exit
PB: predicated region body
PF: predicated region fallthrough
CT: control target
= control target key end

     0   :  { %s2030_s13 = smov 0   ;;  %s2032_s14 = smov 0   ;;  %s2235_s0 = inlined_call_operand.vmem [shape: f32[2,16,64], index: 0, kind: input, shape index: {}]   ;;  %s2236_s1 = inlined_call_operand.vmem [shape: f32[2,20,64], index: 1, kind: input, shape index: {}]   ;;  %s2237_s2 = inlined_call_operand.vmem [shape: bf16[64,64], index: 2, kind: input, shape index: {}]   ;;  %s2238_s3 = inlined_call_operand.vmem [shape: f32[1,64], index: 3, kind: input, shape index: {}]   ;;  %s2239_s4 = inlined_call_operand.vmem [shape: bf16[64,128], index: 4, kind: input, shape index: {}]   ;;  %s2240_s5 = inlined_call_operand.vmem [shape: f32[1,128], index: 5, kind: input, shape index: {}]   ;;  %s2241_s6 = inlined_call_operand.vmem [shape: bf16[64,64], index: 6, kind: input, shape index: {}]   ;;  %s2242_s7 = inlined_call_operand.vmem [shape: f32[1,64], index: 7, kind: input, shape index: {}]   ;;  %s2243_s8 = inlined_call_operand.vmem [shape: f32[1,64], index: 8, kind: input, shape index: {}]   ;;  %s2244_s9 = inlined_call_operand.vmem [shape: f32[1,64], index: 9, kind: input, shape index: {}]   ;;  %s2245_s10 = inlined_call_operand.vmem [shape: f32[2,16,64], index: 10, kind: output, shape index: {}]  }
   0x1   :  { %s2034_s15 = smov 0   ;;  %s2036_s16 = smov 0  }
   0x2   :  { %s2038_s17 = smov 0  }
   0x3 LB: > { %s29_s18 = sadd.s32 1, %s1954_s15  ;;  %s32_s19 = sadd.s32 1, %s1958_s16  ;;  %s1962_s17 = sphi %s2038_s17, %s20_s17   ;;  %s1958_s16 = sphi %s2036_s16, %s2249_s16   ;;  %s1954_s15 = sphi %s2034_s15, %s2248_s15   ;;  %s1950_s14 = sphi %s2032_s14, %s2247_s14   ;;  %s1946_s13 = sphi %s2030_s13, %s2246_s13  }
   0x4   : > { %p30_p0 = scmp.ge.s32.totalorder %s29_s18, 2  ;;  %p1686_p1 = scmp.ge.s32.totalorder %s1962_s17, 1 }
   0x5   : > { %p341_p2 = scmp.lt.s32.totalorder %s1962_s17, 5 }
   0x6   : > { %s2251_s18 = smov (%p30_p0, %s29_s18), 0  ;;  %s2253_s19 = smov (!%p30_p0, %s32_s19), %s1958_s16 }
   0x7   : > { %p342_p3 = pnand %p1686_p1, %p341_p2  ;;  %p34_p4 = scmp.ge.s32.totalorder %s2253_s19, 2 }
   0x8   : > { %v1894_v0 = vld [vmem:[%s2239_s4] sm:$0xff] (!%p342_p3)   ;;  %v1895_v1 = vld [vmem:[%s2239_s4 + $0x8] sm:$0xff] (!%p342_p3)   ;;  %v1964_v2 = vmov (!%p342_p3), 0.0   ;;  %p390_p5 = scmp.lt.s32.totalorder (!%p342_p3), %s1950_s14, 1  ;;  %v1896_v3 = vld [vmem:[%s2239_s4 + $0x10] sm:$0xff] (!%p342_p3)   ;;  %vm1965_vm0 = vmmov (!%p342_p3), 0  }
   0x9   : > { %s2255_s19 = smov (%p34_p4, %s2253_s19), 0  ;;  %345 = sbr.rel (%p342_p3) target bundleno = 2093 (0x82d), region = 60 }
   0xa   : > { %1757 = vmatprep.subr.bf16.mxu0 (!%p342_p3), %v1964_v2  ;;  %1769 = vmatprep.subr.bf16.mxu1 (!%p342_p3), %v1894_v0  ;;  %v1898_v4 = vld [vmem:[%s2237_s2] sm:$0xff] (!%p342_p3)   ;;  %v1897_v5 = vld [vmem:[%s2239_s4 + $0x18] sm:$0xff] (!%p342_p3)   ;;  %v1899_v6 = vld [vmem:[%s2237_s2 + $0x8] sm:$0xff] (!%p342_p3)   ;;  %p392_p6 = scmp.lt.s32.totalorder (!%p342_p3), %s1946_s13, 1  ;;  %vm456_vm1 = vcmask (!%p342_p3), 523264   ;;  %s1966_s22 = smov (!%p342_p3), 96  }
   0xb   : > { %1770 = vmatpush3.bf16.msra.mxu1 (!%p342_p3), %v1894_v0  ;;  %1765 = vmatprep.mubr.msk.bf16.mxu0 (!%p342_p3), %vm1965_vm0, %v1964_v2  ;;  %v1900_v9 = vld [vmem:[%s2237_s2 + $0x10] sm:$0xff] (!%p342_p3)   ;;  %v1901_v13 = vld [vmem:[%s2237_s2 + $0x18] sm:$0xff] (!%p342_p3)   ;;  %v1698_v17 = vld [vmem:[%s2240_s5] ss:$0 sm:$0xff] (!%p342_p3)  ;;  %s1968_s24 = smov (!%p342_p3), 80   ;;  %s1969_s25 = smov (!%p342_p3), 64  }
   0xc   : > { %1771 = vmatprep.subr.bf16.mxu1 (!%p342_p3), %v1895_v1  ;;  %1758 = vmatpush3.bf16.msra.mxu0 (!%p342_p3), %v1898_v4  ;;  %v1692_v25 = vld [vmem:[%s2238_s3] ss:$0 sm:$0xff] (!%p342_p3)  ;;  %vm690_vm2 = vcmask (!%p342_p3), 130048   ;;  %vm863_vm3 = vcmask (!%p342_p3), 162816   ;;  %s1972_s21 = smov (!%p342_p3), 32   ;;  %vm1465_vm4 = vcmask (!%p342_p3), 261120  }
   0xd   : > { %1759 = vmatprep.subr.bf16.mxu0 (!%p342_p3), %v1964_v2  ;;  %vm1467_vm5 = vcmask (!%p342_p3), 392192  }
   0xf   : > { %1772 = vmatpush3.bf16.msra.mxu1 (!%p342_p3), %v1895_v1 }
  0x10   : > { %s2257_s14 = smov (!%p390_p5, %s1950_s14), 1  ;;  %1773 = vmatprep.subr.bf16.mxu1 %v1896_v3  ;;  %s2259_s13 = smov (!%p392_p6, %s1946_s13), 1  ;;  %1760 = vmatpush3.bf16.msra.mxu0 %v1899_v6 }
  0x11   : > { %s1841_s28 = smul.u32 24, %s2257_s14  ;;  %s1687_s20 = sshll.u32 %s2257_s14, 1  ;;  %1761 = vmatprep.subr.bf16.mxu0 %v1964_v2 }
  0x12   : > { %s2092_s26 = sadd.s32 %s1687_s20, %s2259_s13 }
  0x13   : > { %s402_s23 = scalar_lea.vmem %s2236_s1, %s1841_s28  ;;  %1774 = vmatpush3.bf16.msra.mxu1 %v1896_v3  ;;  %s1688_s14 = sshll.u32 %s2092_s26, 3 }
  0x14   : > { %v413_v7 = vld [vmem:[%s402_s23] sm:$0xff]  ;;  %v414_v8 = vld [vmem:[%s402_s23 + $0x8] sm:$0xff]  ;;  %v415_v10 = vld [vmem:[%s402_s23 + $0x10] sm:$0xf]  ;;  %1775 = vmatprep.subr.bf16.mxu1 %v1897_v5  ;;  %s397_s29 = scalar_lea.vmem %s2235_s0, %s1688_s14  ;;  %1762 = vmatpush3.bf16.msra.mxu0 %v1900_v9  ;;  %s1967_s23 = smov 112  }
  0x15   : > { %v508_v11 = vpack.c.bf16 %v414_v8, %v413_v7  ;;  %v509_v12 = vpack.c.bf16 %v415_v10, %v415_v10  ;;  %v2105_v14 = vld [vmem:[%s397_s29] sm:$0xff]  ;;  %1763 = vmatprep.subr.bf16.mxu0 %v1964_v2  ;;  %s410_s12 = scalar_lea.vmem %s2245_s10, %s1688_s14 }
  0x16   : > { %v424_v15 = vpack.c.bf16 %v2105_v14, %v2105_v14 }
  0x17   : > { %1777 = vmatprep.mubr.msk.bf16.mxu1 %vm456_vm1, %v508_v11  ;;  %1776 = vmatpush3.bf16.msra.mxu1 %v1897_v5 }
  0x18   : > { %1781 = vmatprep.subr.bf16.mxu1 %v1964_v2  ;;  %1764 = vmatpush3.bf16.msra.mxu0 %v1901_v13 }
  0x19   : > { %1793 = vmatprep.subr.bf16.mxu0 %v1964_v2 }
  0x1a   : > { %1778 = vmatmul.mubr.msk.bf16.vlgmr.msra.gmra.mrb[0].mxu1 %vm456_vm1, %v509_v12 }
  0x1b   : > { %1783 = vmatprep.mubr.msk.bf16.mxu1 %vm1965_vm0, %v1964_v2  ;;  %1766 = vmatmul.mubr.msk.bf16.vlgmr.msra.gmra.mrb[0].mxu0 %vm456_vm1, %v424_v15 }
  0x1c   : > { %1795 = vmatprep.mubr.msk.bf16.mxu0 %vm1965_vm0, %v1964_v2 }
  0xed   : > { %v1779_v16 = vpop.f32.mrb[0].mxu1 }
  0xee   : > { %v581_v18 = vpop.f32.mrb[1].mxu1  ;;  %v494_v21 = vpop.f32.mrb[0].mxu0  ;;  %v590_v27 = vadd.f32 %v1779_v16, %v1698_v17 }
  0xef   : > { %v1780_v19 = vpop.f32.mrb[2].mxu1  ;;  %v582_v22 = vadd.f32 %v1698_v17, %v581_v18  ;;  %v1767_v24 = vpop.f32.mrb[1].mxu0  ;;  %v495_v30 = vadd.f32 %v1692_v25, %v494_v21 }
  0xf0   : > { %v584_v20 = vpop.f32.mrb[3].mxu1  ;;  %v497_v26 = vpop.f32.mrb[2].mxu0  ;;  %v605_v31 = vpack.c.bf16 %v590_v27, %v590_v27 }
  0xf1   : > { %v585_v23 = vadd.f32 %v1698_v17, %v584_v20  ;;  %v1768_v29 = vpop.f32.mrb[3].mxu0  ;;  %v595_v32 = vmul.f32 0.25, %v495_v30 }
  0xf3   : > { %v604_v28 = vpack.c.bf16 %v585_v23, %v582_v22  ;;  %v596_v33 = vpack.c.bf16 %v595_v32, %v595_v32 }
  0xf5   : > { %614 = vrot.lane.b32.xlu1 %v604_v28, %s1966_s22  ;;  %608 = vrot.lane.b32.xlu0 %v604_v28, %s1967_s23 }
  0xf9   : > { %620 = vrot.lane.b32.xlu1 %v604_v28, %s1968_s24  ;;  %610 = vrot.lane.b32.xlu0 %v605_v31, %s1967_s23 }
  0xfd   : > { %622 = vrot.lane.b32.xlu1 %v605_v31, %s1968_s24  ;;  %616 = vrot.lane.b32.xlu0 %v605_v31, %s1966_s22 }
 0x101   : > { %600 = vrot.lane.b32.xlu1 %v596_v33, %s1966_s22  ;;  %598 = vrot.lane.b32.xlu0 %v596_v33, %s1967_s23  ;;  %s1973_s22 = smov 16   ;;  %s1974_s23 = smov 48  }
 0x105   : > { %602 = vrot.lane.b32.xlu0 %v596_v33, %s1968_s24 }
 0x124   : > { %626 = vxpose.xlu1.c.b16.start [1/2] (short) (narrow) %v604_v28, 16 }
 0x128   : > { %627 = vxpose.xlu1.c.b16.end [2/2] (short) (narrow) %v605_v31, 16 }
 0x167   : > { %v2124_v34 = vpop.permute.xlu1 %614  ;;  %v609_v35 = vpop.permute.xlu0 %608 }
 0x168   : > { %642 = vxpose.xlu0.c.b16.start [1/2] (short) (narrow) %v609_v35, 16 }
 0x16b   : > { %v621_v36 = vpop.permute.xlu1 %620  ;;  %v611_v37 = vpop.permute.xlu0 %610 }
 0x16c   : > { %674 = vxpose.xlu1.c.b16.start [1/2] (short) (narrow) %v621_v36, 16  ;;  %643 = vxpose.xlu0.c.b16.end [2/2] (short) (narrow) %v611_v37, 16 }
 0x16f   : > { %v2126_v38 = vpop.permute.xlu1 %622  ;;  %v2130_v39 = vpop.permute.xlu0 %616 }
 0x170   : > { %675 = vxpose.xlu1.c.b16.end [2/2] (short) (narrow) %v2126_v38, 16  ;;  %658 = vxpose.xlu0.c.b16.start [1/2] (short) (narrow) %v2124_v34, 16 }
 0x173   : > { %v601_v40 = vpop.permute.xlu1 %600  ;;  %v599_v42 = vpop.permute.xlu0 %598 }
 0x174   : > { %916 = vrot.lane.b32.xlu1 %v609_v35, %s1969_s25  ;;  %659 = vxpose.xlu0.c.b16.end [2/2] (short) (narrow) %v2130_v39, 16 }
 0x177   : > { %v603_v43 = vpop.permute.xlu0 %602 }
 0x178   : > { %914 = vrot.lane.b32.xlu1 %v605_v31, %s1969_s25 }
 0x17d   : > { %912 = vrot.lane.b32.xlu0 %v604_v28, %s1969_s25 }
 0x181   : > { %918 = vrot.lane.b32.xlu0 %v611_v37, %s1969_s25 }
 0x18a   : > { %v634_v41 = vpop.trf.xlu1 }
 0x18b   : > { %1782 = vmatpush3.bf16.msra.mxu1 %v634_v41 }
 0x18c   : > { %1787 = vmatprep.subr.bf16.mxu1 %v1964_v2 }
 0x18e   : > { %1784 = vmatmul.mubr.msk.bf16.vlgmr.msra.gmra.mrb[4].mxu1 %vm690_vm2, %v596_v33 }
 0x18f   : > { %1789 = vmatprep.mubr.msk.bf16.mxu1 %vm1965_vm0, %v1964_v2 }
 0x1ce   : > { %v650_v44 = vpop.trf.xlu0 }
 0x1cf   : > { %1788 = vmatpush3.bf16.msra.mxu1 %v650_v44 }
 0x1d0   : > { %1799 = vmatprep.subr.bf16.mxu1 %v1964_v2 }
 0x1d2   : > { %1790 = vmatmul.mubr.msk.bf16.vlgmr.msra.gmra.mrb[8].mxu1 %vm690_vm2, %v599_v42  ;;  %v682_v45 = vpop.trf.xlu1 }
 0x1d3   : > { %1800 = vmatpush3.bf16.msra.mxu1 %v682_v45  ;;  %1801 = vmatprep.mubr.msk.bf16.mxu1 %vm1965_vm0, %v1964_v2 }
 0x1d4   : > { %1811 = vmatprep.subr.bf16.mxu1 %v1964_v2 }
 0x1d6   : > { %v666_v46 = vpop.trf.xlu0 }
 0x1d7   : > { %1794 = vmatpush3.bf16.msra.mxu0 %v666_v46 }
 0x1d8   : > { %1805 = vmatprep.subr.bf16.mxu0 %v1964_v2 }
 0x1da   : > { %1796 = vmatmul.mubr.msk.bf16.vlgmr.msra.gmra.mrb[4].mxu0 %vm690_vm2, %v601_v40  ;;  %1802 = vmatmul.mubr.msk.bf16.vlgmr.msra.gmra.mrb[12].mxu1 %vm690_vm2, %v603_v43 }
 0x1db   : > { %1807 = vmatprep.mubr.msk.bf16.mxu0 %vm1965_vm0, %v1964_v2  ;;  %1813 = vmatprep.mubr.msk.bf16.mxu1 %vm1965_vm0, %v1964_v2 }
 0x1e6   : > { %v917_v11 = vpop.permute.xlu1 %916 }
 0x1ea   : > { %v915_v12 = vpop.permute.xlu1 %914 }
 0x1ef   : > { %v913_v4 = vpop.permute.xlu0 %912 }
 0x1f3   : > { %v919_v5 = vpop.permute.xlu0 %918 }
 0x261   : > { %v728_v47 = vpop.f32.mrb[4].mxu1 }
 0x262   : > { %v1785_v48 = vpop.f32.mrb[5].mxu1  ;;  %v864_v49 = vsel %vm863_vm3, %v728_v47, -inf }
 0x263   : > { %v731_v50 = vpop.f32.mrb[6].mxu1  ;;  %865 = vmax.xlane.f32.xlu0 %v864_v49 }
 0x264   : > { %v1786_v51 = vpop.f32.mrb[7].mxu1 }
 0x2a5   : > { %v771_v52 = vpop.f32.mrb[8].mxu1 }
 0x2a6   : > { %v1791_v53 = vpop.f32.mrb[9].mxu1  ;;  %v867_v54 = vsel %vm863_vm3, %v771_v52, -inf }
 0x2a7   : > { %868 = vmax.xlane.f32.xlu1 %v867_v54  ;;  %v774_v55 = vpop.f32.mrb[10].mxu1 }
 0x2a8   : > { %v1792_v56 = vpop.f32.mrb[11].mxu1 }
 0x2ad   : > { %v814_v57 = vpop.f32.mrb[4].mxu0  ;;  %v857_v58 = vpop.f32.mrb[12].mxu1 }
 0x2ae   : > { %v1797_v59 = vpop.f32.mrb[5].mxu0  ;;  %v1803_v60 = vpop.f32.mrb[13].mxu1  ;;  %v873_v61 = vsel %vm863_vm3, %v857_v58, -inf  ;;  %v870_v62 = vsel %vm863_vm3, %v814_v57, -inf }
 0x2af   : > { %874 = vmax.xlane.f32.xlu1 %v873_v61  ;;  %v860_v63 = vpop.f32.mrb[14].mxu1  ;;  %871 = vmax.xlane.f32.xlu0 %v870_v62  ;;  %v817_v0 = vpop.f32.mrb[6].mxu0 }
 0x2b0   : > { %v1798_v1 = vpop.f32.mrb[7].mxu0  ;;  %v1804_v3 = vpop.f32.mrb[15].mxu1 }
 0x2c0   : > { %924 = vrot.lane.b32.xlu1 %v621_v36, %s1969_s25 }
 0x2c5   : > { %920 = vrot.lane.b32.xlu0 %v2124_v34, %s1969_s25 }
 0x2f0   : > { %v866_v6 = vpop.xlane.xlu0 %865 }
 0x2f1   : > { %v876_v7 = vsub.f32 %v728_v47, %v866_v6 }
 0x2f3   : > { %v880_v8 = vmul.f32 1.442695, %v876_v7 }
 0x2f5   : > { %1906 = vpow2.f32 %v880_v8 }
 0x2ff   : > { %v1907_v9 = vpop.eup %1906 }
 0x300   : > { %v888_v10 = vsel %vm863_vm3, %v1907_v9, 0.0 }
 0x301   : > { %889 = vadd.xlane.f32.xlu1 %v888_v10  ;;  %v1902_v10 = vld [vmem:[%s2241_s6] sm:$0xff]  }
 0x312   : > { %922 = vrot.lane.b32.xlu1 %v2130_v39, %s1969_s25 }
 0x334   : > { %v869_v13 = vpop.xlane.xlu1 %868 }
 0x335   : > { %v877_v15 = vsub.f32 %v771_v52, %v869_v13  ;;  %v1970_v13 = vmov 1983009808  }
 0x337   : > { %v882_v16 = vmul.f32 1.442695, %v877_v15  ;;  %v1319_v15 = vunpack.c.l.s4 %v1970_v13 }
 0x339   : > { %1908 = vpow2.f32 %v882_v16  ;;  %v1321_v16 = vlaneseq }
 0x33c   : > { %v872_v17 = vpop.xlane.xlu0 %871  ;;  %v875_v24 = vpop.xlane.xlu1 %874 }
 0x33d   : > { %v878_v18 = vsub.f32 %v814_v57, %v872_v17  ;;  %v879_v25 = vsub.f32 %v857_v58, %v875_v24 }
 0x33f   : > { %v884_v19 = vmul.f32 1.442695, %v878_v18  ;;  %v886_v26 = vmul.f32 1.442695, %v879_v25  ;;  %v1971_v18 = vmov 1934713408  }
 0x340   : > { %v925_v29 = vpop.permute.xlu1 %924  ;;  %v921_v35 = vpop.permute.xlu0 %920 }
 0x341   : > { %1910 = vpow2.f32 %v884_v19  ;;  %v1351_v19 = vunpack.c.l.s4 %v1971_v18 }
 0x342   : > { %1912 = vpow2.f32 %v886_v26 }
 0x343   : > { %v1909_v20 = vpop.eup %1908 }
 0x344   : > { %v891_v21 = vsel %vm863_vm3, %v1909_v20, 0.0 }
 0x345   : > { %892 = vadd.xlane.f32.xlu0 %v891_v21  ;;  %v1322_v21 = vshrl.u32 %v1321_v16, 7 }
 0x34b   : > { %v1911_v22 = vpop.eup %1910 }
 0x34c   : > { %v894_v23 = vsel %vm863_vm3, %v1911_v22, 0.0  ;;  %v1913_v27 = vpop.eup %1912 }
 0x34d   : > { %895 = vadd.xlane.f32.xlu1 %v894_v23  ;;  %v897_v28 = vsel %vm863_vm3, %v1913_v27, 0.0  ;;  %v1352_v23 = vunpack.c.0.s8 %v1351_v19 }
 0x35b   : > { %926 = vrot.lane.b32.xlu0 %v2126_v38, %s1969_s25 }
 0x37a   : > { %898 = vadd.xlane.f32.xlu0 %v897_v28  ;;  %952 = vxpose.xlu1.c.b16.start [1/2] (short) (narrow) %v917_v11, 16  ;;  %v1903_v11 = vld [vmem:[%s2241_s6 + $0x8] sm:$0xff]  }
 0x37e   : > { %953 = vxpose.xlu1.c.b16.end [2/2] (short) (narrow) %v919_v5, 16 }
 0x382   : > { %984 = vxpose.xlu1.c.b16.start [1/2] (short) (narrow) %v925_v29, 16 }
 0x38e   : > { %v890_v30 = vpop.xlane.xlu1 %889 }
 0x38f   : > { %1914 = vrcp.f32 %v890_v30  ;;  %v1355_v30 = vsub.s32 %v1352_v23, %v1322_v21 }
 0x392   : > { %v923_v36 = vpop.permute.xlu1 %922 }
 0x399   : > { %v1915_v31 = vpop.eup %1914 }
 0x39a   : > { %v901_v32 = vmul.f32 %v1915_v31, %v1907_v9 }
 0x39c   : > { %v908_v33 = vpack.c.bf16 %v901_v32, %v901_v32 }
 0x39e   : > { %v1004_v34 = vsel %vm863_vm3, %v908_v33, 0 }
 0x39f   : > { %1806 = vmatpush3.bf16.xpose.msra.mxu0 %v1004_v34 }
 0x3a0   : > { %1817 = vmatprep.subr.bf16.mxu0 %v1964_v2 }
 0x3a7   : > { %936 = vxpose.xlu0.c.b16.start [1/2] (short) (narrow) %v913_v4, 16 }
 0x3ab   : > { %937 = vxpose.xlu0.c.b16.end [2/2] (short) (narrow) %v915_v12, 16 }
 0x3af   : > { %968 = vxpose.xlu0.c.b16.start [1/2] (short) (narrow) %v921_v35, 16 }
 0x3b3   : > { %969 = vxpose.xlu0.c.b16.end [2/2] (short) (narrow) %v923_v36, 16 }
 0x3d2   : > { %v893_v37 = vpop.xlane.xlu0 %892 }
 0x3d3   : > { %1916 = vrcp.f32 %v893_v37 }
 0x3d6   : > { %v927_v38 = vpop.permute.xlu0 %926 }
 0x3d7   : > { %985 = vxpose.xlu1.c.b16.end [2/2] (short) (narrow) %v927_v38, 16 }
 0x3da   : > { %v896_v43 = vpop.xlane.xlu1 %895 }
 0x3db   : > { %1918 = vrcp.f32 %v896_v43 }
 0x3dd   : > { %v1917_v39 = vpop.eup %1916 }
 0x3de   : > { %v903_v40 = vmul.f32 %v1917_v39, %v1909_v20  ;;  %v1320_v20 = vunpack.c.0.s8 %v1319_v15  ;;  %v1904_v39 = vld [vmem:[%s2241_s6 + $0x10] sm:$0xff]  }
 0x3e0   : > { %v909_v41 = vpack.c.bf16 %v903_v40, %v903_v40  ;;  %v960_v44 = vpop.trf.xlu1  ;;  %v1323_v24 = vsub.s32 %v1320_v20, %v1322_v21 }
 0x3e2   : > { %v1051_v42 = vsel %vm863_vm3, %v909_v41, 0 }
 0x3e3   : > { %1812 = vmatpush3.bf16.xpose.msra.mxu1 %v1051_v42 }
 0x3e4   : > { %1823 = vmatprep.subr.bf16.mxu1 %v1964_v2 }
 0x3e5   : > { %v1919_v45 = vpop.eup %1918 }
 0x3e6   : > { %v905_v46 = vmul.f32 %v1919_v45, %v1911_v22 }
 0x3e8   : > { %v910_v48 = vpack.c.bf16 %v905_v46, %v905_v46 }
 0x3ea   : > { %1814 = vmatmul.mubr.msk.bf16.vlgmr.msra.gmra.mrb[16].mxu1 %vm863_vm3, %v960_v44  ;;  %v1098_v50 = vsel %vm863_vm3, %v910_v48, 0  ;;  %v1905_v48 = vld [vmem:[%s2241_s6 + $0x18] sm:$0xff]  }
 0x3eb   : > { %1825 = vmatprep.mubr.msk.bf16.mxu1 %vm1965_vm0, %v1964_v2 }
 0x407   : > { %v899_v47 = vpop.xlane.xlu0 %898 }
 0x408   : > { %1920 = vrcp.f32 %v899_v47 }
 0x40d   : > { %v944_v49 = vpop.trf.xlu0 }
 0x40e   : > { %1808 = vmatmul.mubr.msk.bf16.vlgmr.msra.gmra.mrb[8].mxu0 %vm863_vm3, %v944_v49 }
 0x40f   : > { %1818 = vmatpush3.bf16.xpose.msra.mxu0 %v1098_v50  ;;  %1819 = vmatprep.mubr.msk.bf16.mxu0 %vm1965_vm0, %v1964_v2 }
 0x410   : > { %1829 = vmatprep.subr.bf16.mxu0 %v1964_v2 }
 0x412   : > { %v1921_v51 = vpop.eup %1920 }
 0x413   : > { %v907_v52 = vmul.f32 %v1921_v51, %v1913_v27 }
 0x415   : > { %v911_v53 = vpack.c.bf16 %v907_v52, %v907_v52  ;;  %v976_v54 = vpop.trf.xlu0 }
 0x416   : > { %1820 = vmatmul.mubr.msk.bf16.vlgmr.msra.gmra.mrb[12].mxu0 %vm863_vm3, %v976_v54 }
 0x417   : > { %v1145_v55 = vsel %vm863_vm3, %v911_v53, 0  ;;  %1837 = vmatprep.mubr.msk.bf16.mxu0 %vm1965_vm0, %v1964_v2  ;;  %1830 = vmatpush3.bf16.msra.mxu0 %v1902_v10 }
 0x418   : > { %1824 = vmatpush3.bf16.xpose.msra.mxu1 %v1145_v55  ;;  %1831 = vmatprep.subr.bf16.mxu0 %v1964_v2 }
 0x41b   : > { %1832 = vmatpush3.bf16.msra.mxu0 %v1903_v11 }
 0x41c   : > { %1833 = vmatprep.subr.bf16.mxu0 %v1964_v2 }
 0x41f   : > { %1834 = vmatpush3.bf16.msra.mxu0 %v1904_v39 }
 0x420   : > { %1835 = vmatprep.subr.bf16.mxu0 %v1964_v2 }
 0x423   : > { %1836 = vmatpush3.bf16.msra.mxu0 %v1905_v48 }
 0x439   : > { %v992_v56 = vpop.trf.xlu1 }
 0x43a   : > { %1826 = vmatmul.mubr.msk.bf16.vlgmr.msra.gmra.mrb[20].mxu1 %vm863_vm3, %v992_v56 }
 0x4bd   : > { %v1087_v57 = vpop.f32.mrb[16].mxu1 }
 0x4be   : > { %1220 = vxpose.xlu1.b32.start [1/2] (short) (narrow) %v1087_v57, 8  ;;  %v1815_v58 = vpop.f32.mrb[17].mxu1 }
 0x4bf   : > { %v1090_v59 = vpop.f32.mrb[18].mxu1 }
 0x4c0   : > { %v1816_v60 = vpop.f32.mrb[19].mxu1 }
 0x4c2   : > { %1221 = vxpose.xlu1.b32.end [2/2] (short) (narrow) %v1090_v59, 8 }
 0x4e1   : > { %v1040_v61 = vpop.f32.mrb[8].mxu0 }
 0x4e2   : > { %1188 = vxpose.xlu0.b32.start [1/2] (short) (narrow) %v1040_v61, 8  ;;  %v1809_v62 = vpop.f32.mrb[9].mxu0 }
 0x4e3   : > { %v1043_v63 = vpop.f32.mrb[10].mxu0 }
 0x4e4   : > { %v1810_v0 = vpop.f32.mrb[11].mxu0 }
 0x4e6   : > { %1189 = vxpose.xlu0.b32.end [2/2] (short) (narrow) %v1043_v63, 8 }
 0x4e9   : > { %v1134_v1 = vpop.f32.mrb[12].mxu0 }
 0x4ea   : > { %1252 = vxpose.xlu0.b32.start [1/2] (short) (narrow) %v1134_v1, 8  ;;  %v1821_v3 = vpop.f32.mrb[13].mxu0 }
 0x4eb   : > { %v1137_v4 = vpop.f32.mrb[14].mxu0 }
 0x4ec   : > { %v1822_v5 = vpop.f32.mrb[15].mxu0 }
 0x4ee   : > { %1253 = vxpose.xlu0.b32.end [2/2] (short) (narrow) %v1137_v4, 8 }
 0x50d   : > { %v1181_v6 = vpop.f32.mrb[20].mxu1 }
 0x50e   : > { %1284 = vxpose.xlu1.b32.start [1/2] (short) (narrow) %v1181_v6, 8  ;;  %v1827_v7 = vpop.f32.mrb[21].mxu1 }
 0x50f   : > { %v1184_v8 = vpop.f32.mrb[22].mxu1 }
 0x510   : > { %v1828_v9 = vpop.f32.mrb[23].mxu1 }
 0x512   : > { %1285 = vxpose.xlu1.b32.end [2/2] (short) (narrow) %v1184_v8, 8  ;;  %v1715_v8 = vld [vmem:[%s2242_s7] ss:$0 sm:$0xff] }
 0x53e   : > { %v1236_v17 = vpop.trf.xlu1 }
 0x562   : > { %v1204_v12 = vpop.trf.xlu0 }
 0x56a   : > { %v1268_v22 = vpop.trf.xlu0 }
 0x56b   : > { %v1316_v25 = vcombine.low %v1204_v12, %v1268_v22  ;;  %v1317_v26 = vcombine.high %v1204_v12, %v1268_v22 }
 0x56d   : > { %v1324_v33 = vrot.slane %v1316_v25, %v1323_v24  ;;  %v1331_v34 = vrot.slane %v1317_v26, %v1323_v24 }
 0x58e   : > { %v1300_v27 = vpop.trf.xlu1 }
 0x58f   : > { %v1332_v28 = vcombine.low %v1236_v17, %v1300_v27  ;;  %v1333_v29 = vcombine.high %v1236_v17, %v1300_v27  ;;  %v1722_v27 = vld [vmem:[%s2244_s9] ss:$0 sm:$0xff] }
 0x591   : > { %v1340_v31 = vrot.slane %v1332_v28, %v1323_v24  ;;  %v1347_v32 = vrot.slane %v1333_v29, %v1323_v24 }
 0x593   : > { %v1348_v35 = vcombine.low %v1324_v33, %v1340_v31  ;;  %v1349_v36 = vcombine.high %v1324_v33, %v1340_v31  ;;  %v1364_v37 = vcombine.low %v1331_v34, %v1347_v32  ;;  %v1365_v38 = vcombine.high %v1331_v34, %v1347_v32 }
 0x595   : > { %v1356_v40 = vrot.slane %v1348_v35, %v1355_v30  ;;  %v1363_v41 = vrot.slane %v1349_v36, %v1355_v30  ;;  %v1372_v42 = vrot.slane %v1364_v37, %v1355_v30  ;;  %v1379_v43 = vrot.slane %v1365_v38, %v1355_v30 }
 0x597   : > { %v1384_v44 = vcombine.low %v1356_v40, %v1363_v41  ;;  %v1713_v45 = vcombine.high %v1356_v40, %v1363_v41  ;;  %v1400_v46 = vcombine.low %v1372_v42, %v1379_v43  ;;  %v1714_v47 = vcombine.high %v1372_v42, %v1379_v43 }
 0x599   : > { %v1391_v49 = vrot.slane %v1384_v44, %v1323_v24  ;;  %v1399_v50 = vrot.slane %v1713_v45, %v1323_v24  ;;  %v1407_v51 = vrot.slane %v1400_v46, %v1323_v24  ;;  %v1415_v52 = vrot.slane %v1714_v47, %v1323_v24 }
 0x59b   : > { %v1417_v53 = vcombine.high %v1391_v49, %v1399_v50  ;;  %v1433_v54 = vcombine.high %v1407_v51, %v1415_v52  ;;  %v1416_v55 = vcombine.low %v1391_v49, %v1399_v50  ;;  %v1432_v56 = vcombine.low %v1407_v51, %v1415_v52 }
 0x59d   : > { %v1431_v57 = vrot.slane %v1417_v53, %v1355_v30  ;;  %v1447_v58 = vrot.slane %v1433_v54, %v1355_v30  ;;  %v1424_v2 = vrot.slane %v1416_v55, %v1355_v30  ;;  %v1440_v59 = vrot.slane %v1432_v56, %v1355_v30 }
 0x59f   : > { %v1450_v60 = vcombine.low %v1431_v57, %v1447_v58  ;;  %v1449_v61 = vcombine.high %v1424_v2, %v1440_v59  ;;  %v1448_v62 = vcombine.low %v1424_v2, %v1440_v59  ;;  %v1451_v63 = vcombine.high %v1431_v57, %v1447_v58 }
 0x5a1   : > { %1457 = vrot.lane.b32.xlu1 %v1450_v60, %s1972_s21  ;;  %1453 = vrot.lane.b32.xlu0 %v1449_v61, %s1973_s22 }
 0x5a5   : > { %1461 = vrot.lane.b32.xlu1 %v1451_v63, %s1974_s23 }
 0x613   : > { %v1458_v0 = vpop.permute.xlu1 %1457  ;;  %v1454_v1 = vpop.permute.xlu0 %1453 }
 0x614   : > { %v1464_v3 = vsel %vm690_vm2, %v1448_v62, %v1454_v1 }
 0x615   : > { %v1466_v5 = vsel %vm1465_vm4, %v1464_v3, %v1458_v0 }
 0x617   : > { %v1462_v4 = vpop.permute.xlu1 %1461 }
 0x618   : > { %v1468_v6 = vsel %vm1467_vm5, %v1466_v5, %v1462_v4 }
 0x619   : > { %v1477_v7 = vpack.c.bf16 %v1468_v6, %v1468_v6 }
 0x61b   : > { %1838 = vmatmul.mubr.msk.bf16.vlgmr.msra.gmra.mrb[16].mxu0 %vm456_vm1, %v1477_v7 }
 0x6ee   : > { %v1546_v9 = vpop.f32.mrb[16].mxu0 }
 0x6ef   : > { %v1547_v10 = vadd.f32 %v1715_v8, %v1546_v9  ;;  %v1839_v11 = vpop.f32.mrb[17].mxu0 }
 0x6f0   : > { %v1549_v12 = vpop.f32.mrb[18].mxu0 }
 0x6f1   : > { %v1840_v13 = vpop.f32.mrb[19].mxu0  ;;  %v1552_v15 = vadd.f32 %v1547_v10, %v2105_v14  ;;  %v1721_v14 = vld [vmem:[%s2243_s8] ss:$0 sm:$0xff] }
 0x6f3   : > { %v1555_v16 = vsel %vm456_vm1, %v1552_v15, 0.0 }
 0x6f4   : > { %1556 = vadd.xlane.f32.xlu0 %v1555_v16 }
 0x781   : > { %v1557_v17 = vpop.xlane.xlu0 %1556 }
 0x782   : > { %v1559_v18 = vmul.f32 0.015625, %v1557_v17 }
 0x784   : > { %v1560_v19 = vsub.f32 %v1552_v15, %v1559_v18 }
 0x786   : > { %v1561_v20 = vmul.f32 %v1560_v19, %v1560_v19 }
 0x788   : > { %v1562_v21 = vsel %vm456_vm1, %v1561_v20, 0.0 }
 0x789   : > { %1563 = vadd.xlane.f32.xlu1 %v1562_v21 }
 0x816   : > { %v1564_v22 = vpop.xlane.xlu1 %1563 }
 0x817   : > { %v1565_v23 = vmul.f32 0.015625, %v1564_v22 }
 0x819   : > { %v1566_v24 = vadd.f32 1e-05, %v1565_v23 }
 0x81b   : > { %1922 = vrsqrt.f32 %v1566_v24 }
 0x825   : > { %v1923_v25 = vpop.eup %1922 }
 0x826   : > { %v1568_v26 = vmul.f32 %v1923_v25, %v1560_v19 }
 0x828   : > { %v1575_v28 = vmul.f32 %v1721_v14, %v1568_v26 }
 0x82a   : > { %v1582_v29 = vadd.f32 %v1722_v27, %v1575_v28 }
 0x82c   : > { %1583 = vst.msk [vmem:[%s410_s12] sm:$0xff] %vm456_vm1, %v1582_v29 }
 0x82d PF: > { %s20_s17 = sadd.s32 1, %s1962_s17   ;;  %s2246_s13 = smov %s1954_s15 }
 0x82e   : > { %p17_p7 = scmp.ge.s32.totalorder %s20_s17, 6   ;;  %s2247_s14 = smov %s1958_s16 }
 0x82f   : > { %s2248_s15 = smov %s2251_s18  ;;  %s2249_s16 = smov %s2255_s19 }
 0x830   :  { %19 = sbr.rel (!%p17_p7) target bundleno = 3 (0x3), region = 93 }

</bundles_post_ra>
